<compile_context>
chip_gen: v5e
topology: v5e:2x2
jax: 0.10.0
libtpu: 0.0.40
codegen_flags: <defaults>
</compile_context>

<pallas_src>
import math
import functools

import jax
import jax.numpy as jnp
from jax import lax
from jax.experimental import pallas as pl
from jax.experimental.pallas import tpu as pltpu


# ----------------------------- config ---------------------------------------
CONFIG = dict(
    vocab_size=128,
    context_length=16,
    embedding_dim=128,      # = lane width -> full vreg utilization
    num_of_heads=4,
    num_of_layers=2,
    drop_rate_embedding=0.0,
    drop_rate_attention=0.0,
    drop_rate_shortcut=0.0,
    qkv_bias=False,
)

EPS = 1e-5
GELU_C = math.sqrt(2.0 / math.pi)
NEG_INF = -1e30  # finite stand-in for -inf (diagonal is never masked, so equivalent)


# --------------------------- in-kernel helpers -------------------------------
def _layernorm(h, scale, shift):
    # h: (T, D); scale/shift: (1, D). torch.var is unbiased -> divide by D-1.
    d = h.shape[-1]
    mean = jnp.mean(h, axis=-1, keepdims=True)
    var = jnp.sum((h - mean) ** 2, axis=-1, keepdims=True) * (1.0 / (d - 1))
    return scale * ((h - mean) * lax.rsqrt(var + EPS)) + shift


def _gelu(h):
    # Exactly the module's GELU: 0.5*x*(1+tanh(sqrt(2/pi)*(x + 0.44715*x^3)))
    return 0.5 * h * (1.0 + jnp.tanh(GELU_C * (h + 0.44715 * h * h * h)))


# --------------------------- fused full-model kernel -------------------------
def _gpt_kernel(num_layers, num_heads,
                x_ref,
                ln1s_ref, ln1b_ref,
                wqkv_ref, wo_ref, bo_ref,
                ln2s_ref, ln2b_ref,
                w1_ref, b1_ref, w2_ref, b2_ref,
                flns_ref, flnb_ref, whead_ref,
                out_ref):
    _, T, D = x_ref.shape
    H = num_heads
    hd = D // H
    inv_sqrt_hd = 1.0 / math.sqrt(hd)

    # this batch element's activations; residual stream kept in f32
    x = x_ref[0].astype(jnp.float32)                                   # (T, D)

    # additive causal mask, built once and reused by every (unrolled) layer
    row = lax.broadcasted_iota(jnp.int32, (T, T), 0)
    col = lax.broadcasted_iota(jnp.int32, (T, T), 1)
    neg = jnp.where(col > row, NEG_INF, 0.0).astype(jnp.float32)       # (T, T)

    for l in range(num_layers):                     # L static -> fully unrolled
        # ---- LN1 + multi-head causal attention ----
        h = _layernorm(x, ln1s_ref[l], ln1b_ref[l])
        # fused, lane-dense QKV projection: one (T,D) @ (D,3D) bf16 MXU op
        qkv = jnp.dot(h.astype(jnp.bfloat16), wqkv_ref[l],
                      preferred_element_type=jnp.float32)              # (T, 3D)

        ctx_parts = []
        for hh in range(H):                          # H static, tiny per-head math
            q_h = qkv[:, hh * hd:(hh + 1) * hd]                        # (T, hd)
            k_h = qkv[:, D + hh * hd:D + (hh + 1) * hd]                # (T, hd)
            v_h = qkv[:, 2 * D + hh * hd:2 * D + (hh + 1) * hd]        # (T, hd)
            # scores = q_h @ k_h^T  (contract last dims; no explicit transpose)
            s = lax.dot_general(q_h, k_h, (((1,), (1,)), ((), ())),
                                preferred_element_type=jnp.float32)    # (T, T)
            s = s * inv_sqrt_hd + neg
            s = s - jnp.max(s, axis=-1, keepdims=True)
            e = jnp.exp(s)
            p = e / jnp.sum(e, axis=-1, keepdims=True)                 # exact softmax
            ctx_parts.append(jnp.dot(p, v_h,
                                     preferred_element_type=jnp.float32))
        ctx = jnp.concatenate(ctx_parts, axis=-1)                      # (T, D)

        # single lane-dense output projection
        attn_out = jnp.dot(ctx.astype(jnp.bfloat16), wo_ref[l],
                           preferred_element_type=jnp.float32) + bo_ref[l]
        x = x + attn_out                                               # residual 1

        # ---- LN2 + feed-forward ----
        h2 = _layernorm(x, ln2s_ref[l], ln2b_ref[l])
        ff = jnp.dot(h2.astype(jnp.bfloat16), w1_ref[l],
                     preferred_element_type=jnp.float32) + b1_ref[l]
        ff = _gelu(ff)
        ff = jnp.dot(ff.astype(jnp.bfloat16), w2_ref[l],
                     preferred_element_type=jnp.float32) + b2_ref[l]
        x = x + ff                                                     # residual 2

    # ---- final LN + output head ----
    hf = _layernorm(x, flns_ref[...], flnb_ref[...])
    out_ref[0] = jnp.dot(hf.astype(jnp.bfloat16), whead_ref[...],
                         preferred_element_type=jnp.float32).astype(out_ref.dtype)


def gpt_pallas_forward(params, x_emb, cfg):
    B, T, D = x_emb.shape
    L = cfg["num_of_layers"]
    H = cfg["num_of_heads"]
    V = params["w_head"].shape[-1]

    def whole(arr):
        # whole-array block, constant index map -> DMA'd once, VMEM-resident
        nd = arr.ndim
        return pl.BlockSpec(arr.shape, lambda b, _n=nd: (0,) * _n)

    weights = [
        params["ln1_scale"], params["ln1_shift"],
        params["wqkv"], params["wo"], params["bo"],
        params["ln2_scale"], params["ln2_shift"],
        params["w1"], params["b1"], params["w2"], params["b2"],
        params["fln_scale"], params["fln_shift"], params["w_head"],
    ]

    grid_spec = pltpu.PrefetchScalarGridSpec(
        num_scalar_prefetch=0,
        grid=(B,),
        in_specs=[pl.BlockSpec((1, T, D), lambda b: (b, 0, 0))]
                 + [whole(w) for w in weights],
        out_specs=pl.BlockSpec((1, T, V), lambda b: (b, 0, 0)),
    )

    return pl.pallas_call(
        functools.partial(_gpt_kernel, L, H),
        out_shape=jax.ShapeDtypeStruct((B, T, V), jnp.float32),
        grid_spec=grid_spec,
        compiler_params=pltpu.CompilerParams(
            dimension_semantics=("parallel",)),
    )(x_emb, *weights)


# --------------------------- parameter init (deterministic) ------------------
def init_params(key, cfg):
    D = cfg["embedding_dim"]
    V = cfg["vocab_size"]
    C = cfg["context_length"]
    L = cfg["num_of_layers"]

    def normal(k, shape, std=0.02):
        return (std * jax.random.normal(k, shape)).astype(jnp.float32)

    keys = jax.random.split(key, 11)

    # Fused QKV weight (columns [0:D]=Q, [D:2D]=K, [2D:3D]=V), bf16 in HBM.
    wq = normal(keys[3], (L, D, D))
    wk = normal(keys[4], (L, D, D))
    wv = normal(keys[5], (L, D, D))
    wqkv = jnp.concatenate([wq, wk, wv], axis=-1).astype(jnp.bfloat16)  # (L, D, 3D)

    return dict(
        tok_emb=normal(keys[0], (V, D)),
        pos_emb=normal(keys[1], (C, D)),
        w_head=normal(keys[2], (D, V)).astype(jnp.bfloat16),
        fln_scale=jnp.ones((1, D), jnp.float32),
        fln_shift=jnp.zeros((1, D), jnp.float32),
        ln1_scale=jnp.ones((L, 1, D), jnp.float32),
        ln1_shift=jnp.zeros((L, 1, D), jnp.float32),
        wqkv=wqkv,
        wo=normal(keys[6], (L, D, D)).astype(jnp.bfloat16),
        bo=jnp.zeros((L, 1, D), jnp.float32),
        ln2_scale=jnp.ones((L, 1, D), jnp.float32),
        ln2_shift=jnp.zeros((L, 1, D), jnp.float32),
        w1=normal(keys[7], (L, D, 4 * D)).astype(jnp.bfloat16),
        b1=normal(keys[8], (L, 1, 4 * D)),
        w2=normal(keys[9], (L, 4 * D, D)).astype(jnp.bfloat16),
        b2=normal(keys[10], (L, 1, D)),
    )


# --------------------------- full model forward -------------------------------
def gpt_forward(params, token_ids, cfg):
    B, T = token_ids.shape
    # Embedding gathers are plain-JAX glue; embedding dropout is identity (rate 0).
    x = params["tok_emb"][token_ids] + params["pos_emb"][jnp.arange(T)]
    return gpt_pallas_forward(params, x.astype(jnp.float32), cfg)


# ------------------------------------ main ------------------------------------
if __name__ == "__main__":
    key = jax.random.PRNGKey(0)
    pkey, dkey = jax.random.split(key)

    params = init_params(pkey, CONFIG)

    batch, seq = 2, 8
    token_ids = jax.random.randint(dkey, (batch, seq), 0, CONFIG["vocab_size"],
                                   dtype=jnp.int32)

    logits = gpt_forward(params, token_ids, CONFIG)
    logits = jax.block_until_ready(logits)

    assert logits.shape == (batch, seq, CONFIG["vocab_size"])
    assert bool(jnp.all(jnp.isfinite(logits)))
    print("KERNEL_OK")
</pallas_src>

<mosaic_0001>
module attributes {stable_mosaic.version = 11 : i64} {
  func.func @_gpt_kernel(%arg0: i32, %arg1: memref<1x8x128xf32, #tpu.memory_space<vmem>>, %arg2: memref<2x1x128xf32, #tpu.memory_space<vmem>>, %arg3: memref<2x1x128xf32, #tpu.memory_space<vmem>>, %arg4: memref<2x128x384xbf16, #tpu.memory_space<vmem>>, %arg5: memref<2x128x128xbf16, #tpu.memory_space<vmem>>, %arg6: memref<2x1x128xf32, #tpu.memory_space<vmem>>, %arg7: memref<2x1x128xf32, #tpu.memory_space<vmem>>, %arg8: memref<2x1x128xf32, #tpu.memory_space<vmem>>, %arg9: memref<2x128x512xbf16, #tpu.memory_space<vmem>>, %arg10: memref<2x1x512xf32, #tpu.memory_space<vmem>>, %arg11: memref<2x512x128xbf16, #tpu.memory_space<vmem>>, %arg12: memref<2x1x128xf32, #tpu.memory_space<vmem>>, %arg13: memref<1x128xf32, #tpu.memory_space<vmem>>, %arg14: memref<1x128xf32, #tpu.memory_space<vmem>>, %arg15: memref<128x128xbf16, #tpu.memory_space<vmem>>, %arg16: memref<1x8x128xf32, #tpu.memory_space<vmem>>) attributes {dimension_semantics = [#tpu.dimension_semantics<parallel>], iteration_bounds = array<i64: 2>, scalar_prefetch = 0 : i64, scratch_operands = 0 : i64, tpu.core_type = #tpu.core_type<tc>, window_params = [{transform_indices = @transform_0, window_bounds = array<i64: 1, 8, 128>}, {pipeline_mode = #tpu.pipeline_mode<synchronous>, transform_indices = @transform_1, window_bounds = array<i64: 2, 1, 128>}, {pipeline_mode = #tpu.pipeline_mode<synchronous>, transform_indices = @transform_2, window_bounds = array<i64: 2, 1, 128>}, {pipeline_mode = #tpu.pipeline_mode<synchronous>, transform_indices = @transform_3, window_bounds = array<i64: 2, 128, 384>}, {pipeline_mode = #tpu.pipeline_mode<synchronous>, transform_indices = @transform_4, window_bounds = array<i64: 2, 128, 128>}, {pipeline_mode = #tpu.pipeline_mode<synchronous>, transform_indices = @transform_5, window_bounds = array<i64: 2, 1, 128>}, {pipeline_mode = #tpu.pipeline_mode<synchronous>, transform_indices = @transform_6, window_bounds = array<i64: 2, 1, 128>}, {pipeline_mode = #tpu.pipeline_mode<synchronous>, transform_indices = @transform_7, window_bounds = array<i64: 2, 1, 128>}, {pipeline_mode = #tpu.pipeline_mode<synchronous>, transform_indices = @transform_8, window_bounds = array<i64: 2, 128, 512>}, {pipeline_mode = #tpu.pipeline_mode<synchronous>, transform_indices = @transform_9, window_bounds = array<i64: 2, 1, 512>}, {pipeline_mode = #tpu.pipeline_mode<synchronous>, transform_indices = @transform_10, window_bounds = array<i64: 2, 512, 128>}, {pipeline_mode = #tpu.pipeline_mode<synchronous>, transform_indices = @transform_11, window_bounds = array<i64: 2, 1, 128>}, {pipeline_mode = #tpu.pipeline_mode<synchronous>, transform_indices = @transform_12, window_bounds = array<i64: 1, 128>}, {pipeline_mode = #tpu.pipeline_mode<synchronous>, transform_indices = @transform_13, window_bounds = array<i64: 1, 128>}, {pipeline_mode = #tpu.pipeline_mode<synchronous>, transform_indices = @transform_14, window_bounds = array<i64: 128, 128>}, {transform_indices = @transform_15, window_bounds = array<i64: 1, 8, 128>}]} {
    %c0 = arith.constant 0 : index
    %c0_0 = arith.constant 0 : index
    %c0_1 = arith.constant 0 : index
    %0 = vector.load %arg1[%c0, %c0_0, %c0_1] : memref<1x8x128xf32, #tpu.memory_space<vmem>>, vector<1x8x128xf32>
    %1 = vector.shape_cast %0 : vector<1x8x128xf32> to vector<8x128xf32>
    %2 = tpu.iota {dimensions = array<i32: 0>} : vector<8x8xi32>
    %3 = tpu.iota {dimensions = array<i32: 1>} : vector<8x8xi32>
    %4 = arith.cmpi sgt, %3, %2 : vector<8x8xi32>
    %cst = arith.constant -1.000000e+30 : f32
    %cst_2 = arith.constant 0.000000e+00 : f32
    %5 = vector.broadcast %cst : f32 to vector<8x8xf32>
    %6 = vector.broadcast %cst_2 : f32 to vector<8x8xf32>
    %7 = arith.select %4, %5, %6 : vector<8x8xi1>, vector<8x8xf32>
    %c0_3 = arith.constant 0 : index
    %c0_4 = arith.constant 0 : index
    %c0_5 = arith.constant 0 : index
    %8 = vector.load %arg2[%c0_3, %c0_4, %c0_5] : memref<2x1x128xf32, #tpu.memory_space<vmem>>, vector<1x1x128xf32>
    %9 = vector.shape_cast %8 : vector<1x1x128xf32> to vector<1x128xf32>
    %c0_6 = arith.constant 0 : index
    %c0_7 = arith.constant 0 : index
    %c0_8 = arith.constant 0 : index
    %10 = vector.load %arg3[%c0_6, %c0_7, %c0_8] : memref<2x1x128xf32, #tpu.memory_space<vmem>>, vector<1x1x128xf32>
    %11 = vector.shape_cast %10 : vector<1x1x128xf32> to vector<1x128xf32>
    %cst_9 = arith.constant dense<0.000000e+00> : vector<8xf32>
    %12 = vector.multi_reduction <add>, %1, %cst_9 [1] : vector<8x128xf32> to vector<8xf32>
    %13 = vector.shape_cast %12 : vector<8xf32> to vector<8x1xf32>
    %cst_10 = arith.constant 1.280000e+02 : f32
    %14 = vector.broadcast %cst_10 : f32 to vector<8x1xf32>
    %15 = arith.divf %13, %14 : vector<8x1xf32>
    %16 = vector.broadcast %15 : vector<8x1xf32> to vector<8x128xf32>
    %17 = arith.subf %1, %16 : vector<8x128xf32>
    %18 = arith.mulf %17, %17 : vector<8x128xf32>
    %cst_11 = arith.constant dense<0.000000e+00> : vector<8xf32>
    %19 = vector.multi_reduction <add>, %18, %cst_11 [1] : vector<8x128xf32> to vector<8xf32>
    %20 = vector.shape_cast %19 : vector<8xf32> to vector<8x1xf32>
    %cst_12 = arith.constant 0.00787401571 : f32
    %21 = vector.broadcast %cst_12 : f32 to vector<8x1xf32>
    %22 = arith.mulf %20, %21 : vector<8x1xf32>
    %23 = vector.broadcast %15 : vector<8x1xf32> to vector<8x128xf32>
    %24 = arith.subf %1, %23 : vector<8x128xf32>
    %cst_13 = arith.constant 9.99999974E-6 : f32
    %25 = vector.broadcast %cst_13 : f32 to vector<8x1xf32>
    %26 = arith.addf %22, %25 : vector<8x1xf32>
    %27 = math.rsqrt %26 : vector<8x1xf32>
    %28 = vector.broadcast %27 : vector<8x1xf32> to vector<8x128xf32>
    %29 = arith.mulf %24, %28 : vector<8x128xf32>
    %30 = vector.broadcast %9 : vector<1x128xf32> to vector<8x128xf32>
    %31 = arith.mulf %30, %29 : vector<8x128xf32>
    %32 = vector.broadcast %11 : vector<1x128xf32> to vector<8x128xf32>
    %33 = arith.addf %31, %32 : vector<8x128xf32>
    %34 = arith.truncf %33 : vector<8x128xf32> to vector<8x128xbf16>
    %c0_14 = arith.constant 0 : index
    %c0_15 = arith.constant 0 : index
    %c0_16 = arith.constant 0 : index
    %35 = vector.load %arg4[%c0_14, %c0_15, %c0_16] : memref<2x128x384xbf16, #tpu.memory_space<vmem>>, vector<1x128x384xbf16>
    %36 = vector.shape_cast %35 : vector<1x128x384xbf16> to vector<128x384xbf16>
    %cst_17 = arith.constant dense<0.000000e+00> : vector<8x384xf32>
    %37 = tpu.matmul %34, %36, %cst_17 {dimension_numbers = #tpu.dot_dimension_numbers<[1], [0], [0], [1], [0, 0, 1, 1], [], []>} : vector<8x128xbf16>, vector<128x384xbf16>, vector<8x384xf32> -> vector<8x384xf32>
    %38 = vector.extract_strided_slice %37 {offsets = [0, 0], sizes = [8, 32], strides = [1, 1]} : vector<8x384xf32> to vector<8x32xf32>
    %39 = vector.extract_strided_slice %37 {offsets = [0, 128], sizes = [8, 32], strides = [1, 1]} : vector<8x384xf32> to vector<8x32xf32>
    %40 = vector.extract_strided_slice %37 {offsets = [0, 256], sizes = [8, 32], strides = [1, 1]} : vector<8x384xf32> to vector<8x32xf32>
    %cst_18 = arith.constant dense<0.000000e+00> : vector<8x8xf32>
    %41 = tpu.matmul %38, %39, %cst_18 {dimension_numbers = #tpu.dot_dimension_numbers<[1], [1], [0], [0], [0, 0, 1, 0], [], []>} : vector<8x32xf32>, vector<8x32xf32>, vector<8x8xf32> -> vector<8x8xf32>
    %cst_19 = arith.constant 0.176776692 : f32
    %42 = vector.broadcast %cst_19 : f32 to vector<8x8xf32>
    %43 = arith.mulf %41, %42 : vector<8x8xf32>
    %44 = arith.addf %43, %7 : vector<8x8xf32>
    %cst_20 = arith.constant dense<0xFF800000> : vector<8xf32>
    %45 = vector.multi_reduction <maximumf>, %44, %cst_20 [1] : vector<8x8xf32> to vector<8xf32>
    %46 = vector.shape_cast %45 : vector<8xf32> to vector<8x1xf32>
    %47 = vector.broadcast %46 : vector<8x1xf32> to vector<8x8xf32>
    %48 = arith.subf %44, %47 : vector<8x8xf32>
    %49 = math.exp %48 : vector<8x8xf32>
    %cst_21 = arith.constant dense<0.000000e+00> : vector<8xf32>
    %50 = vector.multi_reduction <add>, %49, %cst_21 [1] : vector<8x8xf32> to vector<8xf32>
    %51 = vector.shape_cast %50 : vector<8xf32> to vector<8x1xf32>
    %52 = vector.broadcast %51 : vector<8x1xf32> to vector<8x8xf32>
    %53 = arith.divf %49, %52 : vector<8x8xf32>
    %cst_22 = arith.constant dense<0.000000e+00> : vector<8x32xf32>
    %54 = tpu.matmul %53, %40, %cst_22 {dimension_numbers = #tpu.dot_dimension_numbers<[1], [0], [0], [1], [0, 0, 1, 1], [], []>} : vector<8x8xf32>, vector<8x32xf32>, vector<8x32xf32> -> vector<8x32xf32>
    %55 = vector.extract_strided_slice %37 {offsets = [0, 32], sizes = [8, 32], strides = [1, 1]} : vector<8x384xf32> to vector<8x32xf32>
    %56 = vector.extract_strided_slice %37 {offsets = [0, 160], sizes = [8, 32], strides = [1, 1]} : vector<8x384xf32> to vector<8x32xf32>
    %57 = vector.extract_strided_slice %37 {offsets = [0, 288], sizes = [8, 32], strides = [1, 1]} : vector<8x384xf32> to vector<8x32xf32>
    %cst_23 = arith.constant dense<0.000000e+00> : vector<8x8xf32>
    %58 = tpu.matmul %55, %56, %cst_23 {dimension_numbers = #tpu.dot_dimension_numbers<[1], [1], [0], [0], [0, 0, 1, 0], [], []>} : vector<8x32xf32>, vector<8x32xf32>, vector<8x8xf32> -> vector<8x8xf32>
    %cst_24 = arith.constant 0.176776692 : f32
    %59 = vector.broadcast %cst_24 : f32 to vector<8x8xf32>
    %60 = arith.mulf %58, %59 : vector<8x8xf32>
    %61 = arith.addf %60, %7 : vector<8x8xf32>
    %cst_25 = arith.constant dense<0xFF800000> : vector<8xf32>
    %62 = vector.multi_reduction <maximumf>, %61, %cst_25 [1] : vector<8x8xf32> to vector<8xf32>
    %63 = vector.shape_cast %62 : vector<8xf32> to vector<8x1xf32>
    %64 = vector.broadcast %63 : vector<8x1xf32> to vector<8x8xf32>
    %65 = arith.subf %61, %64 : vector<8x8xf32>
    %66 = math.exp %65 : vector<8x8xf32>
    %cst_26 = arith.constant dense<0.000000e+00> : vector<8xf32>
    %67 = vector.multi_reduction <add>, %66, %cst_26 [1] : vector<8x8xf32> to vector<8xf32>
    %68 = vector.shape_cast %67 : vector<8xf32> to vector<8x1xf32>
    %69 = vector.broadcast %68 : vector<8x1xf32> to vector<8x8xf32>
    %70 = arith.divf %66, %69 : vector<8x8xf32>
    %cst_27 = arith.constant dense<0.000000e+00> : vector<8x32xf32>
    %71 = tpu.matmul %70, %57, %cst_27 {dimension_numbers = #tpu.dot_dimension_numbers<[1], [0], [0], [1], [0, 0, 1, 1], [], []>} : vector<8x8xf32>, vector<8x32xf32>, vector<8x32xf32> -> vector<8x32xf32>
    %72 = vector.extract_strided_slice %37 {offsets = [0, 64], sizes = [8, 32], strides = [1, 1]} : vector<8x384xf32> to vector<8x32xf32>
    %73 = vector.extract_strided_slice %37 {offsets = [0, 192], sizes = [8, 32], strides = [1, 1]} : vector<8x384xf32> to vector<8x32xf32>
    %74 = vector.extract_strided_slice %37 {offsets = [0, 320], sizes = [8, 32], strides = [1, 1]} : vector<8x384xf32> to vector<8x32xf32>
    %cst_28 = arith.constant dense<0.000000e+00> : vector<8x8xf32>
    %75 = tpu.matmul %72, %73, %cst_28 {dimension_numbers = #tpu.dot_dimension_numbers<[1], [1], [0], [0], [0, 0, 1, 0], [], []>} : vector<8x32xf32>, vector<8x32xf32>, vector<8x8xf32> -> vector<8x8xf32>
    %cst_29 = arith.constant 0.176776692 : f32
    %76 = vector.broadcast %cst_29 : f32 to vector<8x8xf32>
    %77 = arith.mulf %75, %76 : vector<8x8xf32>
    %78 = arith.addf %77, %7 : vector<8x8xf32>
    %cst_30 = arith.constant dense<0xFF800000> : vector<8xf32>
    %79 = vector.multi_reduction <maximumf>, %78, %cst_30 [1] : vector<8x8xf32> to vector<8xf32>
    %80 = vector.shape_cast %79 : vector<8xf32> to vector<8x1xf32>
    %81 = vector.broadcast %80 : vector<8x1xf32> to vector<8x8xf32>
    %82 = arith.subf %78, %81 : vector<8x8xf32>
    %83 = math.exp %82 : vector<8x8xf32>
    %cst_31 = arith.constant dense<0.000000e+00> : vector<8xf32>
    %84 = vector.multi_reduction <add>, %83, %cst_31 [1] : vector<8x8xf32> to vector<8xf32>
    %85 = vector.shape_cast %84 : vector<8xf32> to vector<8x1xf32>
    %86 = vector.broadcast %85 : vector<8x1xf32> to vector<8x8xf32>
    %87 = arith.divf %83, %86 : vector<8x8xf32>
    %cst_32 = arith.constant dense<0.000000e+00> : vector<8x32xf32>
    %88 = tpu.matmul %87, %74, %cst_32 {dimension_numbers = #tpu.dot_dimension_numbers<[1], [0], [0], [1], [0, 0, 1, 1], [], []>} : vector<8x8xf32>, vector<8x32xf32>, vector<8x32xf32> -> vector<8x32xf32>
    %89 = vector.extract_strided_slice %37 {offsets = [0, 96], sizes = [8, 32], strides = [1, 1]} : vector<8x384xf32> to vector<8x32xf32>
    %90 = vector.extract_strided_slice %37 {offsets = [0, 224], sizes = [8, 32], strides = [1, 1]} : vector<8x384xf32> to vector<8x32xf32>
    %91 = vector.extract_strided_slice %37 {offsets = [0, 352], sizes = [8, 32], strides = [1, 1]} : vector<8x384xf32> to vector<8x32xf32>
    %cst_33 = arith.constant dense<0.000000e+00> : vector<8x8xf32>
    %92 = tpu.matmul %89, %90, %cst_33 {dimension_numbers = #tpu.dot_dimension_numbers<[1], [1], [0], [0], [0, 0, 1, 0], [], []>} : vector<8x32xf32>, vector<8x32xf32>, vector<8x8xf32> -> vector<8x8xf32>
    %cst_34 = arith.constant 0.176776692 : f32
    %93 = vector.broadcast %cst_34 : f32 to vector<8x8xf32>
    %94 = arith.mulf %92, %93 : vector<8x8xf32>
    %95 = arith.addf %94, %7 : vector<8x8xf32>
    %cst_35 = arith.constant dense<0xFF800000> : vector<8xf32>
    %96 = vector.multi_reduction <maximumf>, %95, %cst_35 [1] : vector<8x8xf32> to vector<8xf32>
    %97 = vector.shape_cast %96 : vector<8xf32> to vector<8x1xf32>
    %98 = vector.broadcast %97 : vector<8x1xf32> to vector<8x8xf32>
    %99 = arith.subf %95, %98 : vector<8x8xf32>
    %100 = math.exp %99 : vector<8x8xf32>
    %cst_36 = arith.constant dense<0.000000e+00> : vector<8xf32>
    %101 = vector.multi_reduction <add>, %100, %cst_36 [1] : vector<8x8xf32> to vector<8xf32>
    %102 = vector.shape_cast %101 : vector<8xf32> to vector<8x1xf32>
    %103 = vector.broadcast %102 : vector<8x1xf32> to vector<8x8xf32>
    %104 = arith.divf %100, %103 : vector<8x8xf32>
    %cst_37 = arith.constant dense<0.000000e+00> : vector<8x32xf32>
    %105 = tpu.matmul %104, %91, %cst_37 {dimension_numbers = #tpu.dot_dimension_numbers<[1], [0], [0], [1], [0, 0, 1, 1], [], []>} : vector<8x8xf32>, vector<8x32xf32>, vector<8x32xf32> -> vector<8x32xf32>
    %106 = tpu.concatenate %54, %71, %88, %105 in 1 : vector<8x32xf32>, vector<8x32xf32>, vector<8x32xf32>, vector<8x32xf32> -> vector<8x128xf32>
    %107 = arith.truncf %106 : vector<8x128xf32> to vector<8x128xbf16>
    %c0_38 = arith.constant 0 : index
    %c0_39 = arith.constant 0 : index
    %c0_40 = arith.constant 0 : index
    %108 = vector.load %arg5[%c0_38, %c0_39, %c0_40] : memref<2x128x128xbf16, #tpu.memory_space<vmem>>, vector<1x128x128xbf16>
    %109 = vector.shape_cast %108 : vector<1x128x128xbf16> to vector<128x128xbf16>
    %cst_41 = arith.constant dense<0.000000e+00> : vector<8x128xf32>
    %110 = tpu.matmul %107, %109, %cst_41 {dimension_numbers = #tpu.dot_dimension_numbers<[1], [0], [0], [1], [0, 0, 1, 1], [], []>} : vector<8x128xbf16>, vector<128x128xbf16>, vector<8x128xf32> -> vector<8x128xf32>
    %c0_42 = arith.constant 0 : index
    %c0_43 = arith.constant 0 : index
    %c0_44 = arith.constant 0 : index
    %111 = vector.load %arg6[%c0_42, %c0_43, %c0_44] : memref<2x1x128xf32, #tpu.memory_space<vmem>>, vector<1x1x128xf32>
    %112 = vector.shape_cast %111 : vector<1x1x128xf32> to vector<1x128xf32>
    %113 = vector.broadcast %112 : vector<1x128xf32> to vector<8x128xf32>
    %114 = arith.addf %110, %113 : vector<8x128xf32>
    %115 = arith.addf %1, %114 : vector<8x128xf32>
    %c0_45 = arith.constant 0 : index
    %c0_46 = arith.constant 0 : index
    %c0_47 = arith.constant 0 : index
    %116 = vector.load %arg7[%c0_45, %c0_46, %c0_47] : memref<2x1x128xf32, #tpu.memory_space<vmem>>, vector<1x1x128xf32>
    %117 = vector.shape_cast %116 : vector<1x1x128xf32> to vector<1x128xf32>
    %c0_48 = arith.constant 0 : index
    %c0_49 = arith.constant 0 : index
    %c0_50 = arith.constant 0 : index
    %118 = vector.load %arg8[%c0_48, %c0_49, %c0_50] : memref<2x1x128xf32, #tpu.memory_space<vmem>>, vector<1x1x128xf32>
    %119 = vector.shape_cast %118 : vector<1x1x128xf32> to vector<1x128xf32>
    %cst_51 = arith.constant dense<0.000000e+00> : vector<8xf32>
    %120 = vector.multi_reduction <add>, %115, %cst_51 [1] : vector<8x128xf32> to vector<8xf32>
    %121 = vector.shape_cast %120 : vector<8xf32> to vector<8x1xf32>
    %cst_52 = arith.constant 1.280000e+02 : f32
    %122 = vector.broadcast %cst_52 : f32 to vector<8x1xf32>
    %123 = arith.divf %121, %122 : vector<8x1xf32>
    %124 = vector.broadcast %123 : vector<8x1xf32> to vector<8x128xf32>
    %125 = arith.subf %115, %124 : vector<8x128xf32>
    %126 = arith.mulf %125, %125 : vector<8x128xf32>
    %cst_53 = arith.constant dense<0.000000e+00> : vector<8xf32>
    %127 = vector.multi_reduction <add>, %126, %cst_53 [1] : vector<8x128xf32> to vector<8xf32>
    %128 = vector.shape_cast %127 : vector<8xf32> to vector<8x1xf32>
    %cst_54 = arith.constant 0.00787401571 : f32
    %129 = vector.broadcast %cst_54 : f32 to vector<8x1xf32>
    %130 = arith.mulf %128, %129 : vector<8x1xf32>
    %131 = vector.broadcast %123 : vector<8x1xf32> to vector<8x128xf32>
    %132 = arith.subf %115, %131 : vector<8x128xf32>
    %cst_55 = arith.constant 9.99999974E-6 : f32
    %133 = vector.broadcast %cst_55 : f32 to vector<8x1xf32>
    %134 = arith.addf %130, %133 : vector<8x1xf32>
    %135 = math.rsqrt %134 : vector<8x1xf32>
    %136 = vector.broadcast %135 : vector<8x1xf32> to vector<8x128xf32>
    %137 = arith.mulf %132, %136 : vector<8x128xf32>
    %138 = vector.broadcast %117 : vector<1x128xf32> to vector<8x128xf32>
    %139 = arith.mulf %138, %137 : vector<8x128xf32>
    %140 = vector.broadcast %119 : vector<1x128xf32> to vector<8x128xf32>
    %141 = arith.addf %139, %140 : vector<8x128xf32>
    %142 = arith.truncf %141 : vector<8x128xf32> to vector<8x128xbf16>
    %c0_56 = arith.constant 0 : index
    %c0_57 = arith.constant 0 : index
    %c0_58 = arith.constant 0 : index
    %143 = vector.load %arg9[%c0_56, %c0_57, %c0_58] : memref<2x128x512xbf16, #tpu.memory_space<vmem>>, vector<1x128x512xbf16>
    %144 = vector.shape_cast %143 : vector<1x128x512xbf16> to vector<128x512xbf16>
    %cst_59 = arith.constant dense<0.000000e+00> : vector<8x512xf32>
    %145 = tpu.matmul %142, %144, %cst_59 {dimension_numbers = #tpu.dot_dimension_numbers<[1], [0], [0], [1], [0, 0, 1, 1], [], []>} : vector<8x128xbf16>, vector<128x512xbf16>, vector<8x512xf32> -> vector<8x512xf32>
    %c0_60 = arith.constant 0 : index
    %c0_61 = arith.constant 0 : index
    %c0_62 = arith.constant 0 : index
    %146 = vector.load %arg10[%c0_60, %c0_61, %c0_62] : memref<2x1x512xf32, #tpu.memory_space<vmem>>, vector<1x1x512xf32>
    %147 = vector.shape_cast %146 : vector<1x1x512xf32> to vector<1x512xf32>
    %148 = vector.broadcast %147 : vector<1x512xf32> to vector<8x512xf32>
    %149 = arith.addf %145, %148 : vector<8x512xf32>
    %cst_63 = arith.constant 5.000000e-01 : f32
    %150 = vector.broadcast %cst_63 : f32 to vector<8x512xf32>
    %151 = arith.mulf %150, %149 : vector<8x512xf32>
    %cst_64 = arith.constant 4.471500e-01 : f32
    %152 = vector.broadcast %cst_64 : f32 to vector<8x512xf32>
    %153 = arith.mulf %152, %149 : vector<8x512xf32>
    %154 = arith.mulf %153, %149 : vector<8x512xf32>
    %155 = arith.mulf %154, %149 : vector<8x512xf32>
    %156 = arith.addf %149, %155 : vector<8x512xf32>
    %cst_65 = arith.constant 0.797884583 : f32
    %157 = vector.broadcast %cst_65 : f32 to vector<8x512xf32>
    %158 = arith.mulf %157, %156 : vector<8x512xf32>
    %159 = math.tanh %158 : vector<8x512xf32>
    %cst_66 = arith.constant 1.000000e+00 : f32
    %160 = vector.broadcast %cst_66 : f32 to vector<8x512xf32>
    %161 = arith.addf %160, %159 : vector<8x512xf32>
    %162 = arith.mulf %151, %161 : vector<8x512xf32>
    %163 = arith.truncf %162 : vector<8x512xf32> to vector<8x512xbf16>
    %c0_67 = arith.constant 0 : index
    %c0_68 = arith.constant 0 : index
    %c0_69 = arith.constant 0 : index
    %164 = vector.load %arg11[%c0_67, %c0_68, %c0_69] : memref<2x512x128xbf16, #tpu.memory_space<vmem>>, vector<1x512x128xbf16>
    %165 = vector.shape_cast %164 : vector<1x512x128xbf16> to vector<512x128xbf16>
    %cst_70 = arith.constant dense<0.000000e+00> : vector<8x128xf32>
    %166 = tpu.matmul %163, %165, %cst_70 {dimension_numbers = #tpu.dot_dimension_numbers<[1], [0], [0], [1], [0, 0, 1, 1], [], []>} : vector<8x512xbf16>, vector<512x128xbf16>, vector<8x128xf32> -> vector<8x128xf32>
    %c0_71 = arith.constant 0 : index
    %c0_72 = arith.constant 0 : index
    %c0_73 = arith.constant 0 : index
    %167 = vector.load %arg12[%c0_71, %c0_72, %c0_73] : memref<2x1x128xf32, #tpu.memory_space<vmem>>, vector<1x1x128xf32>
    %168 = vector.shape_cast %167 : vector<1x1x128xf32> to vector<1x128xf32>
    %169 = vector.broadcast %168 : vector<1x128xf32> to vector<8x128xf32>
    %170 = arith.addf %166, %169 : vector<8x128xf32>
    %171 = arith.addf %115, %170 : vector<8x128xf32>
    %c1 = arith.constant 1 : index
    %c0_74 = arith.constant 0 : index
    %c0_75 = arith.constant 0 : index
    %172 = vector.load %arg2[%c1, %c0_74, %c0_75] : memref<2x1x128xf32, #tpu.memory_space<vmem>>, vector<1x1x128xf32>
    %173 = vector.shape_cast %172 : vector<1x1x128xf32> to vector<1x128xf32>
    %c1_76 = arith.constant 1 : index
    %c0_77 = arith.constant 0 : index
    %c0_78 = arith.constant 0 : index
    %174 = vector.load %arg3[%c1_76, %c0_77, %c0_78] : memref<2x1x128xf32, #tpu.memory_space<vmem>>, vector<1x1x128xf32>
    %175 = vector.shape_cast %174 : vector<1x1x128xf32> to vector<1x128xf32>
    %cst_79 = arith.constant dense<0.000000e+00> : vector<8xf32>
    %176 = vector.multi_reduction <add>, %171, %cst_79 [1] : vector<8x128xf32> to vector<8xf32>
    %177 = vector.shape_cast %176 : vector<8xf32> to vector<8x1xf32>
    %cst_80 = arith.constant 1.280000e+02 : f32
    %178 = vector.broadcast %cst_80 : f32 to vector<8x1xf32>
    %179 = arith.divf %177, %178 : vector<8x1xf32>
    %180 = vector.broadcast %179 : vector<8x1xf32> to vector<8x128xf32>
    %181 = arith.subf %171, %180 : vector<8x128xf32>
    %182 = arith.mulf %181, %181 : vector<8x128xf32>
    %cst_81 = arith.constant dense<0.000000e+00> : vector<8xf32>
    %183 = vector.multi_reduction <add>, %182, %cst_81 [1] : vector<8x128xf32> to vector<8xf32>
    %184 = vector.shape_cast %183 : vector<8xf32> to vector<8x1xf32>
    %cst_82 = arith.constant 0.00787401571 : f32
    %185 = vector.broadcast %cst_82 : f32 to vector<8x1xf32>
    %186 = arith.mulf %184, %185 : vector<8x1xf32>
    %187 = vector.broadcast %179 : vector<8x1xf32> to vector<8x128xf32>
    %188 = arith.subf %171, %187 : vector<8x128xf32>
    %cst_83 = arith.constant 9.99999974E-6 : f32
    %189 = vector.broadcast %cst_83 : f32 to vector<8x1xf32>
    %190 = arith.addf %186, %189 : vector<8x1xf32>
    %191 = math.rsqrt %190 : vector<8x1xf32>
    %192 = vector.broadcast %191 : vector<8x1xf32> to vector<8x128xf32>
    %193 = arith.mulf %188, %192 : vector<8x128xf32>
    %194 = vector.broadcast %173 : vector<1x128xf32> to vector<8x128xf32>
    %195 = arith.mulf %194, %193 : vector<8x128xf32>
    %196 = vector.broadcast %175 : vector<1x128xf32> to vector<8x128xf32>
    %197 = arith.addf %195, %196 : vector<8x128xf32>
    %198 = arith.truncf %197 : vector<8x128xf32> to vector<8x128xbf16>
    %c1_84 = arith.constant 1 : index
    %c0_85 = arith.constant 0 : index
    %c0_86 = arith.constant 0 : index
    %199 = vector.load %arg4[%c1_84, %c0_85, %c0_86] : memref<2x128x384xbf16, #tpu.memory_space<vmem>>, vector<1x128x384xbf16>
    %200 = vector.shape_cast %199 : vector<1x128x384xbf16> to vector<128x384xbf16>
    %cst_87 = arith.constant dense<0.000000e+00> : vector<8x384xf32>
    %201 = tpu.matmul %198, %200, %cst_87 {dimension_numbers = #tpu.dot_dimension_numbers<[1], [0], [0], [1], [0, 0, 1, 1], [], []>} : vector<8x128xbf16>, vector<128x384xbf16>, vector<8x384xf32> -> vector<8x384xf32>
    %202 = vector.extract_strided_slice %201 {offsets = [0, 0], sizes = [8, 32], strides = [1, 1]} : vector<8x384xf32> to vector<8x32xf32>
    %203 = vector.extract_strided_slice %201 {offsets = [0, 128], sizes = [8, 32], strides = [1, 1]} : vector<8x384xf32> to vector<8x32xf32>
    %204 = vector.extract_strided_slice %201 {offsets = [0, 256], sizes = [8, 32], strides = [1, 1]} : vector<8x384xf32> to vector<8x32xf32>
    %cst_88 = arith.constant dense<0.000000e+00> : vector<8x8xf32>
    %205 = tpu.matmul %202, %203, %cst_88 {dimension_numbers = #tpu.dot_dimension_numbers<[1], [1], [0], [0], [0, 0, 1, 0], [], []>} : vector<8x32xf32>, vector<8x32xf32>, vector<8x8xf32> -> vector<8x8xf32>
    %cst_89 = arith.constant 0.176776692 : f32
    %206 = vector.broadcast %cst_89 : f32 to vector<8x8xf32>
    %207 = arith.mulf %205, %206 : vector<8x8xf32>
    %208 = arith.addf %207, %7 : vector<8x8xf32>
    %cst_90 = arith.constant dense<0xFF800000> : vector<8xf32>
    %209 = vector.multi_reduction <maximumf>, %208, %cst_90 [1] : vector<8x8xf32> to vector<8xf32>
    %210 = vector.shape_cast %209 : vector<8xf32> to vector<8x1xf32>
    %211 = vector.broadcast %210 : vector<8x1xf32> to vector<8x8xf32>
    %212 = arith.subf %208, %211 : vector<8x8xf32>
    %213 = math.exp %212 : vector<8x8xf32>
    %cst_91 = arith.constant dense<0.000000e+00> : vector<8xf32>
    %214 = vector.multi_reduction <add>, %213, %cst_91 [1] : vector<8x8xf32> to vector<8xf32>
    %215 = vector.shape_cast %214 : vector<8xf32> to vector<8x1xf32>
    %216 = vector.broadcast %215 : vector<8x1xf32> to vector<8x8xf32>
    %217 = arith.divf %213, %216 : vector<8x8xf32>
    %cst_92 = arith.constant dense<0.000000e+00> : vector<8x32xf32>
    %218 = tpu.matmul %217, %204, %cst_92 {dimension_numbers = #tpu.dot_dimension_numbers<[1], [0], [0], [1], [0, 0, 1, 1], [], []>} : vector<8x8xf32>, vector<8x32xf32>, vector<8x32xf32> -> vector<8x32xf32>
    %219 = vector.extract_strided_slice %201 {offsets = [0, 32], sizes = [8, 32], strides = [1, 1]} : vector<8x384xf32> to vector<8x32xf32>
    %220 = vector.extract_strided_slice %201 {offsets = [0, 160], sizes = [8, 32], strides = [1, 1]} : vector<8x384xf32> to vector<8x32xf32>
    %221 = vector.extract_strided_slice %201 {offsets = [0, 288], sizes = [8, 32], strides = [1, 1]} : vector<8x384xf32> to vector<8x32xf32>
    %cst_93 = arith.constant dense<0.000000e+00> : vector<8x8xf32>
    %222 = tpu.matmul %219, %220, %cst_93 {dimension_numbers = #tpu.dot_dimension_numbers<[1], [1], [0], [0], [0, 0, 1, 0], [], []>} : vector<8x32xf32>, vector<8x32xf32>, vector<8x8xf32> -> vector<8x8xf32>
    %cst_94 = arith.constant 0.176776692 : f32
    %223 = vector.broadcast %cst_94 : f32 to vector<8x8xf32>
    %224 = arith.mulf %222, %223 : vector<8x8xf32>
    %225 = arith.addf %224, %7 : vector<8x8xf32>
    %cst_95 = arith.constant dense<0xFF800000> : vector<8xf32>
    %226 = vector.multi_reduction <maximumf>, %225, %cst_95 [1] : vector<8x8xf32> to vector<8xf32>
    %227 = vector.shape_cast %226 : vector<8xf32> to vector<8x1xf32>
    %228 = vector.broadcast %227 : vector<8x1xf32> to vector<8x8xf32>
    %229 = arith.subf %225, %228 : vector<8x8xf32>
    %230 = math.exp %229 : vector<8x8xf32>
    %cst_96 = arith.constant dense<0.000000e+00> : vector<8xf32>
    %231 = vector.multi_reduction <add>, %230, %cst_96 [1] : vector<8x8xf32> to vector<8xf32>
    %232 = vector.shape_cast %231 : vector<8xf32> to vector<8x1xf32>
    %233 = vector.broadcast %232 : vector<8x1xf32> to vector<8x8xf32>
    %234 = arith.divf %230, %233 : vector<8x8xf32>
    %cst_97 = arith.constant dense<0.000000e+00> : vector<8x32xf32>
    %235 = tpu.matmul %234, %221, %cst_97 {dimension_numbers = #tpu.dot_dimension_numbers<[1], [0], [0], [1], [0, 0, 1, 1], [], []>} : vector<8x8xf32>, vector<8x32xf32>, vector<8x32xf32> -> vector<8x32xf32>
    %236 = vector.extract_strided_slice %201 {offsets = [0, 64], sizes = [8, 32], strides = [1, 1]} : vector<8x384xf32> to vector<8x32xf32>
    %237 = vector.extract_strided_slice %201 {offsets = [0, 192], sizes = [8, 32], strides = [1, 1]} : vector<8x384xf32> to vector<8x32xf32>
    %238 = vector.extract_strided_slice %201 {offsets = [0, 320], sizes = [8, 32], strides = [1, 1]} : vector<8x384xf32> to vector<8x32xf32>
    %cst_98 = arith.constant dense<0.000000e+00> : vector<8x8xf32>
    %239 = tpu.matmul %236, %237, %cst_98 {dimension_numbers = #tpu.dot_dimension_numbers<[1], [1], [0], [0], [0, 0, 1, 0], [], []>} : vector<8x32xf32>, vector<8x32xf32>, vector<8x8xf32> -> vector<8x8xf32>
    %cst_99 = arith.constant 0.176776692 : f32
    %240 = vector.broadcast %cst_99 : f32 to vector<8x8xf32>
    %241 = arith.mulf %239, %240 : vector<8x8xf32>
    %242 = arith.addf %241, %7 : vector<8x8xf32>
    %cst_100 = arith.constant dense<0xFF800000> : vector<8xf32>
    %243 = vector.multi_reduction <maximumf>, %242, %cst_100 [1] : vector<8x8xf32> to vector<8xf32>
    %244 = vector.shape_cast %243 : vector<8xf32> to vector<8x1xf32>
    %245 = vector.broadcast %244 : vector<8x1xf32> to vector<8x8xf32>
    %246 = arith.subf %242, %245 : vector<8x8xf32>
    %247 = math.exp %246 : vector<8x8xf32>
    %cst_101 = arith.constant dense<0.000000e+00> : vector<8xf32>
    %248 = vector.multi_reduction <add>, %247, %cst_101 [1] : vector<8x8xf32> to vector<8xf32>
    %249 = vector.shape_cast %248 : vector<8xf32> to vector<8x1xf32>
    %250 = vector.broadcast %249 : vector<8x1xf32> to vector<8x8xf32>
    %251 = arith.divf %247, %250 : vector<8x8xf32>
    %cst_102 = arith.constant dense<0.000000e+00> : vector<8x32xf32>
    %252 = tpu.matmul %251, %238, %cst_102 {dimension_numbers = #tpu.dot_dimension_numbers<[1], [0], [0], [1], [0, 0, 1, 1], [], []>} : vector<8x8xf32>, vector<8x32xf32>, vector<8x32xf32> -> vector<8x32xf32>
    %253 = vector.extract_strided_slice %201 {offsets = [0, 96], sizes = [8, 32], strides = [1, 1]} : vector<8x384xf32> to vector<8x32xf32>
    %254 = vector.extract_strided_slice %201 {offsets = [0, 224], sizes = [8, 32], strides = [1, 1]} : vector<8x384xf32> to vector<8x32xf32>
    %255 = vector.extract_strided_slice %201 {offsets = [0, 352], sizes = [8, 32], strides = [1, 1]} : vector<8x384xf32> to vector<8x32xf32>
    %cst_103 = arith.constant dense<0.000000e+00> : vector<8x8xf32>
    %256 = tpu.matmul %253, %254, %cst_103 {dimension_numbers = #tpu.dot_dimension_numbers<[1], [1], [0], [0], [0, 0, 1, 0], [], []>} : vector<8x32xf32>, vector<8x32xf32>, vector<8x8xf32> -> vector<8x8xf32>
    %cst_104 = arith.constant 0.176776692 : f32
    %257 = vector.broadcast %cst_104 : f32 to vector<8x8xf32>
    %258 = arith.mulf %256, %257 : vector<8x8xf32>
    %259 = arith.addf %258, %7 : vector<8x8xf32>
    %cst_105 = arith.constant dense<0xFF800000> : vector<8xf32>
    %260 = vector.multi_reduction <maximumf>, %259, %cst_105 [1] : vector<8x8xf32> to vector<8xf32>
    %261 = vector.shape_cast %260 : vector<8xf32> to vector<8x1xf32>
    %262 = vector.broadcast %261 : vector<8x1xf32> to vector<8x8xf32>
    %263 = arith.subf %259, %262 : vector<8x8xf32>
    %264 = math.exp %263 : vector<8x8xf32>
    %cst_106 = arith.constant dense<0.000000e+00> : vector<8xf32>
    %265 = vector.multi_reduction <add>, %264, %cst_106 [1] : vector<8x8xf32> to vector<8xf32>
    %266 = vector.shape_cast %265 : vector<8xf32> to vector<8x1xf32>
    %267 = vector.broadcast %266 : vector<8x1xf32> to vector<8x8xf32>
    %268 = arith.divf %264, %267 : vector<8x8xf32>
    %cst_107 = arith.constant dense<0.000000e+00> : vector<8x32xf32>
    %269 = tpu.matmul %268, %255, %cst_107 {dimension_numbers = #tpu.dot_dimension_numbers<[1], [0], [0], [1], [0, 0, 1, 1], [], []>} : vector<8x8xf32>, vector<8x32xf32>, vector<8x32xf32> -> vector<8x32xf32>
    %270 = tpu.concatenate %218, %235, %252, %269 in 1 : vector<8x32xf32>, vector<8x32xf32>, vector<8x32xf32>, vector<8x32xf32> -> vector<8x128xf32>
    %271 = arith.truncf %270 : vector<8x128xf32> to vector<8x128xbf16>
    %c1_108 = arith.constant 1 : index
    %c0_109 = arith.constant 0 : index
    %c0_110 = arith.constant 0 : index
    %272 = vector.load %arg5[%c1_108, %c0_109, %c0_110] : memref<2x128x128xbf16, #tpu.memory_space<vmem>>, vector<1x128x128xbf16>
    %273 = vector.shape_cast %272 : vector<1x128x128xbf16> to vector<128x128xbf16>
    %cst_111 = arith.constant dense<0.000000e+00> : vector<8x128xf32>
    %274 = tpu.matmul %271, %273, %cst_111 {dimension_numbers = #tpu.dot_dimension_numbers<[1], [0], [0], [1], [0, 0, 1, 1], [], []>} : vector<8x128xbf16>, vector<128x128xbf16>, vector<8x128xf32> -> vector<8x128xf32>
    %c1_112 = arith.constant 1 : index
    %c0_113 = arith.constant 0 : index
    %c0_114 = arith.constant 0 : index
    %275 = vector.load %arg6[%c1_112, %c0_113, %c0_114] : memref<2x1x128xf32, #tpu.memory_space<vmem>>, vector<1x1x128xf32>
    %276 = vector.shape_cast %275 : vector<1x1x128xf32> to vector<1x128xf32>
    %277 = vector.broadcast %276 : vector<1x128xf32> to vector<8x128xf32>
    %278 = arith.addf %274, %277 : vector<8x128xf32>
    %279 = arith.addf %171, %278 : vector<8x128xf32>
    %c1_115 = arith.constant 1 : index
    %c0_116 = arith.constant 0 : index
    %c0_117 = arith.constant 0 : index
    %280 = vector.load %arg7[%c1_115, %c0_116, %c0_117] : memref<2x1x128xf32, #tpu.memory_space<vmem>>, vector<1x1x128xf32>
    %281 = vector.shape_cast %280 : vector<1x1x128xf32> to vector<1x128xf32>
    %c1_118 = arith.constant 1 : index
    %c0_119 = arith.constant 0 : index
    %c0_120 = arith.constant 0 : index
    %282 = vector.load %arg8[%c1_118, %c0_119, %c0_120] : memref<2x1x128xf32, #tpu.memory_space<vmem>>, vector<1x1x128xf32>
    %283 = vector.shape_cast %282 : vector<1x1x128xf32> to vector<1x128xf32>
    %cst_121 = arith.constant dense<0.000000e+00> : vector<8xf32>
    %284 = vector.multi_reduction <add>, %279, %cst_121 [1] : vector<8x128xf32> to vector<8xf32>
    %285 = vector.shape_cast %284 : vector<8xf32> to vector<8x1xf32>
    %cst_122 = arith.constant 1.280000e+02 : f32
    %286 = vector.broadcast %cst_122 : f32 to vector<8x1xf32>
    %287 = arith.divf %285, %286 : vector<8x1xf32>
    %288 = vector.broadcast %287 : vector<8x1xf32> to vector<8x128xf32>
    %289 = arith.subf %279, %288 : vector<8x128xf32>
    %290 = arith.mulf %289, %289 : vector<8x128xf32>
    %cst_123 = arith.constant dense<0.000000e+00> : vector<8xf32>
    %291 = vector.multi_reduction <add>, %290, %cst_123 [1] : vector<8x128xf32> to vector<8xf32>
    %292 = vector.shape_cast %291 : vector<8xf32> to vector<8x1xf32>
    %cst_124 = arith.constant 0.00787401571 : f32
    %293 = vector.broadcast %cst_124 : f32 to vector<8x1xf32>
    %294 = arith.mulf %292, %293 : vector<8x1xf32>
    %295 = vector.broadcast %287 : vector<8x1xf32> to vector<8x128xf32>
    %296 = arith.subf %279, %295 : vector<8x128xf32>
    %cst_125 = arith.constant 9.99999974E-6 : f32
    %297 = vector.broadcast %cst_125 : f32 to vector<8x1xf32>
    %298 = arith.addf %294, %297 : vector<8x1xf32>
    %299 = math.rsqrt %298 : vector<8x1xf32>
    %300 = vector.broadcast %299 : vector<8x1xf32> to vector<8x128xf32>
    %301 = arith.mulf %296, %300 : vector<8x128xf32>
    %302 = vector.broadcast %281 : vector<1x128xf32> to vector<8x128xf32>
    %303 = arith.mulf %302, %301 : vector<8x128xf32>
    %304 = vector.broadcast %283 : vector<1x128xf32> to vector<8x128xf32>
    %305 = arith.addf %303, %304 : vector<8x128xf32>
    %306 = arith.truncf %305 : vector<8x128xf32> to vector<8x128xbf16>
    %c1_126 = arith.constant 1 : index
    %c0_127 = arith.constant 0 : index
    %c0_128 = arith.constant 0 : index
    %307 = vector.load %arg9[%c1_126, %c0_127, %c0_128] : memref<2x128x512xbf16, #tpu.memory_space<vmem>>, vector<1x128x512xbf16>
    %308 = vector.shape_cast %307 : vector<1x128x512xbf16> to vector<128x512xbf16>
    %cst_129 = arith.constant dense<0.000000e+00> : vector<8x512xf32>
    %309 = tpu.matmul %306, %308, %cst_129 {dimension_numbers = #tpu.dot_dimension_numbers<[1], [0], [0], [1], [0, 0, 1, 1], [], []>} : vector<8x128xbf16>, vector<128x512xbf16>, vector<8x512xf32> -> vector<8x512xf32>
    %c1_130 = arith.constant 1 : index
    %c0_131 = arith.constant 0 : index
    %c0_132 = arith.constant 0 : index
    %310 = vector.load %arg10[%c1_130, %c0_131, %c0_132] : memref<2x1x512xf32, #tpu.memory_space<vmem>>, vector<1x1x512xf32>
    %311 = vector.shape_cast %310 : vector<1x1x512xf32> to vector<1x512xf32>
    %312 = vector.broadcast %311 : vector<1x512xf32> to vector<8x512xf32>
    %313 = arith.addf %309, %312 : vector<8x512xf32>
    %cst_133 = arith.constant 5.000000e-01 : f32
    %314 = vector.broadcast %cst_133 : f32 to vector<8x512xf32>
    %315 = arith.mulf %314, %313 : vector<8x512xf32>
    %cst_134 = arith.constant 4.471500e-01 : f32
    %316 = vector.broadcast %cst_134 : f32 to vector<8x512xf32>
    %317 = arith.mulf %316, %313 : vector<8x512xf32>
    %318 = arith.mulf %317, %313 : vector<8x512xf32>
    %319 = arith.mulf %318, %313 : vector<8x512xf32>
    %320 = arith.addf %313, %319 : vector<8x512xf32>
    %cst_135 = arith.constant 0.797884583 : f32
    %321 = vector.broadcast %cst_135 : f32 to vector<8x512xf32>
    %322 = arith.mulf %321, %320 : vector<8x512xf32>
    %323 = math.tanh %322 : vector<8x512xf32>
    %cst_136 = arith.constant 1.000000e+00 : f32
    %324 = vector.broadcast %cst_136 : f32 to vector<8x512xf32>
    %325 = arith.addf %324, %323 : vector<8x512xf32>
    %326 = arith.mulf %315, %325 : vector<8x512xf32>
    %327 = arith.truncf %326 : vector<8x512xf32> to vector<8x512xbf16>
    %c1_137 = arith.constant 1 : index
    %c0_138 = arith.constant 0 : index
    %c0_139 = arith.constant 0 : index
    %328 = vector.load %arg11[%c1_137, %c0_138, %c0_139] : memref<2x512x128xbf16, #tpu.memory_space<vmem>>, vector<1x512x128xbf16>
    %329 = vector.shape_cast %328 : vector<1x512x128xbf16> to vector<512x128xbf16>
    %cst_140 = arith.constant dense<0.000000e+00> : vector<8x128xf32>
    %330 = tpu.matmul %327, %329, %cst_140 {dimension_numbers = #tpu.dot_dimension_numbers<[1], [0], [0], [1], [0, 0, 1, 1], [], []>} : vector<8x512xbf16>, vector<512x128xbf16>, vector<8x128xf32> -> vector<8x128xf32>
    %c1_141 = arith.constant 1 : index
    %c0_142 = arith.constant 0 : index
    %c0_143 = arith.constant 0 : index
    %331 = vector.load %arg12[%c1_141, %c0_142, %c0_143] : memref<2x1x128xf32, #tpu.memory_space<vmem>>, vector<1x1x128xf32>
    %332 = vector.shape_cast %331 : vector<1x1x128xf32> to vector<1x128xf32>
    %333 = vector.broadcast %332 : vector<1x128xf32> to vector<8x128xf32>
    %334 = arith.addf %330, %333 : vector<8x128xf32>
    %335 = arith.addf %279, %334 : vector<8x128xf32>
    %c0_144 = arith.constant 0 : index
    %c0_145 = arith.constant 0 : index
    %336 = vector.load %arg13[%c0_144, %c0_145] : memref<1x128xf32, #tpu.memory_space<vmem>>, vector<1x128xf32>
    %c0_146 = arith.constant 0 : index
    %c0_147 = arith.constant 0 : index
    %337 = vector.load %arg14[%c0_146, %c0_147] : memref<1x128xf32, #tpu.memory_space<vmem>>, vector<1x128xf32>
    %cst_148 = arith.constant dense<0.000000e+00> : vector<8xf32>
    %338 = vector.multi_reduction <add>, %335, %cst_148 [1] : vector<8x128xf32> to vector<8xf32>
    %339 = vector.shape_cast %338 : vector<8xf32> to vector<8x1xf32>
    %cst_149 = arith.constant 1.280000e+02 : f32
    %340 = vector.broadcast %cst_149 : f32 to vector<8x1xf32>
    %341 = arith.divf %339, %340 : vector<8x1xf32>
    %342 = vector.broadcast %341 : vector<8x1xf32> to vector<8x128xf32>
    %343 = arith.subf %335, %342 : vector<8x128xf32>
    %344 = arith.mulf %343, %343 : vector<8x128xf32>
    %cst_150 = arith.constant dense<0.000000e+00> : vector<8xf32>
    %345 = vector.multi_reduction <add>, %344, %cst_150 [1] : vector<8x128xf32> to vector<8xf32>
    %346 = vector.shape_cast %345 : vector<8xf32> to vector<8x1xf32>
    %cst_151 = arith.constant 0.00787401571 : f32
    %347 = vector.broadcast %cst_151 : f32 to vector<8x1xf32>
    %348 = arith.mulf %346, %347 : vector<8x1xf32>
    %349 = vector.broadcast %341 : vector<8x1xf32> to vector<8x128xf32>
    %350 = arith.subf %335, %349 : vector<8x128xf32>
    %cst_152 = arith.constant 9.99999974E-6 : f32
    %351 = vector.broadcast %cst_152 : f32 to vector<8x1xf32>
    %352 = arith.addf %348, %351 : vector<8x1xf32>
    %353 = math.rsqrt %352 : vector<8x1xf32>
    %354 = vector.broadcast %353 : vector<8x1xf32> to vector<8x128xf32>
    %355 = arith.mulf %350, %354 : vector<8x128xf32>
    %356 = vector.broadcast %336 : vector<1x128xf32> to vector<8x128xf32>
    %357 = arith.mulf %356, %355 : vector<8x128xf32>
    %358 = vector.broadcast %337 : vector<1x128xf32> to vector<8x128xf32>
    %359 = arith.addf %357, %358 : vector<8x128xf32>
    %360 = arith.truncf %359 : vector<8x128xf32> to vector<8x128xbf16>
    %c0_153 = arith.constant 0 : index
    %c0_154 = arith.constant 0 : index
    %361 = vector.load %arg15[%c0_153, %c0_154] : memref<128x128xbf16, #tpu.memory_space<vmem>>, vector<128x128xbf16>
    %cst_155 = arith.constant dense<0.000000e+00> : vector<8x128xf32>
    %362 = tpu.matmul %360, %361, %cst_155 {dimension_numbers = #tpu.dot_dimension_numbers<[1], [0], [0], [1], [0, 0, 1, 1], [], []>} : vector<8x128xbf16>, vector<128x128xbf16>, vector<8x128xf32> -> vector<8x128xf32>
    %c0_156 = arith.constant 0 : index
    %c0_157 = arith.constant 0 : index
    %c0_158 = arith.constant 0 : index
    %363 = vector.load %arg16[%c0_156, %c0_157, %c0_158] : memref<1x8x128xf32, #tpu.memory_space<vmem>>, vector<1x8x128xf32>
    %364 = vector.shape_cast %363 : vector<1x8x128xf32> to vector<8x128xf32>
    %365 = vector.shape_cast %362 : vector<8x128xf32> to vector<1x8x128xf32>
    tpu.vector_store %arg16[%c0_156, %c0_157, %c0_158], %365 {strides = array<i32>} : memref<1x8x128xf32, #tpu.memory_space<vmem>>, vector<1x8x128xf32>,
    return
  }
  func.func @transform_0(%arg0: i32) -> (i32, i32, i32) {
    %c0_i32 = arith.constant 0 : i32
    %c0_i32_0 = arith.constant 0 : i32
    %c0_i32_1 = arith.constant 0 : i32
    return %arg0, %c0_i32, %c0_i32_0 : i32, i32, i32
  }
  func.func @transform_1(%arg0: i32) -> (i32, i32, i32) {
    %c0_i32 = arith.constant 0 : i32
    %c0_i32_0 = arith.constant 0 : i32
    %c0_i32_1 = arith.constant 0 : i32
    %c0_i32_2 = arith.constant 0 : i32
    return %c0_i32, %c0_i32_0, %c0_i32_1 : i32, i32, i32
  }
  func.func @transform_2(%arg0: i32) -> (i32, i32, i32) {
    %c0_i32 = arith.constant 0 : i32
    %c0_i32_0 = arith.constant 0 : i32
    %c0_i32_1 = arith.constant 0 : i32
    %c0_i32_2 = arith.constant 0 : i32
    return %c0_i32, %c0_i32_0, %c0_i32_1 : i32, i32, i32
  }
  func.func @transform_3(%arg0: i32) -> (i32, i32, i32) {
    %c0_i32 = arith.constant 0 : i32
    %c0_i32_0 = arith.constant 0 : i32
    %c0_i32_1 = arith.constant 0 : i32
    %c0_i32_2 = arith.constant 0 : i32
    return %c0_i32, %c0_i32_0, %c0_i32_1 : i32, i32, i32
  }
  func.func @transform_4(%arg0: i32) -> (i32, i32, i32) {
    %c0_i32 = arith.constant 0 : i32
    %c0_i32_0 = arith.constant 0 : i32
    %c0_i32_1 = arith.constant 0 : i32
    %c0_i32_2 = arith.constant 0 : i32
    return %c0_i32, %c0_i32_0, %c0_i32_1 : i32, i32, i32
  }
  func.func @transform_5(%arg0: i32) -> (i32, i32, i32) {
    %c0_i32 = arith.constant 0 : i32
    %c0_i32_0 = arith.constant 0 : i32
    %c0_i32_1 = arith.constant 0 : i32
    %c0_i32_2 = arith.constant 0 : i32
    return %c0_i32, %c0_i32_0, %c0_i32_1 : i32, i32, i32
  }
  func.func @transform_6(%arg0: i32) -> (i32, i32, i32) {
    %c0_i32 = arith.constant 0 : i32
    %c0_i32_0 = arith.constant 0 : i32
    %c0_i32_1 = arith.constant 0 : i32
    %c0_i32_2 = arith.constant 0 : i32
    return %c0_i32, %c0_i32_0, %c0_i32_1 : i32, i32, i32
  }
  func.func @transform_7(%arg0: i32) -> (i32, i32, i32) {
    %c0_i32 = arith.constant 0 : i32
    %c0_i32_0 = arith.constant 0 : i32
    %c0_i32_1 = arith.constant 0 : i32
    %c0_i32_2 = arith.constant 0 : i32
    return %c0_i32, %c0_i32_0, %c0_i32_1 : i32, i32, i32
  }
  func.func @transform_8(%arg0: i32) -> (i32, i32, i32) {
    %c0_i32 = arith.constant 0 : i32
    %c0_i32_0 = arith.constant 0 : i32
    %c0_i32_1 = arith.constant 0 : i32
    %c0_i32_2 = arith.constant 0 : i32
    return %c0_i32, %c0_i32_0, %c0_i32_1 : i32, i32, i32
  }
  func.func @transform_9(%arg0: i32) -> (i32, i32, i32) {
    %c0_i32 = arith.constant 0 : i32
    %c0_i32_0 = arith.constant 0 : i32
    %c0_i32_1 = arith.constant 0 : i32
    %c0_i32_2 = arith.constant 0 : i32
    return %c0_i32, %c0_i32_0, %c0_i32_1 : i32, i32, i32
  }
  func.func @transform_10(%arg0: i32) -> (i32, i32, i32) {
    %c0_i32 = arith.constant 0 : i32
    %c0_i32_0 = arith.constant 0 : i32
    %c0_i32_1 = arith.constant 0 : i32
    %c0_i32_2 = arith.constant 0 : i32
    return %c0_i32, %c0_i32_0, %c0_i32_1 : i32, i32, i32
  }
  func.func @transform_11(%arg0: i32) -> (i32, i32, i32) {
    %c0_i32 = arith.constant 0 : i32
    %c0_i32_0 = arith.constant 0 : i32
    %c0_i32_1 = arith.constant 0 : i32
    %c0_i32_2 = arith.constant 0 : i32
    return %c0_i32, %c0_i32_0, %c0_i32_1 : i32, i32, i32
  }
  func.func @transform_12(%arg0: i32) -> (i32, i32) {
    %c0_i32 = arith.constant 0 : i32
    %c0_i32_0 = arith.constant 0 : i32
    %c0_i32_1 = arith.constant 0 : i32
    return %c0_i32, %c0_i32_0 : i32, i32
  }
  func.func @transform_13(%arg0: i32) -> (i32, i32) {
    %c0_i32 = arith.constant 0 : i32
    %c0_i32_0 = arith.constant 0 : i32
    %c0_i32_1 = arith.constant 0 : i32
    return %c0_i32, %c0_i32_0 : i32, i32
  }
  func.func @transform_14(%arg0: i32) -> (i32, i32) {
    %c0_i32 = arith.constant 0 : i32
    %c0_i32_0 = arith.constant 0 : i32
    %c0_i32_1 = arith.constant 0 : i32
    return %c0_i32, %c0_i32_0 : i32, i32
  }
  func.func @transform_15(%arg0: i32) -> (i32, i32, i32) {
    %c0_i32 = arith.constant 0 : i32
    %c0_i32_0 = arith.constant 0 : i32
    %c0_i32_1 = arith.constant 0 : i32
    return %arg0, %c0_i32, %c0_i32_0 : i32, i32, i32
  }
}

</mosaic_0001>

<bundles_post_ra>
// kernel: tpu_custom_call.1
= control target key start
LH: loop header
LB: loop body
LE: loop exit
PB: predicated region body
PF: predicated region fallthrough
CT: control target
= control target key end

     0   :  { %s5778_s0 = inlined_call_operand.hbm [shape: f32[2,8,128], index: 0, kind: input, shape index: {}]   ;;  %s5779_s1 = inlined_call_operand.hbm [shape: f32[2,1,128], index: 1, kind: input, shape index: {}]   ;;  %s5780_s2 = inlined_call_operand.hbm [shape: f32[2,1,128], index: 2, kind: input, shape index: {}]   ;;  %s5781_s3 = inlined_call_operand.hbm [shape: bf16[2,128,384], index: 3, kind: input, shape index: {}]   ;;  %s5782_s4 = inlined_call_operand.hbm [shape: bf16[2,128,128], index: 4, kind: input, shape index: {}]   ;;  %s5783_s5 = inlined_call_operand.hbm [shape: f32[2,1,128], index: 5, kind: input, shape index: {}]   ;;  %s5784_s6 = inlined_call_operand.hbm [shape: f32[2,1,128], index: 6, kind: input, shape index: {}]   ;;  %s5785_s7 = inlined_call_operand.hbm [shape: f32[2,1,128], index: 7, kind: input, shape index: {}]   ;;  %s5786_s8 = inlined_call_operand.hbm [shape: bf16[2,128,512], index: 8, kind: input, shape index: {}]   ;;  %s5787_s9 = inlined_call_operand.vmem [shape: f32[2,1,512], index: 9, kind: input, shape index: {}]   ;;  %s5788_s10 = inlined_call_operand.hbm [shape: bf16[2,512,128], index: 10, kind: input, shape index: {}]   ;;  %s5789_s11 = inlined_call_operand.vmem [shape: f32[2,1,128], index: 11, kind: input, shape index: {}]   ;;  %s5790_s12 = inlined_call_operand.vmem [shape: f32[1,128], index: 12, kind: input, shape index: {}]   ;;  %s5791_s13 = inlined_call_operand.vmem [shape: f32[1,128], index: 13, kind: input, shape index: {}]   ;;  %s5792_s14 = inlined_call_operand.hbm [shape: bf16[128,128], index: 14, kind: input, shape index: {}]   ;;  %s5793_s15 = inlined_call_operand.hbm [shape: f32[2,8,128], index: 15, kind: output, shape index: {}]  }
   0x1   :  { %5799 = sst [smem:[#allocation29_spill]] %s5778_s0 }
   0x2   :  { %5800 = sst [smem:[#allocation30_spill]] %s5779_s1 }
   0x3   :  { %5801 = sst [smem:[#allocation31_spill]] %s5780_s2 }
   0x4   :  { %5802 = sst [smem:[#allocation32_spill]] %s5781_s3 }
   0x5   :  { %5803 = sst [smem:[#allocation33_spill]] %s5782_s4 }
   0x6   :  { %5804 = sst [smem:[#allocation34_spill]] %s5787_s9 }
   0x7   :  { %5805 = sst [smem:[#allocation35_spill]] %s5789_s11 }
   0x8   :  { %5806 = sst [smem:[#allocation36_spill]] %s5790_s12 }
   0x9   :  { %5807 = sst [smem:[#allocation37_spill]] %s5791_s13 }
   0xa   :  { %5808 = sst [smem:[#allocation38_spill]] %s5793_s15 }
   0xb   :  { %20 = vsyncpa [#allocation3], 0 }
   0xc   :  { %22 = vsyncpa [#allocation3 + $0x1], 0 }
   0xd   :  { %23 = vsyncpa [#allocation6], 0 }
   0xe   :  { %24 = vsyncpa [#allocation9], 0 }
   0xf   :  { %25 = vsyncpa [#allocation12], 0 }
  0x10   :  { %26 = vsyncpa [#allocation15], 0 }
  0x11   :  { %27 = vsyncpa [#allocation18], 0 }
  0x12   :  { %28 = vsyncpa [#allocation4], 0 }
  0x13   :  { %30 = vsyncpa [#allocation4 + $0x1], 0  ;;  %s5371_s18 = smov 0   ;;  %s5373_s19 = smov 0  }
  0x14   :  { %s5375_s20 = smov 0   ;;  %s5377_s21 = smov 0  }
  0x15 LB: > { %s5809_s1 = sld [smem:[#allocation30_spill]]  ;;  %s5395_s25 = sadd.s32 4294967295, %s5267_s21   ;;  %s5267_s21 = sphi %s5377_s21, %s5832_s21   ;;  %s5263_s20 = sphi %s5375_s20, %s5831_s20   ;;  %s5259_s19 = sphi %s5373_s19, %s5830_s19   ;;  %s5255_s18 = sphi %s5371_s18, %s5829_s18  }
  0x16   : > { %p3561_p0 = scmp.ge.s32.totalorder %s5267_s21, 1  ;;  %p57_p1 = scmp.eq.s32.totalorder %s5395_s25, 0 }
  0x17   : > { %p387_p2 = scmp.lt.s32.totalorder %s5267_s21, 3  ;;  %s5269_s27 = smov [#allocation5]  }
  0x18   : > { %s400_s28 = sshll.u32 %s5269_s27, 4  ;;  %s5812_s3 = sld [smem:[#allocation32_spill]]  ;;  %s401_s28 = int_to_ptr.vmem [resolvable:$true] %s400_s28 }
  0x19   : > { %p5400_p3 = pnand %p3561_p0, %p387_p2  ;;  %s5270_s22 = smov [#allocation8]  }
  0x1a   : > { %s428_s23 = sshll.u32 %s5270_s22, 4  ;;  %s5271_s27 = smov 16   ;;  %s429_s23 = int_to_ptr.vmem [resolvable:$true] %s428_s23 }
  0x1b   : > { %s398_s24 = sshll.u32 %s5809_s1, 4  ;;  %p4662_p4 = pneg %p5400_p3  ;;  %s399_s24 = int_to_ptr.hbm [resolvable:$true] %s398_s24 }
  0x1c   : > { %s5810_s26 = scalar_select %p5400_p3, 1, 0 }
  0x1d   : > { %p5412_p6 = pnand %p4662_p4, %p57_p1  ;;  %s5272_s1 = smov 1  }
  0x1e   : > { %5811 = sst [smem:[#allocation28_spill]] %s5810_s26  ;;  %s426_s16 = sshll.u32 %s5812_s3, 4  ;;  %s427_s16 = int_to_ptr.hbm [resolvable:$true] %s426_s16 }
  0x1f   : > { %4665 = dma.hbm_to_vmem [thread:$0]  (!%p5412_p6), %s399_s24, 32, %s401_s28, [#allocation6], %s5271_s27, %s5271_s27, %s5272_s1  }
  0x20   : > { %s5273_s29 = smov 192   ;;  %s5274_s30 = smov 12  }
  0x21   : > { %4671 = dma.hbm_to_vmem [thread:$0]  (!%p5412_p6), %s427_s16, 6144, %s429_s23, [#allocation9], %s5273_s29, %s5273_s29, %s5274_s30  }
  0x22   : > { %s454_s13 = sshll.u32 %s5783_s5, 4  ;;  %s5275_s12 = smov [#allocation11]   ;;  %s455_s13 = int_to_ptr.hbm [resolvable:$true] %s454_s13 }
  0x23   : > { %s456_s22 = sshll.u32 %s5275_s12, 4  ;;  %s482_s26 = sshll.u32 %s5785_s7, 4  ;;  %s457_s22 = int_to_ptr.vmem [resolvable:$true] %s456_s22  ;;  %s483_s26 = int_to_ptr.hbm [resolvable:$true] %s482_s26 }
  0x24   : > { %4677 = dma.hbm_to_vmem [thread:$0]  (!%p5412_p6), %s455_s13, 32, %s457_s22, [#allocation12], %s5271_s27, %s5271_s27, %s5272_s1  }
  0x25   : > { %s5276_s24 = smov [#allocation14]   ;;  %s513_s9 = sshll.u32 %s5788_s10, 4  ;;  %s514_s9 = int_to_ptr.hbm [resolvable:$true] %s513_s9 }
  0x26   : > { %s484_s28 = sshll.u32 %s5276_s24, 4  ;;  %s5277_s11 = smov [#allocation17]   ;;  %s485_s28 = int_to_ptr.vmem [resolvable:$true] %s484_s28 }
  0x27   : > { %4683 = dma.hbm_to_vmem [thread:$0]  (!%p5412_p6), %s483_s26, 32, %s485_s28, [#allocation15], %s5271_s27, %s5271_s27, %s5272_s1  }
  0x28   : > { %s515_s15 = sshll.u32 %s5277_s11, 4  ;;  %s5814_s2 = sld [smem:[#allocation31_spill]]  ;;  %s516_s15 = int_to_ptr.vmem [resolvable:$true] %s515_s15 }
  0x29   : > { %s5278_s29 = smov 64   ;;  %s5279_s30 = smov 4  }
  0x2a   : > { %4689 = dma.hbm_to_vmem [thread:$0]  (!%p5412_p6), %s514_s9, 8192, %s516_s15, [#allocation18], %s5278_s29, %s5278_s29, %s5279_s30  }
  0x2b   : > { %s5280_s26 = smov [#allocation7]   ;;  %s5815_s4 = sld [smem:[#allocation33_spill]] }
  0x2c   : > { %s414_s22 = sshll.u32 %s5280_s26, 4  ;;  %s468_s16 = sshll.u32 %s5784_s6, 4  ;;  %s415_s22 = int_to_ptr.vmem [resolvable:$true] %s414_s22  ;;  %s469_s16 = int_to_ptr.hbm [resolvable:$true] %s468_s16 }
  0x2d   : > { %s5281_s9 = smov [#allocation10]   ;;  %s5282_s13 = smov [#allocation13]  }
  0x2e   : > { %s412_s23 = sshll.u32 %s5814_s2, 4  ;;  %s442_s15 = sshll.u32 %s5281_s9, 4  ;;  %s413_s23 = int_to_ptr.hbm [resolvable:$true] %s412_s23  ;;  %s443_s15 = int_to_ptr.vmem [resolvable:$true] %s442_s15 }
  0x2f   : > { %4668 = dma.hbm_to_vmem [thread:$0]  (!%p5412_p6), %s413_s23, 32, %s415_s22, [#allocation6], %s5271_s27, %s5271_s27, %s5272_s1  }
  0x30   : > { %s470_s26 = sshll.u32 %s5282_s13, 4  ;;  %s496_s23 = sshll.u32 %s5786_s8, 4  ;;  %s471_s26 = int_to_ptr.vmem [resolvable:$true] %s470_s26  ;;  %s497_s23 = int_to_ptr.hbm [resolvable:$true] %s496_s23 }
  0x31   : > { %s440_s3 = sshll.u32 %s5815_s4, 4  ;;  %s5283_s22 = smov [#allocation16]   ;;  %s441_s3 = int_to_ptr.hbm [resolvable:$true] %s440_s3 }
  0x32   : > { %4674 = dma.hbm_to_vmem [thread:$0]  (!%p5412_p6), %s441_s3, 2048, %s443_s15, [#allocation9], %s5278_s29, %s5278_s29, %s5279_s30  }
  0x33   : > { %4680 = dma.hbm_to_vmem [thread:$0]  (!%p5412_p6), %s469_s16, 32, %s471_s26, [#allocation12], %s5271_s27, %s5271_s27, %s5272_s1  }
  0x34   : > { %s498_s3 = sshll.u32 %s5283_s22, 4  ;;  %s536_s9 = sshll.u32 %s5792_s14, 4  ;;  %s499_s3 = int_to_ptr.vmem [resolvable:$true] %s498_s3  ;;  %s537_s9 = int_to_ptr.hbm [resolvable:$true] %s536_s9 }
  0x35   : > { %s5284_s15 = smov 256   ;;  %s5285_s1 = smov [#allocation19]  }
  0x36   : > { %4686 = dma.hbm_to_vmem [thread:$0]  (!%p5412_p6), %s497_s23, 8192, %s499_s3, [#allocation15], %s5284_s15, %s5284_s15, %s5271_s27  }
  0x37   : > { %s538_s16 = sshll.u32 %s5285_s1, 4  ;;  %s3560_s13 = sadd.s32 4294967294, %s5267_s21   ;;  %s539_s16 = int_to_ptr.vmem [resolvable:$true] %s538_s16 }
  0x38   : > { %4692 = dma.hbm_to_vmem [thread:$0]  (!%p5412_p6), %s537_s9, 1024, %s539_s16, [#allocation18], %s5278_s29, %s5278_s29, %s5279_s30  }
  0x39   : > { %s5487_s26 = sadd.s32 1, %s5267_s21   ;;  %s43_s24 = sadd.s32 1, %s5263_s20 }
  0x3a   : > { %s40_s28 = ssub.s32 %s5267_s21, %s5487_s26  ;;  %p50_p7 = scmp.ne.s32.totalorder %s5263_s20, %s5259_s19 }
  0x3b   : > { %p41_p8 = scmp.eq.s32.totalorder %s40_s28, 0  ;;  %p51_p9 = scmp.eq.s32.totalorder %s5267_s21, 0 }
  0x3c   : > { %p56_p10 = scmp.ne.s32.totalorder %s5259_s19, %s5255_s18  ;;  %p374_p11 = scmp.eq.s32.totalorder %s5395_s25, 1 }
  0x3d   : > { %s5499_s27 = scalar_select %p41_p8, %s5263_s20, %s43_s24  }
  0x3e   : > { %p5503_p12 = por %p57_p1, %p56_p10  ;;  %p5507_p13 = por %p374_p11, %p50_p7 }
  0x3f   : > { %p380_p0 = scmp.eq.s32.totalorder %s3560_s13, 1  ;;  %p52_p2 = por %p51_p9, %p50_p7 }
  0x40   : > { %s552_s30 = sand.u32 1, %s5263_s20   ;;  %p4711_p6 = scmp.lt.s32.totalorder %s5267_s21, 2 }
  0x41   : > { %p5512_p4 = por %p380_p0, %p56_p10  ;;  %s3573_s22 = sshll.u32 %s552_s30, 3 }
  0x42   : > { %s3574_s3 = sshll.u32 %s5267_s21, 3  ;;  %s5819_s0 = sld [smem:[#allocation29_spill]] }
  0x43   : > { %s556_s1 = scalar_lea.vmem [#allocation2], %s3573_s22  ;;  %p5521_p8 = pnand %p4711_p6, %p52_p2 }
  0x44   : > { %s564_s16 = sshll.u32 %s556_s1, 4  ;;  %s553_s24 = scalar_lea.sflag [#allocation3], %s552_s30  ;;  %s565_s16 = int_to_ptr.vmem [resolvable:$true] %s564_s16 }
  0x45   : > { %p5155_p9 = pneg %p5521_p8 }
  0x48   : > { %s560_s9 = scalar_lea.hbm %s5819_s0, %s3574_s3  ;;  %s5158_s22 = scalar_lea.hbm %s5819_s0, 16 }
  0x49   : > { %s562_s15 = sshll.u32 %s560_s9, 4  ;;  %s563_s15 = int_to_ptr.hbm [resolvable:$true] %s562_s15 }
  0x4a   : > { %s5151_s28 = sshra.s32 %s563_s15, 4  ;;  %s5152_s28 = int_to_ptr.hbm [resolvable:$true] %s5151_s28 }
  0x4b   : > { %s5153_s2 = scalar_lea.hbm %s5152_s28, 8  ;;  %p5159_p0 = scmp.lt.s32.totalorder %s5152_s28, %s5819_s0 }
  0x4c   : > { %p5154_p7 = scmp.ne.s32.totalorder %s5152_s28, %s5153_s2  ;;  %p5160_p2 = scmp.lt.s32.totalorder %s5158_s22, %s5153_s2 }
  0x4e   : > { %p5156_p10 = pnand %p5155_p9, %p5154_p7  ;;  %p5161_p6 = por %p5160_p2, %p5159_p0 }
  0x50   : > { %p5157_p11 = pneg %p5156_p10 }
  0x52   : > { %p5162_p5 = pnand %p5161_p6, %p5157_p11 }
  0x54   : > { %5165 = shalt.err (!%p5162_p5)
}
  0x55   : > { %4696 = dma.hbm_to_vmem [thread:$0]  (!%p5521_p8), %s563_s15, 128, %s565_s16, %s553_s24  }
  0x56   : > { %573 = sbr.rel (%p5400_p3) target bundleno = 5230 (0x146e), region = 80  ;;  %s5538_s1 = sand.u32 (!%p5400_p3), 1, %s5259_s19  }
  0x57   : > { %s5798_s3 = sshll.u32 (!%p5400_p3), %s5538_s1, 3  ;;  %s576_s12 = scalar_lea.sflag (!%p5400_p3), [#allocation3], %s5538_s1 }
  0x58   : > { %s579_s2 = scalar_lea.vmem (!%p5400_p3), [#allocation2], %s5798_s3 }
  0x5b   : > { %5226 = dma.done.wait (%p5503_p12), %s576_s12, 128  }
  0x5c   : > { %5228 = vsyncadd (%p5503_p12), %s576_s12, 4294967168 }
  0x5d   : > { %5230 = dma.done.wait (%p57_p1), [#allocation6], 64  }
  0x5e   : > { %5232 = vsyncadd (%p57_p1), [#allocation6], 4294967232 }
  0x5f   : > { %5234 = dma.done.wait (%p57_p1), [#allocation9], 8192  }
  0x60   : > { %5236 = vsyncadd (%p57_p1), [#allocation9], 4294959104 }
  0x61   : > { %5238 = dma.done.wait (%p57_p1), [#allocation12], 64  }
  0x62   : > { %5240 = vsyncadd (%p57_p1), [#allocation12], 4294967232 }
  0x63   : > { %5242 = dma.done.wait (%p57_p1), [#allocation15], 8224  }
  0x64   : > { %5244 = vsyncadd (%p57_p1), [#allocation15], 4294959072 }
  0x65   : > { %5246 = dma.done.wait (%p57_p1), [#allocation18], 9216  }
  0x66   : > { %5248 = vsyncadd (%p57_p1), [#allocation18], 4294958080  ;;  %v5568_v0 = vld [vmem:[%s579_s2] sm:$0xff]  ;;  %v5286_v1 = vmov 128.0   ;;  %v3674_v2 = vld [vmem:[#allocation8 + $0xa8] sm:$0xf] }
  0x67   : > { %686 = vadd.xlane.f32.xlu0 %v5568_v0  ;;  %4791 = vrcp.f32 %v5286_v1  ;;  %v4440_v3 = vld [vmem:[#allocation8 + $0xb0] sm:$0xf0]  ;;  %v4439_v4 = vld [vmem:[#allocation8 + $0xac] sm:$0xf]  ;;  %v3676_v6 = vld [vmem:[#allocation8 + $0xb4] sm:$0xf0] }
  0x68   : > { %v3675_v5 = vor.u32 %v4440_v3, %v3674_v2  ;;  %v3682_v7 = vld [vmem:[#allocation8 + $0xb0] sm:$0xf]  ;;  %v4441_v8 = vld [vmem:[#allocation8 + $0xb8] sm:$0xf0]  ;;  %v3679_v9 = vor.u32 %v4439_v4, %v3676_v6  ;;  %v4436_v23 = vld [vmem:[#allocation8 + $0x94] sm:$0xf] }
  0x69   : > { %v3683_v10 = vor.u32 %v4441_v8, %v3682_v7  ;;  %v3662_v21 = vld [vmem:[#allocation8 + $0x90] sm:$0xf]  ;;  %v4437_v22 = vld [vmem:[#allocation8 + $0x98] sm:$0xf0]  ;;  %v3664_v25 = vld [vmem:[#allocation8 + $0x9c] sm:$0xf0] }
  0x6a   : > { %882 = vmatpush.bf16.msra.mxu0 %v3675_v5  ;;  %895 = vmatpush.bf16.msra.mxu1 %v3679_v9  ;;  %v3663_v24 = vor.u32 %v4437_v22, %v3662_v21  ;;  %v3670_v26 = vld [vmem:[#allocation8 + $0x98] sm:$0xf]  ;;  %v4438_v27 = vld [vmem:[#allocation8 + $0xa0] sm:$0xf0]  ;;  %v3667_v28 = vor.u32 %v4436_v23, %v3664_v25  ;;  %v4433_v32 = vld [vmem:[#allocation8 + $0x7c] sm:$0xf] }
  0x6b   : > { %908 = vmatpush.bf16.msra.mxu2 %v3683_v10  ;;  %v3671_v29 = vor.u32 %v4438_v27, %v3670_v26  ;;  %v3650_v30 = vld [vmem:[#allocation8 + $0x78] sm:$0xf]  ;;  %v4434_v31 = vld [vmem:[#allocation8 + $0x80] sm:$0xf0]  ;;  %v3652_v34 = vld [vmem:[#allocation8 + $0x84] sm:$0xf0] }
  0x6c   : > { %v3651_v33 = vor.u32 %v4434_v31, %v3650_v30  ;;  %v3658_v35 = vld [vmem:[#allocation8 + $0x80] sm:$0xf]  ;;  %v4435_v36 = vld [vmem:[#allocation8 + $0x88] sm:$0xf0]  ;;  %v3655_v37 = vor.u32 %v4433_v32, %v3652_v34  ;;  %v4430_v41 = vld [vmem:[#allocation8 + $0x64] sm:$0xf] }
  0x6d   : > { %v4792_v11 = vpop.eup %4791  ;;  %v3659_v38 = vor.u32 %v4435_v36, %v3658_v35  ;;  %v3638_v39 = vld [vmem:[#allocation8 + $0x60] sm:$0xf]  ;;  %v4431_v40 = vld [vmem:[#allocation8 + $0x68] sm:$0xf0]  ;;  %v3640_v43 = vld [vmem:[#allocation8 + $0x6c] sm:$0xf0] }
  0x6e   : > { %v689_v12 = vmul.f32 128.0, %v4792_v11  ;;  %vm693_vm0 = vweird.f32 %v4792_v11  ;;  %883 = vmatpush.bf16.msra.mxu0 %v3663_v24  ;;  %896 = vmatpush.bf16.msra.mxu1 %v3667_v28  ;;  %v3639_v42 = vor.u32 %v4431_v40, %v3638_v39  ;;  %v3646_v44 = vld [vmem:[#allocation8 + $0x68] sm:$0xf]  ;;  %v4432_v45 = vld [vmem:[#allocation8 + $0x70] sm:$0xf0]  ;;  %v3643_v46 = vor.u32 %v4430_v41, %v3640_v43  ;;  %s5287_s17 = smov 96  }
  0x6f   : > { %909 = vmatpush.bf16.msra.mxu2 %v3671_v29  ;;  %v3647_v47 = vor.u32 %v4432_v45, %v3646_v44  ;;  %v3626_v48 = vld [vmem:[#allocation8 + $0x48] sm:$0xf]  ;;  %v4428_v49 = vld [vmem:[#allocation8 + $0x50] sm:$0xf0]  ;;  %v4427_v50 = vld [vmem:[#allocation8 + $0x4c] sm:$0xf] }
  0x70   : > { %v690_v13 = vsub.f32 1.0, %v689_v12  ;;  %v3627_v51 = vor.u32 %v4428_v49, %v3626_v48  ;;  %v3628_v52 = vld [vmem:[#allocation8 + $0x54] sm:$0xf0]  ;;  %v3634_v53 = vld [vmem:[#allocation8 + $0x50] sm:$0xf]  ;;  %vm921_vm4 = vcmask 261120   ;;  %v678_v49 = vlaneseq }
  0x71   : > { %v4429_v54 = vld [vmem:[#allocation8 + $0x58] sm:$0xf0]  ;;  %v3631_v55 = vor.u32 %v4427_v50, %v3628_v52  ;;  %v3614_v57 = vld [vmem:[#allocation8 + $0x30] sm:$0xf]  ;;  %v4424_v59 = vld [vmem:[#allocation8 + $0x34] sm:$0xf] }
  0x72   : > { %v691_v14 = vmul.f32 %v4792_v11, %v690_v13  ;;  %884 = vmatpush.bf16.msra.mxu0 %v3651_v33  ;;  %897 = vmatpush.bf16.msra.mxu1 %v3655_v37  ;;  %v3635_v56 = vor.u32 %v4429_v54, %v3634_v53  ;;  %v4425_v58 = vld [vmem:[#allocation8 + $0x38] sm:$0xf0]  ;;  %v3616_v61 = vld [vmem:[#allocation8 + $0x3c] sm:$0xf0]  ;;  %v3622_v62 = vld [vmem:[#allocation8 + $0x38] sm:$0xf] }
  0x73   : > { %910 = vmatpush.bf16.msra.mxu2 %v3659_v38  ;;  %v3615_v60 = vor.u32 %v4425_v58, %v3614_v57  ;;  %v4426_v63 = vld [vmem:[#allocation8 + $0x40] sm:$0xf0]  ;;  %v3619_v1 = vor.u32 %v4424_v59, %v3616_v61  ;;  %v3602_v3 = vld [vmem:[#allocation8 + $0x18] sm:$0xf]  ;;  %v4421_v5 = vld [vmem:[#allocation8 + $0x1c] sm:$0xf] }
  0x74   : > { %v692_v15 = vadd.f32 %v4792_v11, %v691_v14  ;;  %v3623_v2 = vor.u32 %v4426_v63, %v3622_v62  ;;  %v4422_v4 = vld [vmem:[#allocation8 + $0x20] sm:$0xf0]  ;;  %v3604_v7 = vld [vmem:[#allocation8 + $0x24] sm:$0xf0]  ;;  %v3610_v8 = vld [vmem:[#allocation8 + $0x20] sm:$0xf] }
  0x75   : > { %v3603_v6 = vor.u32 %v4422_v4, %v3602_v3  ;;  %v4423_v9 = vld [vmem:[#allocation8 + $0x28] sm:$0xf0]  ;;  %v3607_v10 = vor.u32 %v4421_v5, %v3604_v7  ;;  %v3590_v12 = vld [vmem:[#allocation8] sm:$0xf]  ;;  %v4418_v14 = vld [vmem:[#allocation8 + $0x4] sm:$0xf] }
  0x76   : > { %v5571_v16 = vsel %vm693_vm0, %v4792_v11, %v692_v15  ;;  %885 = vmatpush.bf16.msra.mxu0 %v3639_v42  ;;  %898 = vmatpush.bf16.msra.mxu1 %v3643_v46  ;;  %v3611_v11 = vor.u32 %v4423_v9, %v3610_v8  ;;  %v4419_v13 = vld [vmem:[#allocation8 + $0x8] sm:$0xf0]  ;;  %v4777_v32 = vld [vmem:[#allocation5] ss:$0 sm:$0xff]  ;;  %v4778_v35 = vld [vmem:[#allocation7] ss:$0 sm:$0xff] }
  0x77   : > { %911 = vmatpush.bf16.msra.mxu2 %v3647_v47  ;;  %v3591_v15 = vor.u32 %v4419_v13, %v3590_v12  ;;  %s5288_s15 = smov 32   ;;  %v679_v50 = vshrl.u32 %v678_v49, 7  ;;  %v5289_v53 = vmov 0.0   ;;  %vm950_vm6 = vcmask 64512   ;;  %s5290_s16 = smov 64  }
  0x78   : > { %s5822_s28 = sld [smem:[#allocation34_spill]]  ;;  %s4415_s30 = sshll.u32 %s5395_s25, 3 }
  0x79   : > { %s5823_s9 = sld [smem:[#allocation35_spill]]  ;;  %s5827_s0 = sshll.u32 %s5538_s1, 3 }
  0x7a   : > { %886 = vmatpush.bf16.msra.mxu0 %v3627_v51  ;;  %899 = vmatpush.bf16.msra.mxu1 %v3631_v55  ;;  %v681_v51 = vand.u32 127, %v678_v49  ;;  %s5824_s13 = sld [smem:[#allocation36_spill]]  ;;  %s3380_s24 = scalar_lea.sflag [#allocation4], %s5538_s1 }
  0x7b   : > { %912 = vmatpush.bf16.msra.mxu2 %v3635_v56  ;;  %s5825_s11 = sld [smem:[#allocation37_spill]] }
  0x7c   : > { %vm682_vm5 = vcmp.gt.s32.totalorder %v681_v51, %v679_v50 }
  0x7d   : > { %v5604_v54 = vsel %vm682_vm5, -1e+30, %v5289_v53 }
  0x7e   : > { %887 = vmatpush.bf16.msra.mxu0 %v3615_v60  ;;  %900 = vmatpush.bf16.msra.mxu1 %v3619_v1 }
  0x7f   : > { %913 = vmatpush.bf16.msra.mxu2 %v3623_v2 }
  0x82   : > { %888 = vmatpush.bf16.msra.mxu0 %v3603_v6  ;;  %901 = vmatpush.bf16.msra.mxu1 %v3607_v10 }
  0x83   : > { %914 = vmatpush.bf16.msra.mxu2 %v3611_v11 }
  0x86   : > { %889 = vmatpush.bf16.msra.mxu0 %v3591_v15 }
  0xda   : > { %v687_v17 = vpop.xlane.xlu0 %686 }
  0xdb   : > { %v695_v18 = vmul.f32 %v5571_v16, %v687_v17  ;;  %v3592_v17 = vld [vmem:[#allocation8 + $0xc] sm:$0xf0] }
  0xdc   : > { %v3595_v21 = vor.u32 %v4418_v14, %v3592_v17 }
  0xdd   : > { %v5575_v19 = vsub.f32 %v5568_v0, %v695_v18  ;;  %v3598_v18 = vld [vmem:[#allocation8 + $0x8] sm:$0xf] }
  0xde   : > { %902 = vmatpush.bf16.msra.mxu1 %v3595_v21 }
  0xdf   : > { %v697_v20 = vmul.f32 %v5575_v19, %v5575_v19 }
  0xe1   : > { %698 = vadd.xlane.f32.xlu0 %v697_v20  ;;  %v4420_v20 = vld [vmem:[#allocation8 + $0x10] sm:$0xf0] }
  0xe2   : > { %v3599_v22 = vor.u32 %v4420_v20, %v3598_v18 }
  0xe4   : > { %915 = vmatpush.bf16.msra.mxu2 %v3599_v22 }
 0x154   : > { %v699_v23 = vpop.xlane.xlu0 %698 }
 0x155   : > { %v700_v24 = vmul.f32 0.007874016, %v699_v23 }
 0x157   : > { %v701_v25 = vadd.f32 1e-05, %v700_v24 }
 0x159   : > { %4793 = vrsqrt.f32 %v701_v25  ;;  %vm708_vm2 = vweird.f32 %v701_v25 }
 0x15f   : > { %v4794_v26 = vpop.eup %4793 }
 0x160   : > { %v703_v27 = vmul.f32 %v4794_v26, %v701_v25  ;;  %vm709_vm1 = vweird.f32 %v4794_v26 }
 0x161   : > { %vm710_vm3 = vmor %vm708_vm2, %vm709_vm1 }
 0x162   : > { %v704_v28 = vmul.f32 %v4794_v26, %v703_v27 }
 0x164   : > { %v705_v29 = vmul.f32 0.5, %v704_v28 }
 0x166   : > { %v706_v30 = vsub.f32 1.5, %v705_v29 }
 0x168   : > { %v707_v31 = vmul.f32 %v4794_v26, %v706_v30 }
 0x16a   : > { %v711_v33 = vsel %vm710_vm3, %v4794_v26, %v707_v31 }
 0x16b   : > { %v712_v34 = vmul.f32 %v711_v33, %v5575_v19 }
 0x16d   : > { %v716_v36 = vmul.f32 %v4777_v32, %v712_v34 }
 0x16f   : > { %v720_v37 = vadd.f32 %v4778_v35, %v716_v36 }
 0x171   : > { %v721_v38 = vpack.c.bf16 %v720_v37, %v720_v37 }
 0x173   : > { %890 = vmatmul.bf16.vlgmr.msra.gmra.mxu0 %v721_v38  ;;  %903 = vmatmul.bf16.vlgmr.msra.gmra.mxu1 %v721_v38 }
 0x174   : > { %916 = vmatmul.bf16.vlgmr.msra.gmra.mxu2 %v721_v38 }
 0x1f0   : > { %v5580_v39 = vpop.f32.mrf.mxu0  ;;  %v5582_v40 = vpop.f32.mrf.mxu1 }
 0x1f1   : > { %1000 = vrot.lane.b32.xlu2 %v5582_v40, %s5287_s17  ;;  %3684 = vmatpush.xpose.msk.msra.mxu3 %vm921_vm4, %v5582_v40 }
 0x1f4   : > { %3685 = vmatmul.msk.f32.vlgmr.msra.gmra.mxu3 %vm921_vm4, %v5580_v39 }
 0x1f7   : > { %v5590_v19 = vpop.f32.mrf.mxu2 }
 0x1f8   : > { %993 = vmatpush.msrb.mxu3 %v5590_v19  ;;  %v893_v41 = vpop.f32.mrf.mxu0  ;;  %v906_v42 = vpop.f32.mrf.mxu1 }
 0x1f9   : > { %998 = vrot.lane.b32.xlu2 %v5580_v39, %s5287_s17 }
 0x1ff   : > { %v919_v43 = vpop.f32.mrf.mxu2 }
 0x201   : > { %1053 = vrot.lane.b32.xlu2 %v5590_v19, %s5287_s17 }
 0x209   : > { %1161 = vrot.lane.b32.xlu2 %v5582_v40, %s5288_s15 }
 0x211   : > { %1159 = vrot.lane.b32.xlu2 %v5580_v39, %s5288_s15 }
 0x24b   : > { %v1001_v44 = vpop.permute.xlu2 %1000 }
 0x24c   : > { %3687 = vmatpush.xpose.msk.msra.mxu3 %vm921_vm4, %v1001_v44 }
 0x253   : > { %v999_v45 = vpop.permute.xlu2 %998 }
 0x25b   : > { %v1054_v46 = vpop.permute.xlu2 %1053 }
 0x263   : > { %v1162_v47 = vpop.permute.xlu2 %1161 }
 0x264   : > { %3693 = vmatpush.xpose.msk.msrb.mxu0 %vm921_vm4, %v1162_v47 }
 0x26b   : > { %v1160_v48 = vpop.permute.xlu2 %1159 }
 0x26c   : > { %3694 = vmatmul.msk.f32.vlgmr.msrb.gmra.mxu0 %vm921_vm4, %v1160_v48 }
 0x277   : > { %v945_v52 = vpop.f32.mrf.mxu3 }
 0x278   : > { %v948_v55 = vmul.f32 0.17677669, %v945_v52 }
 0x27a   : > { %v949_v56 = vadd.f32 %v948_v55, %v5604_v54 }
 0x27c   : > { %v951_v57 = vsel %vm950_vm6, %v949_v56, -inf }
 0x27d   : > { %952 = vmax.xlane.f32.xlu1 %v951_v57 }
 0x2e9   : > { %v1184_v18 = vpop.f32.mrf.mxu0 }
 0x2ea   : > { %v1187_v20 = vmul.f32 0.17677669, %v1184_v18 }
 0x2ec   : > { %v1188_v21 = vadd.f32 %v1187_v20, %v5604_v54 }
 0x2ee   : > { %v1189_v22 = vsel %vm950_vm6, %v1188_v21, -inf }
 0x2f0   : > { %v953_v58 = vpop.xlane.xlu1 %952 }
 0x2f1   : > { %v954_v59 = vsub.f32 %v949_v56, %v953_v58 }
 0x2f3   : > { %v955_v60 = vmul.f32 1.442695, %v954_v59 }
 0x2f5   : > { %4795 = vpow2.f32 %v955_v60 }
 0x2fb   : > { %v4796_v61 = vpop.eup %4795 }
 0x2fc   : > { %v957_v62 = vsel %vm950_vm6, %v4796_v61, 0.0 }
 0x2fd   : > { %958 = vadd.xlane.f32.xlu1 %v957_v62 }
 0x370   : > { %v959_v63 = vpop.xlane.xlu1 %958 }
 0x371   : > { %4797 = vrcp.f32 %v959_v63  ;;  %v971_v4 = vand.u32 2147483648, %v959_v63  ;;  %v969_v6 = vand.u32 2147483647, %v959_v63  ;;  %vm965_vm8 = vweird.f32 %v959_v63 }
 0x373   : > { %v972_v8 = vor.u32 1.1754944e-38, %v971_v4  ;;  %vm970_vm10 = vcmp.eq.f32.partialorder %v969_v6, 8.507059e+37 }
 0x377   : > { %v4798_v1 = vpop.eup %4797 }
 0x378   : > { %v961_v2 = vmul.f32 %v4798_v1, %v959_v63  ;;  %vm966_vm7 = vweird.f32 %v4798_v1 }
 0x379   : > { %vm967_vm9 = vmor %vm965_vm8, %vm966_vm7 }
 0x37a   : > { %v962_v3 = vsub.f32 1.0, %v961_v2 }
 0x37c   : > { %v963_v5 = vmul.f32 %v4798_v1, %v962_v3 }
 0x37e   : > { %v964_v7 = vadd.f32 %v4798_v1, %v963_v5 }
 0x380   : > { %v968_v9 = vsel %vm967_vm9, %v4798_v1, %v964_v7  ;;  %vm1252_vm9 = vcmask 523264  }
 0x381   : > { %v973_v10 = vsel %vm970_vm10, %v972_v8, %v968_v9  ;;  %vm1254_vm10 = vcmask 785408  }
 0x382   : > { %v974_v11 = vmul.f32 %v4796_v61, %v973_v10 }
 0x384   : > { %3686 = vmatmul.msk.f32.vlgmr.msrb.gmra.mxu3 %vm950_vm6, %v974_v11 }
 0x385   : > { %1074 = vmatpush.msrb.mxu3 %v1054_v46 }
 0x38c   : > { %3688 = vmatmul.msk.f32.vlgmr.msra.gmra.mxu3 %vm921_vm4, %v999_v45 }
 0x407   : > { %v5611_v12 = vpop.f32.mrf.mxu3 }
 0x40f   : > { %v1023_v13 = vpop.f32.mrf.mxu3 }
 0x410   : > { %v1026_v14 = vmul.f32 0.17677669, %v1023_v13 }
 0x412   : > { %v1027_v15 = vadd.f32 %v1026_v14, %v5604_v54 }
 0x414   : > { %v1028_v17 = vsel %vm950_vm6, %v1027_v15, -inf }
 0x415   : > { %1029 = vmax.xlane.f32.xlu0 %v1028_v17 }
 0x429   : > { %1081 = vrot.lane.b32.xlu0 %v5582_v40, %s5290_s16 }
 0x453   : > { %1190 = vmax.xlane.f32.xlu0 %v1189_v22 }
 0x467   : > { %1133 = vrot.lane.b32.xlu0 %v5590_v19, %s5290_s16 }
 0x488   : > { %v1030_v23 = vpop.xlane.xlu0 %1029 }
 0x489   : > { %v1031_v24 = vsub.f32 %v1027_v15, %v1030_v23  ;;  %v4449_v23 = vld [vmem:[#allocation10 + $0x38] sm:$0xff] }
 0x48a   : > { %1325 = vmatpush.bf16.msrb.mxu2 %v4449_v23  ;;  %v3794_v23 = vld [vmem:[#allocation16 + $0x80] sm:$0xf] }
 0x48b   : > { %v1032_v25 = vmul.f32 1.442695, %v1031_v24  ;;  %v4448_v24 = vld [vmem:[#allocation10 + $0x30] sm:$0xff] }
 0x48d   : > { %4799 = vpow2.f32 %v1032_v25  ;;  %v4447_v25 = vld [vmem:[#allocation10 + $0x28] sm:$0xff] }
 0x48e   : > { %1326 = vmatpush.bf16.msrb.mxu2 %v4448_v24  ;;  %v4468_v24 = vld [vmem:[#allocation16 + $0x8c] sm:$0xf0] }
 0x492   : > { %1327 = vmatpush.bf16.msrb.mxu2 %v4447_v25  ;;  %v4466_v25 = vld [vmem:[#allocation16 + $0x84] sm:$0xf] }
 0x493   : > { %v4800_v26 = vpop.eup %4799 }
 0x494   : > { %v1034_v27 = vsel %vm950_vm6, %v4800_v26, 0.0 }
 0x495   : > { %1035 = vadd.xlane.f32.xlu1 %v1034_v27 }
 0x49b   : > { %v1082_v28 = vpop.permute.xlu0 %1081 }
 0x49c   : > { %3690 = vmatpush.xpose.msk.msra.mxu3 %vm921_vm4, %v1082_v28  ;;  %v4446_v28 = vld [vmem:[#allocation10 + $0x20] sm:$0xff] }
 0x49d   : > { %1328 = vmatpush.bf16.msrb.mxu2 %v4446_v28  ;;  %v3802_v28 = vld [vmem:[#allocation16 + $0x88] sm:$0xf] }
 0x4ae   : > { %1079 = vrot.lane.b32.xlu1 %v5580_v39, %s5290_s16 }
 0x4c6   : > { %v1191_v34 = vpop.xlane.xlu0 %1190 }
 0x4c7   : > { %v1192_v45 = vsub.f32 %v1188_v21, %v1191_v34 }
 0x4c9   : > { %v1193_v46 = vmul.f32 1.442695, %v1192_v45  ;;  %v3842_v45 = vld [vmem:[#allocation16 + $0xe0] sm:$0xf] }
 0x4d9   : > { %v1134_v43 = vpop.permute.xlu0 %1133 }
 0x508   : > { %v1036_v29 = vpop.xlane.xlu1 %1035 }
 0x509   : > { %4801 = vrcp.f32 %v1036_v29  ;;  %v1048_v33 = vand.u32 2147483648, %v1036_v29  ;;  %v1046_v36 = vand.u32 2147483647, %v1036_v29  ;;  %vm1042_vm12 = vweird.f32 %v1036_v29 }
 0x50a   : > { %4803 = vpow2.f32 %v1193_v46  ;;  %v4480_v46 = vld [vmem:[#allocation16 + $0xec] sm:$0xf0] }
 0x50b   : > { %v1049_v38 = vor.u32 1.1754944e-38, %v1048_v33  ;;  %vm1047_vm14 = vcmp.eq.f32.partialorder %v1046_v36, 8.507059e+37 }
 0x50f   : > { %v4802_v30 = vpop.eup %4801 }
 0x510   : > { %v1038_v31 = vmul.f32 %v4802_v30, %v1036_v29  ;;  %vm1043_vm11 = vweird.f32 %v4802_v30  ;;  %v4804_v51 = vpop.eup %4803  ;;  %v4445_v29 = vld [vmem:[#allocation10 + $0x18] sm:$0xff] }
 0x511   : > { %vm1044_vm13 = vmor %vm1042_vm12, %vm1043_vm11  ;;  %v1195_v52 = vsel %vm950_vm6, %v4804_v51, 0.0  ;;  %1329 = vmatpush.bf16.msrb.mxu2 %v4445_v29  ;;  %v4469_v29 = vld [vmem:[#allocation16 + $0x94] sm:$0xf0] }
 0x512   : > { %v1039_v32 = vsub.f32 1.0, %v1038_v31  ;;  %v4443_v31 = vld [vmem:[#allocation10 + $0x8] sm:$0xff] }
 0x514   : > { %v1040_v35 = vmul.f32 %v4802_v30, %v1039_v32  ;;  %v4442_v32 = vld [vmem:[#allocation10] sm:$0xff] }
 0x516   : > { %v1041_v37 = vadd.f32 %v4802_v30, %v1040_v35 }
 0x518   : > { %v1045_v40 = vsel %vm1044_vm13, %v4802_v30, %v1041_v37  ;;  %v4444_v30 = vld [vmem:[#allocation10 + $0x10] sm:$0xff] }
 0x519   : > { %v1050_v41 = vsel %vm1047_vm14, %v1049_v38, %v1045_v40  ;;  %1330 = vmatpush.bf16.msrb.mxu2 %v4444_v30 }
 0x51a   : > { %v1051_v42 = vmul.f32 %v4800_v26, %v1050_v41  ;;  %v4779_v41 = vld [vmem:[#allocation11] ss:$0 sm:$0xff] }
 0x51c   : > { %3689 = vmatmul.msk.f32.vlgmr.msrb.gmra.mxu3 %vm950_vm6, %v1051_v42 }
 0x51d   : > { %1154 = vmatpush.msrb.mxu3 %v1134_v43  ;;  %1331 = vmatpush.bf16.msrb.mxu2 %v4443_v31  ;;  %v3803_v31 = vor.u32 %v4469_v29, %v3802_v28  ;;  %v4504_v28 = vld [vmem:[#allocation17 + $0xb0] sm:$0xff] }
 0x520   : > { %v1080_v39 = vpop.permute.xlu1 %1079 }
 0x521   : > { %1332 = vmatpush.bf16.msrb.mxu2 %v4442_v32  ;;  %v4467_v32 = vld [vmem:[#allocation16 + $0x8c] sm:$0xf] }
 0x524   : > { %3691 = vmatmul.msk.f32.vlgmr.msra.gmra.mxu3 %vm921_vm4, %v1080_v39 }
 0x59f   : > { %v1076_v44 = vpop.f32.mrf.mxu3 }
 0x5a7   : > { %v1104_v47 = vpop.f32.mrf.mxu3 }
 0x5a8   : > { %v1107_v48 = vmul.f32 0.17677669, %v1104_v47  ;;  %v3843_v47 = vor.u32 %v4480_v46, %v3842_v45  ;;  %v4463_v45 = vld [vmem:[#allocation16 + $0x6c] sm:$0xf]  ;;  %v3788_v46 = vld [vmem:[#allocation16 + $0x78] sm:$0xf0] }
 0x5aa   : > { %v1108_v49 = vadd.f32 %v1107_v48, %v5604_v54  ;;  %v3844_v48 = vld [vmem:[#allocation16 + $0xf0] sm:$0xf0] }
 0x5ac   : > { %v1109_v50 = vsel %vm950_vm6, %v1108_v49, -inf }
 0x5ad   : > { %1110 = vmax.xlane.f32.xlu2 %v1109_v50  ;;  %v4481_v50 = vld [vmem:[#allocation16 + $0xf4] sm:$0xf0] }
 0x5b5   : > { %1196 = vadd.xlane.f32.xlu2 %v1195_v52 }
 0x5cd   : > { %1213 = vrot.lane.b32.xlu2 %v5590_v19, %s5288_s15 }
 0x620   : > { %v1111_v53 = vpop.xlane.xlu2 %1110 }
 0x621   : > { %v1112_v55 = vsub.f32 %v1108_v49, %v1111_v53  ;;  %v3850_v49 = vld [vmem:[#allocation16 + $0xe8] sm:$0xf]  ;;  %v4479_v53 = vld [vmem:[#allocation16 + $0xec] sm:$0xf] }
 0x622   : > { %v3851_v52 = vor.u32 %v4481_v50, %v3850_v49  ;;  %v4458_v49 = vld [vmem:[#allocation16 + $0x44] sm:$0xf] }
 0x623   : > { %v1113_v56 = vmul.f32 1.442695, %v1112_v55  ;;  %v3852_v55 = vld [vmem:[#allocation16 + $0xf8] sm:$0xf0] }
 0x624   : > { %1598 = vmatpush.bf16.msrb.mxu1 %v3851_v52  ;;  %v3770_v52 = vld [vmem:[#allocation16 + $0x48] sm:$0xf] }
 0x625   : > { %4805 = vpow2.f32 %v1113_v56  ;;  %v3855_v56 = vor.u32 %v4479_v53, %v3852_v55  ;;  %v4461_v53 = vld [vmem:[#allocation16 + $0x54] sm:$0xf0] }
 0x627   : > { %1611 = vmatpush.bf16.msra.mxu2 %v3855_v56  ;;  %v3771_v56 = vor.u32 %v4461_v53, %v3770_v52  ;;  %v4493_v52 = vld [vmem:[#allocation17 + $0x58] sm:$0xff] }
 0x628   : > { %v1197_v57 = vpop.xlane.xlu2 %1196  ;;  %v4501_v53 = vld [vmem:[#allocation17 + $0x98] sm:$0xff] }
 0x629   : > { %4807 = vrcp.f32 %v1197_v57  ;;  %v1209_v13 = vand.u32 2147483648, %v1197_v57  ;;  %vm1203_vm5 = vweird.f32 %v1197_v57  ;;  %v1207_v15 = vand.u32 2147483647, %v1197_v57 }
 0x62b   : > { %v4806_v58 = vpop.eup %4805  ;;  %v1210_v20 = vor.u32 1.1754944e-38, %v1209_v13  ;;  %vm1208_vm8 = vcmp.eq.f32.partialorder %v1207_v15, 8.507059e+37  ;;  %v3812_v13 = vld [vmem:[#allocation16 + $0xb0] sm:$0xf0]  ;;  %v4473_v15 = vld [vmem:[#allocation16 + $0xb4] sm:$0xf0] }
 0x62c   : > { %v1115_v59 = vsel %vm950_vm6, %v4806_v58, 0.0 }
 0x62d   : > { %1116 = vadd.xlane.f32.xlu1 %v1115_v59 }
 0x62f   : > { %v4808_v62 = vpop.eup %4807 }
 0x630   : > { %v1214_v60 = vpop.permute.xlu2 %1213  ;;  %v1199_v63 = vmul.f32 %v4808_v62, %v1197_v57  ;;  %vm1204_vm2 = vweird.f32 %v4808_v62 }
 0x631   : > { %1234 = vmatpush.msra.mxu3 %v1214_v60  ;;  %vm1205_vm7 = vmor %vm1203_vm5, %vm1204_vm2  ;;  %v3826_v60 = vld [vmem:[#allocation16 + $0xc0] sm:$0xf] }
 0x632   : > { %v1200_v19 = vsub.f32 1.0, %v1199_v63 }
 0x634   : > { %v1201_v5 = vmul.f32 %v4808_v62, %v1200_v19  ;;  %v3834_v19 = vld [vmem:[#allocation16 + $0xc8] sm:$0xf] }
 0x636   : > { %v1202_v10 = vadd.f32 %v4808_v62, %v1201_v5  ;;  %v4475_v5 = vld [vmem:[#allocation16 + $0xcc] sm:$0xf] }
 0x638   : > { %v1206_v18 = vsel %vm1205_vm7, %v4808_v62, %v1202_v10  ;;  %v4474_v62 = vld [vmem:[#allocation16 + $0xc4] sm:$0xf] }
 0x639   : > { %v1211_v21 = vsel %vm1208_vm8, %v1210_v20, %v1206_v18  ;;  %v4470_v10 = vld [vmem:[#allocation16 + $0xa4] sm:$0xf]  ;;  %v4471_v20 = vld [vmem:[#allocation16 + $0xac] sm:$0xf] }
 0x63a   : > { %v1212_v22 = vmul.f32 %v4804_v51, %v1211_v21  ;;  %v3820_v21 = vld [vmem:[#allocation16 + $0xb8] sm:$0xf0] }
 0x646   : > { %1240 = vrot.lane.b32.xlu1 %v1076_v44, %s5288_s15 }
 0x6a0   : > { %v1117_v61 = vpop.xlane.xlu1 %1116 }
 0x6a1   : > { %4809 = vrcp.f32 %v1117_v61  ;;  %v1129_v4 = vand.u32 2147483648, %v1117_v61  ;;  %v1127_v7 = vand.u32 2147483647, %v1117_v61  ;;  %vm1123_vm0 = vweird.f32 %v1117_v61 }
 0x6a3   : > { %v1130_v9 = vor.u32 1.1754944e-38, %v1129_v4  ;;  %vm1128_vm3 = vcmp.eq.f32.partialorder %v1127_v7, 8.507059e+37 }
 0x6a7   : > { %v4810_v1 = vpop.eup %4809 }
 0x6a8   : > { %v1119_v2 = vmul.f32 %v4810_v1, %v1117_v61  ;;  %vm1124_vm15 = vweird.f32 %v4810_v1  ;;  %v4476_v61 = vld [vmem:[#allocation16 + $0xcc] sm:$0xf0] }
 0x6a9   : > { %vm1125_vm1 = vmor %vm1123_vm0, %vm1124_vm15  ;;  %v3827_v63 = vor.u32 %v4476_v61, %v3826_v60  ;;  %v3746_v60 = vld [vmem:[#allocation16 + $0x20] sm:$0xf]  ;;  %v4456_v61 = vld [vmem:[#allocation16 + $0x2c] sm:$0xf0] }
 0x6aa   : > { %v1120_v3 = vsub.f32 1.0, %v1119_v2  ;;  %v4477_v2 = vld [vmem:[#allocation16 + $0xd4] sm:$0xf0] }
 0x6ab   : > { %v3835_v4 = vor.u32 %v4477_v2, %v3834_v19  ;;  %v3754_v19 = vld [vmem:[#allocation16 + $0x28] sm:$0xf]  ;;  %v4457_v2 = vld [vmem:[#allocation16 + $0x34] sm:$0xf0] }
 0x6ac   : > { %v1121_v6 = vmul.f32 %v4810_v1, %v1120_v3 }
 0x6ad   : > { %1599 = vmatpush.bf16.msrb.mxu1 %v3835_v4  ;;  %v3755_v4 = vor.u32 %v4457_v2, %v3754_v19  ;;  %v4490_v19 = vld [vmem:[#allocation17 + $0x40] sm:$0xff] }
 0x6ae   : > { %v1122_v8 = vadd.f32 %v4810_v1, %v1121_v6  ;;  %v3836_v6 = vld [vmem:[#allocation16 + $0xd8] sm:$0xf0]  ;;  %v4498_v2 = vld [vmem:[#allocation17 + $0x80] sm:$0xff] }
 0x6af   : > { %v3839_v7 = vor.u32 %v4475_v5, %v3836_v6  ;;  %v4455_v5 = vld [vmem:[#allocation16 + $0x2c] sm:$0xf]  ;;  %v3756_v6 = vld [vmem:[#allocation16 + $0x38] sm:$0xf0] }
 0x6b0   : > { %v1126_v11 = vsel %vm1125_vm1, %v4810_v1, %v1122_v8  ;;  %v3828_v1 = vld [vmem:[#allocation16 + $0xd0] sm:$0xf0]  ;;  %v3810_v8 = vld [vmem:[#allocation16 + $0xa0] sm:$0xf] }
 0x6b1   : > { %v1131_v14 = vsel %vm1128_vm3, %v1130_v9, %v1126_v11  ;;  %v3831_v3 = vor.u32 %v4474_v62, %v3828_v1  ;;  %v4472_v9 = vld [vmem:[#allocation16 + $0xac] sm:$0xf0]  ;;  %1612 = vmatpush.bf16.msra.mxu2 %v3839_v7  ;;  %v4454_v62 = vld [vmem:[#allocation16 + $0x24] sm:$0xf]  ;;  %v3748_v1 = vld [vmem:[#allocation16 + $0x30] sm:$0xf0] }
 0x6b2   : > { %v1132_v17 = vmul.f32 %v4806_v58, %v1131_v14  ;;  %v3811_v11 = vor.u32 %v4472_v9, %v3810_v8  ;;  %v3818_v14 = vld [vmem:[#allocation16 + $0xa8] sm:$0xf]  ;;  %v3730_v7 = vld [vmem:[#allocation16] sm:$0xf]  ;;  %v3759_v8 = vor.u32 %v4455_v5, %v3756_v6  ;;  %v4452_v9 = vld [vmem:[#allocation16 + $0xc] sm:$0xf0] }
 0x6b3   : > { %v3819_v18 = vor.u32 %v4473_v15, %v3818_v14  ;;  %v3738_v15 = vld [vmem:[#allocation16 + $0x8] sm:$0xf]  ;;  %v4482_v6 = vld [vmem:[#allocation17] sm:$0xff] }
 0x6b4   : > { %3692 = vmatmul.msk.f32.vlgmr.msrb.gmra.mxu3 %vm950_vm6, %v1132_v17  ;;  %v3815_v17 = vor.u32 %v4470_v10, %v3812_v13  ;;  %v4450_v10 = vld [vmem:[#allocation16 + $0x4] sm:$0xf]  ;;  %v3731_v13 = vor.u32 %v4452_v9, %v3730_v7 }
 0x6b5   : > { %1572 = vmatpush.bf16.msrb.mxu3 %v3843_v47  ;;  %1600 = vmatpush.bf16.msrb.mxu1 %v3819_v18  ;;  %v3762_v47 = vld [vmem:[#allocation16 + $0x40] sm:$0xf]  ;;  %v4451_v18 = vld [vmem:[#allocation16 + $0xc] sm:$0xf]  ;;  %v1402_v5 = vld [vmem:[%s5822_s28] sm:$0xf] }
 0x6b6   : > { %v4506_v7 = vld [vmem:[#allocation17 + $0xc0] sm:$0xff]  ;;  %v1406_v9 = vperm.slane %v1402_v5, 2 }
 0x6b8   : > { %v1241_v33 = vpop.permute.xlu1 %1240 }
 0x6b9   : > { %v1251_v34 = vsel %vm921_vm4, %v5611_v12, %v1241_v33  ;;  %v4478_v12 = vld [vmem:[#allocation16 + $0xe4] sm:$0xf]  ;;  %1573 = vmatpush.bf16.msrb.mxu3 %v3827_v63  ;;  %v3804_v33 = vld [vmem:[#allocation16 + $0x98] sm:$0xf0]  ;;  %1601 = vmatpush.bf16.msrb.mxu1 %v3803_v31  ;;  %v3747_v63 = vor.u32 %v4456_v61, %v3746_v60  ;;  %v4491_v61 = vld [vmem:[#allocation17 + $0x48] sm:$0xff] }
 0x6ba   : > { %v3847_v51 = vor.u32 %v4478_v12, %v3844_v48  ;;  %v3791_v12 = vor.u32 %v4463_v45, %v3788_v46  ;;  %v4460_v48 = vld [vmem:[#allocation16 + $0x4c] sm:$0xf0]  ;;  %v4513_v45 = vld [vmem:[#allocation17 + $0xf8] sm:$0xff]  ;;  %v4495_v46 = vld [vmem:[#allocation17 + $0x68] sm:$0xff] }
 0x6bb   : > { %v3763_v50 = vor.u32 %v4460_v48, %v3762_v47  ;;  %v4488_v47 = vld [vmem:[#allocation17 + $0x30] sm:$0xff]  ;;  %v4509_v60 = vld [vmem:[#allocation17 + $0xd8] sm:$0xff] }
 0x6bc   : > { %3695 = vmatmul.msk.f32.vlgmr.msra.gmra.mxu3 %vm950_vm6, %v1212_v22  ;;  %1585 = vmatpush.bf16.msra.mxu0 %v3847_v51  ;;  %v3823_v22 = vor.u32 %v4471_v20, %v3820_v21  ;;  %v3764_v51 = vld [vmem:[#allocation16 + $0x50] sm:$0xf0]  ;;  %v3740_v21 = vld [vmem:[#allocation16 + $0x18] sm:$0xf0] }
 0x6bd   : > { %1574 = vmatpush.bf16.msrb.mxu3 %v3811_v11  ;;  %v3767_v55 = vor.u32 %v4458_v49, %v3764_v51  ;;  %v3732_v11 = vld [vmem:[#allocation16 + $0x10] sm:$0xf0]  ;;  %v4502_v49 = vld [vmem:[#allocation17 + $0xa0] sm:$0xff]  ;;  %v4511_v51 = vld [vmem:[#allocation17 + $0xe8] sm:$0xff] }
 0x6be   : > { %1613 = vmatpush.bf16.msra.mxu2 %v3823_v22  ;;  %v3735_v14 = vor.u32 %v4450_v10, %v3732_v11  ;;  %v3743_v22 = vor.u32 %v4451_v18, %v3740_v21  ;;  %v4512_v48 = vld [vmem:[#allocation17 + $0xf0] sm:$0xff] }
 0x6c0   : > { %1586 = vmatpush.bf16.msra.mxu0 %v3831_v3  ;;  %v3751_v3 = vor.u32 %v4454_v62, %v3748_v1  ;;  %v4499_v62 = vld [vmem:[#allocation17 + $0x88] sm:$0xff]  ;;  %v4508_v1 = vld [vmem:[#allocation17 + $0xd0] sm:$0xff] }
 0x6c4   : > { %1587 = vmatpush.bf16.msra.mxu0 %v3815_v17  ;;  %v4453_v17 = vld [vmem:[#allocation16 + $0x14] sm:$0xf0] }
 0x6c5   : > { %v3739_v20 = vor.u32 %v4453_v17, %v3738_v15  ;;  %v1404_v17 = vperm.slane %v1402_v5, 0 }
 0x737   : > { %v1156_v26 = vpop.f32.mrf.mxu3 }
 0x738   : > { %1244 = vrot.lane.b32.xlu0 %v1156_v26, %s5290_s16  ;;  %v3795_v26 = vor.u32 %v4468_v24, %v3794_v23  ;;  %v4497_v24 = vld [vmem:[#allocation17 + $0x78] sm:$0xff] }
 0x73a   : > { %1575 = vmatpush.bf16.msrb.mxu3 %v3795_v26 }
 0x73f   : > { %v1236_v27 = vpop.f32.mrf.mxu3 }
 0x740   : > { %1248 = vrot.lane.b32.xlu2 %v1236_v27, %s5287_s17  ;;  %v3796_v27 = vld [vmem:[#allocation16 + $0x90] sm:$0xf0] }
 0x741   : > { %v3799_v30 = vor.u32 %v4466_v25, %v3796_v27  ;;  %v4505_v25 = vld [vmem:[#allocation17 + $0xb8] sm:$0xff]  ;;  %v4496_v27 = vld [vmem:[#allocation17 + $0x70] sm:$0xff] }
 0x743   : > { %1588 = vmatpush.bf16.msra.mxu0 %v3799_v30 }
 0x79a   : > { %v1249_v36 = vpop.permute.xlu2 %1248 }
 0x7aa   : > { %v1245_v35 = vpop.permute.xlu0 %1244 }
 0x7ab   : > { %v1253_v37 = vsel %vm1252_vm9, %v1251_v34, %v1245_v35  ;;  %v3807_v34 = vor.u32 %v4467_v32, %v3804_v33  ;;  %v3778_v35 = vld [vmem:[#allocation16 + $0x60] sm:$0xf] }
 0x7ac   : > { %v1255_v38 = vsel %vm1254_vm10, %v1253_v37, %v1249_v36  ;;  %v4464_v36 = vld [vmem:[#allocation16 + $0x6c] sm:$0xf0]  ;;  %v4462_v37 = vld [vmem:[#allocation16 + $0x64] sm:$0xf] }
 0x7ad   : > { %v1256_v40 = vpack.c.bf16 %v1255_v38, %v1255_v38  ;;  %1614 = vmatpush.bf16.msra.mxu2 %v3807_v34  ;;  %v3779_v38 = vor.u32 %v4464_v36, %v3778_v35  ;;  %v4780_v36 = vld [vmem:[#allocation13] ss:$0 sm:$0xff] }
 0x7af   : > { %1333 = vmatmul.bf16.vlgmr.msrb.gmra.mxu2 %v1256_v40  ;;  %v3780_v40 = vld [vmem:[#allocation16 + $0x70] sm:$0xf0]  ;;  %1576 = vmatpush.bf16.msrb.mxu3 %v3779_v38 }
 0x7b1   : > { %1615 = vmatpush.bf16.msra.mxu2 %v3791_v12  ;;  %v4503_v12 = vld [vmem:[#allocation17 + $0xa8] sm:$0xff] }
 0x7b3   : > { %1577 = vmatpush.bf16.msrb.mxu3 %v3763_v50  ;;  %v4487_v50 = vld [vmem:[#allocation17 + $0x28] sm:$0xff] }
 0x7b7   : > { %1578 = vmatpush.bf16.msrb.mxu3 %v3747_v63  ;;  %v4484_v63 = vld [vmem:[#allocation17 + $0x10] sm:$0xff] }
 0x7bb   : > { %1579 = vmatpush.bf16.msrb.mxu3 %v3731_v13 }
 0x832   : > { %v1334_v42 = vpop.f32.mrf.mxu2 }
 0x833   : > { %v1335_v43 = vadd.f32 %v4779_v41, %v1334_v42  ;;  %v3786_v41 = vld [vmem:[#allocation16 + $0x68] sm:$0xf]  ;;  %v4465_v42 = vld [vmem:[#allocation16 + $0x74] sm:$0xf0] }
 0x835   : > { %v5643_v39 = vadd.f32 %v1335_v43, %v5568_v0  ;;  %v3783_v43 = vor.u32 %v4462_v37, %v3780_v40  ;;  %v4781_v40 = vld [vmem:[#allocation14] ss:$0 sm:$0xff] }
 0x837   : > { %1341 = vadd.xlane.f32.xlu0 %v5643_v39  ;;  %1589 = vmatpush.bf16.msra.mxu0 %v3783_v43 }
 0x83a   : > { %v1336_v44 = vpop.f32.mrf.mxu2 }
 0x83b   : > { %v3787_v44 = vor.u32 %v4465_v42, %v3786_v41  ;;  %1590 = vmatpush.bf16.msra.mxu0 %v3767_v55  ;;  %v4486_v55 = vld [vmem:[#allocation17 + $0x20] sm:$0xff] }
 0x83d   : > { %1602 = vmatpush.bf16.msrb.mxu1 %v3787_v44  ;;  %v4489_v44 = vld [vmem:[#allocation17 + $0x38] sm:$0xff] }
 0x83e   : > { %1924 = vmatpush.bf16.msra.mxu3 %v4489_v44 }
 0x83f   : > { %1591 = vmatpush.bf16.msra.mxu0 %v3751_v3  ;;  %v4483_v3 = vld [vmem:[#allocation17 + $0x8] sm:$0xff] }
 0x841   : > { %1603 = vmatpush.bf16.msrb.mxu1 %v3771_v56  ;;  %v4510_v56 = vld [vmem:[#allocation17 + $0xe0] sm:$0xff] }
 0x842   : > { %1925 = vmatpush.bf16.msra.mxu3 %v4488_v47 }
 0x843   : > { %1592 = vmatpush.bf16.msra.mxu0 %v3735_v14 }
 0x845   : > { %1604 = vmatpush.bf16.msrb.mxu1 %v3755_v4  ;;  %v4507_v4 = vld [vmem:[#allocation17 + $0xc8] sm:$0xff] }
 0x846   : > { %1926 = vmatpush.bf16.msra.mxu3 %v4487_v50 }
 0x847   : > { %1937 = vmatpush.bf16.msrb.mxu0 %v4497_v24 }
 0x849   : > { %1605 = vmatpush.bf16.msrb.mxu1 %v3739_v20  ;;  %v1407_v20 = vperm.slane %v1402_v5, 3 }
 0x84a   : > { %1927 = vmatpush.bf16.msra.mxu3 %v4486_v55 }
 0x84b   : > { %1938 = vmatpush.bf16.msrb.mxu0 %v4496_v27 }
 0x84d   : > { %1950 = vmatpush.bf16.msra.mxu1 %v4505_v25 }
 0x84f   : > { %1939 = vmatpush.bf16.msrb.mxu0 %v4495_v46 }
 0x851   : > { %1951 = vmatpush.bf16.msra.mxu1 %v4504_v28 }
 0x855   : > { %1952 = vmatpush.bf16.msra.mxu1 %v4503_v12 }
 0x859   : > { %1953 = vmatpush.bf16.msra.mxu1 %v4502_v49 }
 0x85d   : > { %1954 = vmatpush.bf16.msra.mxu1 %v4501_v53 }
 0x8aa   : > { %v1342_v0 = vpop.xlane.xlu0 %1341 }
 0x8ab   : > { %v1343_v57 = vmul.f32 %v1342_v0, %v5571_v16  ;;  %v4459_v0 = vld [vmem:[#allocation16 + $0x4c] sm:$0xf] }
 0x8ad   : > { %v5648_v58 = vsub.f32 %v5643_v39, %v1343_v57  ;;  %v3772_v57 = vld [vmem:[#allocation16 + $0x58] sm:$0xf0] }
 0x8af   : > { %v1345_v59 = vmul.f32 %v5648_v58, %v5648_v58 }
 0x8b1   : > { %1346 = vadd.xlane.f32.xlu1 %v1345_v59  ;;  %v3775_v59 = vor.u32 %v4459_v0, %v3772_v57  ;;  %v4492_v0 = vld [vmem:[#allocation17 + $0x50] sm:$0xff] }
 0x8b2   : > { %v4500_v57 = vld [vmem:[#allocation17 + $0x90] sm:$0xff] }
 0x8b3   : > { %1616 = vmatpush.bf16.msra.mxu2 %v3775_v59  ;;  %v4485_v59 = vld [vmem:[#allocation17 + $0x18] sm:$0xff]  ;;  %1955 = vmatpush.bf16.msra.mxu1 %v4500_v57 }
 0x8b4   : > { %1928 = vmatpush.bf16.msra.mxu3 %v4485_v59 }
 0x8b7   : > { %1617 = vmatpush.bf16.msra.mxu2 %v3759_v8  ;;  %1956 = vmatpush.bf16.msra.mxu1 %v4499_v62  ;;  %v1405_v8 = vperm.slane %v1402_v5, 1 }
 0x8b8   : > { %1929 = vmatpush.bf16.msra.mxu3 %v4484_v63 }
 0x8bb   : > { %1618 = vmatpush.bf16.msra.mxu2 %v3743_v22  ;;  %1957 = vmatpush.bf16.msra.mxu1 %v4498_v2 }
 0x8bc   : > { %1930 = vmatpush.bf16.msra.mxu3 %v4483_v3 }
 0x8bf   : > { %1963 = vmatpush.bf16.msrb.mxu2 %v4513_v45 }
 0x8c0   : > { %1931 = vmatpush.bf16.msra.mxu3 %v4482_v6 }
 0x8c3   : > { %1964 = vmatpush.bf16.msrb.mxu2 %v4512_v48 }
 0x8c7   : > { %1965 = vmatpush.bf16.msrb.mxu2 %v4511_v51 }
 0x8cb   : > { %1966 = vmatpush.bf16.msrb.mxu2 %v4510_v56 }
 0x8cf   : > { %1967 = vmatpush.bf16.msrb.mxu2 %v4509_v60 }
 0x8d3   : > { %1968 = vmatpush.bf16.msrb.mxu2 %v4508_v1 }
 0x8d7   : > { %1969 = vmatpush.bf16.msrb.mxu2 %v4507_v4 }
 0x8db   : > { %1970 = vmatpush.bf16.msrb.mxu2 %v4506_v7  ;;  %v4782_v7 = vld [vmem:[%s5823_s9] ss:$0 sm:$0xff] }
 0x924   : > { %v1347_v23 = vpop.xlane.xlu1 %1346 }
 0x925   : > { %v1348_v26 = vmul.f32 0.007874016, %v1347_v23 }
 0x927   : > { %v1349_v29 = vadd.f32 1e-05, %v1348_v26 }
 0x929   : > { %4811 = vrsqrt.f32 %v1349_v29  ;;  %vm1356_vm12 = vweird.f32 %v1349_v29 }
 0x92f   : > { %v4812_v30 = vpop.eup %4811 }
 0x930   : > { %v1351_v31 = vmul.f32 %v4812_v30, %v1349_v29  ;;  %vm1357_vm11 = vweird.f32 %v4812_v30 }
 0x931   : > { %vm1358_vm13 = vmor %vm1356_vm12, %vm1357_vm11 }
 0x932   : > { %v1352_v32 = vmul.f32 %v4812_v30, %v1351_v31 }
 0x934   : > { %v1353_v33 = vmul.f32 0.5, %v1352_v32 }
 0x936   : > { %v1354_v34 = vsub.f32 1.5, %v1353_v33 }
 0x938   : > { %v1355_v35 = vmul.f32 %v4812_v30, %v1354_v34 }
 0x93a   : > { %v1359_v37 = vsel %vm1358_vm13, %v4812_v30, %v1355_v35 }
 0x93b   : > { %v1360_v38 = vmul.f32 %v1359_v37, %v5648_v58  ;;  %v4494_v58 = vld [vmem:[#allocation17 + $0x60] sm:$0xff] }
 0x93c   : > { %1940 = vmatpush.bf16.msrb.mxu0 %v4494_v58 }
 0x93d   : > { %v1364_v41 = vmul.f32 %v4780_v36, %v1360_v38 }
 0x93f   : > { %v1368_v42 = vadd.f32 %v4781_v40, %v1364_v41 }
 0x940   : > { %1941 = vmatpush.bf16.msrb.mxu0 %v4493_v52 }
 0x941   : > { %v1369_v43 = vpack.c.bf16 %v1368_v42, %v1368_v42 }
 0x943   : > { %1580 = vmatmul.bf16.vlgmr.msrb.gmra.mxu3 %v1369_v43  ;;  %1593 = vmatmul.bf16.vlgmr.msra.gmra.mxu0 %v1369_v43 }
 0x944   : > { %1606 = vmatmul.bf16.vlgmr.msrb.gmra.mxu1 %v1369_v43  ;;  %1619 = vmatmul.bf16.vlgmr.msra.gmra.mxu2 %v1369_v43 }
 0x945   : > { %1942 = vmatpush.bf16.msrb.mxu0 %v4492_v0 }
 0x949   : > { %1943 = vmatpush.bf16.msrb.mxu0 %v4491_v61 }
 0x94d   : > { %1944 = vmatpush.bf16.msrb.mxu0 %v4490_v19 }
 0x9c0   : > { %v1594_v10 = vpop.f32.mrf.mxu0 }
 0x9c1   : > { %v1595_v11 = vadd.f32 %v1594_v10, %v1405_v8  ;;  %v1607_v13 = vpop.f32.mrf.mxu1 }
 0x9c2   : > { %v1608_v14 = vadd.f32 %v1607_v13, %v1406_v9 }
 0x9c3   : > { %v1629_v15 = vmul.f32 0.44715, %v1595_v11  ;;  %v1625_v58 = vmul.f32 0.5, %v1595_v11 }
 0x9c4   : > { %v1630_v18 = vmul.f32 0.44715, %v1608_v14  ;;  %v1626_v50 = vmul.f32 0.5, %v1608_v14 }
 0x9c5   : > { %v1633_v21 = vmul.f32 %v1629_v15, %v1595_v11 }
 0x9c6   : > { %v1634_v22 = vmul.f32 %v1630_v18, %v1608_v14  ;;  %v1581_v23 = vpop.f32.mrf.mxu3 }
 0x9c7   : > { %v1637_v24 = vmul.f32 %v1633_v21, %v1595_v11  ;;  %v1582_v25 = vadd.f32 %v1581_v23, %v1404_v17  ;;  %v1620_v26 = vpop.f32.mrf.mxu2  ;;  %v4536_v21 = vld [vmem:[#allocation8 + $0x170] sm:$0xf0] }
 0x9c8   : > { %v1638_v27 = vmul.f32 %v1634_v22, %v1608_v14  ;;  %v1621_v28 = vadd.f32 %v1620_v26, %v1407_v20  ;;  %v1596_v29 = vpop.f32.mrf.mxu0  ;;  %v4070_v20 = vld [vmem:[#allocation8 + $0x168] sm:$0xf]  ;;  %v4535_v22 = vld [vmem:[#allocation8 + $0x16c] sm:$0xf]  ;;  %v4537_v26 = vld [vmem:[#allocation8 + $0x178] sm:$0xf0] }
 0x9c9   : > { %v1628_v30 = vmul.f32 0.44715, %v1582_v25  ;;  %v1609_v31 = vpop.f32.mrf.mxu1  ;;  %v1641_v32 = vadd.f32 %v1637_v24, %v1595_v11  ;;  %v1624_v59 = vmul.f32 0.5, %v1582_v25  ;;  %v4071_v23 = vor.u32 %v4536_v21, %v4070_v20  ;;  %v4072_v24 = vld [vmem:[#allocation8 + $0x174] sm:$0xf0] }
 0x9ca   : > { %v1631_v33 = vmul.f32 0.44715, %v1621_v28  ;;  %v1642_v34 = vadd.f32 %v1638_v27, %v1608_v14  ;;  %v1627_v61 = vmul.f32 0.5, %v1621_v28  ;;  %v4075_v27 = vor.u32 %v4535_v22, %v4072_v24  ;;  %v4000_v21 = vld [vmem:[#allocation8 + $0xe4] sm:$0xf0] }
 0x9cb   : > { %v1632_v35 = vmul.f32 %v1628_v30, %v1582_v25  ;;  %v1645_v36 = vmul.f32 0.7978846, %v1641_v32  ;;  %2171 = vmatpush.bf16.msrb.mxu3 %v4071_v23  ;;  %v4058_v32 = vld [vmem:[#allocation8 + $0x150] sm:$0xf]  ;;  %v4006_v22 = vld [vmem:[#allocation8 + $0xe0] sm:$0xf] }
 0x9cc   : > { %v1635_v37 = vmul.f32 %v1631_v33, %v1621_v28  ;;  %v1646_v38 = vmul.f32 0.7978846, %v1642_v34  ;;  %2184 = vmatpush.bf16.msra.mxu0 %v4075_v27  ;;  %v4533_v33 = vld [vmem:[#allocation8 + $0x158] sm:$0xf0]  ;;  %v4532_v34 = vld [vmem:[#allocation8 + $0x154] sm:$0xf] }
 0x9cd   : > { %v1636_v40 = vmul.f32 %v1632_v35, %v1582_v25  ;;  %4813 = vtanh.f32 %v1645_v36  ;;  %v4059_v35 = vor.u32 %v4533_v33, %v4058_v32  ;;  %v4060_v36 = vld [vmem:[#allocation8 + $0x15c] sm:$0xf0]  ;;  %v4519_v23 = vld [vmem:[#allocation8 + $0xe8] sm:$0xf0]  ;;  %v4516_v32 = vld [vmem:[#allocation8 + $0xd0] sm:$0xf0] }
 0x9ce   : > { %v1639_v41 = vmul.f32 %v1635_v37, %v1621_v28  ;;  %v1583_v42 = vpop.f32.mrf.mxu3  ;;  %4815 = vtanh.f32 %v1646_v38  ;;  %v4066_v37 = vld [vmem:[#allocation8 + $0x158] sm:$0xf]  ;;  %v4534_v38 = vld [vmem:[#allocation8 + $0x160] sm:$0xf0]  ;;  %v4515_v27 = vld [vmem:[#allocation8 + $0xc8] sm:$0xf0] }
 0x9cf   : > { %v1622_v43 = vpop.f32.mrf.mxu2  ;;  %v1640_v44 = vadd.f32 %v1636_v40, %v1582_v25  ;;  %v4078_v25 = vld [vmem:[#allocation8 + $0x170] sm:$0xf]  ;;  %v4063_v40 = vor.u32 %v4532_v34, %v4060_v36  ;;  %2172 = vmatpush.bf16.msrb.mxu3 %v4059_v35  ;;  %v4046_v42 = vld [vmem:[#allocation8 + $0x138] sm:$0xf] }
 0x9d0   : > { %v1643_v45 = vadd.f32 %v1639_v41, %v1621_v28  ;;  %v4079_v28 = vor.u32 %v4537_v26, %v4078_v25  ;;  %v4067_v41 = vor.u32 %v4534_v38, %v4066_v37  ;;  %v4530_v43 = vld [vmem:[#allocation8 + $0x140] sm:$0xf0]  ;;  %v4007_v25 = vor.u32 %v4519_v23, %v4006_v22  ;;  %v3986_v26 = vld [vmem:[#allocation8 + $0xc0] sm:$0xf] }
 0x9d1   : > { %v1644_v46 = vmul.f32 0.7978846, %v1640_v44  ;;  %2185 = vmatpush.bf16.msra.mxu0 %v4063_v40  ;;  %v4529_v44 = vld [vmem:[#allocation8 + $0x13c] sm:$0xf] }
 0x9d2   : > { %v1647_v12 = vmul.f32 0.7978846, %v1643_v45  ;;  %2197 = vmatpush.bf16.msrb.mxu1 %v4079_v28  ;;  %v4047_v45 = vor.u32 %v4530_v43, %v4046_v42  ;;  %v4514_v28 = vld [vmem:[#allocation8 + $0xc4] sm:$0xf] }
 0x9d3   : > { %v4814_v47 = vpop.eup %4813  ;;  %4817 = vtanh.f32 %v1644_v46  ;;  %v4048_v46 = vld [vmem:[#allocation8 + $0x144] sm:$0xf0] }
 0x9d4   : > { %v4816_v48 = vpop.eup %4815  ;;  %v1653_v49 = vadd.f32 1.0, %v4814_v47  ;;  %4819 = vtanh.f32 %v1647_v12  ;;  %v4054_v12 = vld [vmem:[#allocation8 + $0x140] sm:$0xf]  ;;  %v4531_v47 = vld [vmem:[#allocation8 + $0x148] sm:$0xf0]  ;;  %2173 = vmatpush.bf16.msrb.mxu3 %v4047_v45 }
 0x9d5   : > { %v1654_v51 = vadd.f32 1.0, %v4816_v48  ;;  %v4051_v48 = vor.u32 %v4529_v44, %v4048_v46  ;;  %v4783_v45 = vld [vmem:[#allocation5 + $0x1] ss:$0 sm:$0xff] }
 0x9d6   : > { %v1657_v52 = vmul.f32 %v1653_v49, %v1625_v58  ;;  %2198 = vmatpush.bf16.msrb.mxu1 %v4067_v41  ;;  %v4055_v58 = vor.u32 %v4531_v47, %v4054_v12  ;;  %v4034_v49 = vld [vmem:[#allocation8 + $0x120] sm:$0xf]  ;;  %v4784_v47 = vld [vmem:[#allocation7 + $0x1] ss:$0 sm:$0xff] }
 0x9d7   : > { %v1658_v53 = vmul.f32 %v1654_v51, %v1626_v50  ;;  %2186 = vmatpush.bf16.msra.mxu0 %v4051_v48  ;;  %v4527_v50 = vld [vmem:[#allocation8 + $0x128] sm:$0xf0]  ;;  %v4526_v51 = vld [vmem:[#allocation8 + $0x124] sm:$0xf] }
 0x9d8   : > { %v1661_v55 = vpack.c.bf16 %v1657_v52, %v1657_v52  ;;  %v4035_v52 = vor.u32 %v4527_v50, %v4034_v49 }
 0x9d9   : > { %v4818_v56 = vpop.eup %4817  ;;  %v1662_v0 = vpack.c.bf16 %v1658_v53, %v1658_v53  ;;  %v4036_v53 = vld [vmem:[#allocation8 + $0x12c] sm:$0xf0] }
 0x9da   : > { %v4820_v57 = vpop.eup %4819  ;;  %1945 = vmatmul.bf16.vlgmr.msrb.gmra.mxu0 %v1661_v55  ;;  %v1652_v60 = vadd.f32 1.0, %v4818_v56  ;;  %2199 = vmatpush.bf16.msrb.mxu1 %v4055_v58  ;;  %v4042_v55 = vld [vmem:[#allocation8 + $0x128] sm:$0xf]  ;;  %v4528_v56 = vld [vmem:[#allocation8 + $0x130] sm:$0xf0] }
 0x9db   : > { %1958 = vmatmul.bf16.vlgmr.msra.gmra.mxu1 %v1662_v0  ;;  %v1655_v62 = vadd.f32 1.0, %v4820_v57  ;;  %v4039_v0 = vor.u32 %v4526_v51, %v4036_v53  ;;  %v4043_v57 = vor.u32 %v4528_v56, %v4042_v55  ;;  %2174 = vmatpush.bf16.msrb.mxu3 %v4035_v52 }
 0x9dc   : > { %v1656_v63 = vmul.f32 %v1652_v60, %v1624_v59  ;;  %v4022_v59 = vld [vmem:[#allocation8 + $0x108] sm:$0xf]  ;;  %v4524_v60 = vld [vmem:[#allocation8 + $0x110] sm:$0xf0] }
 0x9dd   : > { %v1659_v1 = vmul.f32 %v1655_v62, %v1627_v61  ;;  %2187 = vmatpush.bf16.msra.mxu0 %v4039_v0  ;;  %v4523_v61 = vld [vmem:[#allocation8 + $0x10c] sm:$0xf]  ;;  %v4023_v62 = vor.u32 %v4524_v60, %v4022_v59 }
 0x9de   : > { %v1660_v19 = vpack.c.bf16 %v1656_v63, %v1656_v63  ;;  %2200 = vmatpush.bf16.msrb.mxu1 %v4043_v57  ;;  %v4024_v63 = vld [vmem:[#allocation8 + $0x114] sm:$0xf0] }
 0x9df   : > { %v1663_v2 = vpack.c.bf16 %v1659_v1, %v1659_v1  ;;  %v4030_v1 = vld [vmem:[#allocation8 + $0x110] sm:$0xf]  ;;  %2175 = vmatpush.bf16.msrb.mxu3 %v4023_v62 }
 0x9e0   : > { %1932 = vmatmul.bf16.vlgmr.msra.gmra.mxu3 %v1660_v19  ;;  %v4525_v19 = vld [vmem:[#allocation8 + $0x118] sm:$0xf0] }
 0x9e1   : > { %1971 = vmatmul.bf16.vlgmr.msrb.gmra.mxu2 %v1663_v2  ;;  %v4027_v2 = vor.u32 %v4523_v61, %v4024_v63 }
 0x9e3   : > { %2188 = vmatpush.bf16.msra.mxu0 %v4027_v2 }
 0xa57   : > { %v1946_v3 = vpop.f32.mrf.mxu0 }
 0xa58   : > { %v1959_v4 = vpop.f32.mrf.mxu1 }
 0xa5f   : > { %v1948_v5 = vpop.f32.mrf.mxu0 }
 0xa60   : > { %v1961_v6 = vpop.f32.mrf.mxu1  ;;  %v4521_v5 = vld [vmem:[#allocation8 + $0xf8] sm:$0xf0] }
 0xa61   : > { %v4520_v6 = vld [vmem:[#allocation8 + $0xf4] sm:$0xf] }
 0xa63   : > { %v1933_v8 = vpop.f32.mrf.mxu3 }
 0xa64   : > { %v1934_v9 = vadd.f32 %v4782_v7, %v1933_v8  ;;  %v1972_v10 = vpop.f32.mrf.mxu2  ;;  %v4012_v8 = vld [vmem:[#allocation8 + $0xfc] sm:$0xf0] }
 0xa66   : > { %v1947_v11 = vadd.f32 %v1946_v3, %v1934_v9  ;;  %v4031_v3 = vor.u32 %v4525_v19, %v4030_v1  ;;  %v4018_v9 = vld [vmem:[#allocation8 + $0xf8] sm:$0xf] }
 0xa68   : > { %v1960_v13 = vadd.f32 %v1959_v4, %v1947_v11  ;;  %2201 = vmatpush.bf16.msrb.mxu1 %v4031_v3  ;;  %v4010_v4 = vld [vmem:[#allocation8 + $0xf0] sm:$0xf]  ;;  %v4015_v11 = vor.u32 %v4520_v6, %v4012_v8 }
 0xa69   : > { %v4011_v7 = vor.u32 %v4521_v5, %v4010_v4 }
 0xa6a   : > { %v1973_v14 = vadd.f32 %v1972_v10, %v1960_v13  ;;  %v4522_v10 = vld [vmem:[#allocation8 + $0x100] sm:$0xf0]  ;;  %2189 = vmatpush.bf16.msra.mxu0 %v4015_v11 }
 0xa6b   : > { %v1935_v15 = vpop.f32.mrf.mxu3  ;;  %v4019_v13 = vor.u32 %v4522_v10, %v4018_v9  ;;  %2176 = vmatpush.bf16.msrb.mxu3 %v4011_v7 }
 0xa6c   : > { %v5660_v17 = vadd.f32 %v1973_v14, %v5643_v39  ;;  %v1974_v18 = vpop.f32.mrf.mxu2  ;;  %v3998_v14 = vld [vmem:[#allocation8 + $0xd8] sm:$0xf]  ;;  %v4518_v15 = vld [vmem:[#allocation8 + $0xe0] sm:$0xf0] }
 0xa6d   : > { %2202 = vmatpush.bf16.msrb.mxu1 %v4019_v13  ;;  %v4517_v18 = vld [vmem:[#allocation8 + $0xdc] sm:$0xf]  ;;  %v3999_v20 = vor.u32 %v4518_v15, %v3998_v14 }
 0xa6e   : > { %1981 = vadd.xlane.f32.xlu2 %v5660_v17  ;;  %v4003_v24 = vor.u32 %v4517_v18, %v4000_v21 }
 0xa6f   : > { %2177 = vmatpush.bf16.msrb.mxu3 %v3999_v20 }
 0xa70   : > { %2190 = vmatpush.bf16.msra.mxu0 %v4003_v24 }
 0xa71   : > { %2203 = vmatpush.bf16.msrb.mxu1 %v4007_v25 }
 0xae1   : > { %v1982_v29 = vpop.xlane.xlu2 %1981 }
 0xae2   : > { %v1983_v30 = vmul.f32 %v1982_v29, %v5571_v16  ;;  %v3987_v29 = vor.u32 %v4515_v27, %v3986_v26 }
 0xae4   : > { %v5665_v39 = vsub.f32 %v5660_v17, %v1983_v30  ;;  %v3988_v30 = vld [vmem:[#allocation8 + $0xcc] sm:$0xf0]  ;;  %2178 = vmatpush.bf16.msrb.mxu3 %v3987_v29 }
 0xae5   : > { %v3991_v33 = vor.u32 %v4514_v28, %v3988_v30 }
 0xae6   : > { %v1985_v31 = vmul.f32 %v5665_v39, %v5665_v39 }
 0xae7   : > { %2191 = vmatpush.bf16.msra.mxu0 %v3991_v33 }
 0xae8   : > { %1986 = vadd.xlane.f32.xlu0 %v1985_v31  ;;  %v3994_v31 = vld [vmem:[#allocation8 + $0xc8] sm:$0xf] }
 0xae9   : > { %v3995_v34 = vor.u32 %v4516_v32, %v3994_v31 }
 0xaeb   : > { %2204 = vmatpush.bf16.msrb.mxu1 %v3995_v34 }
 0xb5b   : > { %v1987_v35 = vpop.xlane.xlu0 %1986 }
 0xb5c   : > { %v1988_v36 = vmul.f32 0.007874016, %v1987_v35 }
 0xb5e   : > { %v1989_v37 = vadd.f32 1e-05, %v1988_v36 }
 0xb60   : > { %4821 = vrsqrt.f32 %v1989_v37  ;;  %vm1996_vm15 = vweird.f32 %v1989_v37 }
 0xb66   : > { %v4822_v38 = vpop.eup %4821 }
 0xb67   : > { %v1991_v40 = vmul.f32 %v4822_v38, %v1989_v37  ;;  %vm1997_vm14 = vweird.f32 %v4822_v38 }
 0xb68   : > { %vm1998_vm0 = vmor %vm1996_vm15, %vm1997_vm14 }
 0xb69   : > { %v1992_v41 = vmul.f32 %v4822_v38, %v1991_v40 }
 0xb6b   : > { %v1993_v42 = vmul.f32 0.5, %v1992_v41 }
 0xb6d   : > { %v1994_v43 = vsub.f32 1.5, %v1993_v42 }
 0xb6f   : > { %v1995_v44 = vmul.f32 %v4822_v38, %v1994_v43 }
 0xb71   : > { %v1999_v46 = vsel %vm1998_vm0, %v4822_v38, %v1995_v44 }
 0xb72   : > { %v2000_v12 = vmul.f32 %v1999_v46, %v5665_v39 }
 0xb74   : > { %v2004_v48 = vmul.f32 %v4783_v45, %v2000_v12 }
 0xb76   : > { %v2008_v58 = vadd.f32 %v4784_v47, %v2004_v48 }
 0xb78   : > { %v2009_v49 = vpack.c.bf16 %v2008_v58, %v2008_v58 }
 0xb7a   : > { %2179 = vmatmul.bf16.vlgmr.msrb.gmra.mxu3 %v2009_v49  ;;  %2192 = vmatmul.bf16.vlgmr.msra.gmra.mxu0 %v2009_v49 }
 0xb7b   : > { %2205 = vmatmul.bf16.vlgmr.msrb.gmra.mxu1 %v2009_v49 }
 0xbf7   : > { %v2193_v50 = vpop.f32.mrf.mxu0 }
 0xbf8   : > { %v5670_v51 = vpop.f32.mrf.mxu1  ;;  %2287 = vrot.lane.b32.xlu0 %v2193_v50, %s5287_s17  ;;  %4080 = vmatpush.xpose.msk.msrb.mxu0 %vm921_vm4, %v2193_v50 }
 0xbf9   : > { %2280 = vmatpush.msra.mxu3 %v5670_v51 }
 0xbfd   : > { %v2180_v52 = vpop.f32.mrf.mxu3 }
 0xbfe   : > { %4081 = vmatmul.msk.f32.vlgmr.msrb.gmra.mxu0 %vm921_vm4, %v2180_v52 }
 0xbff   : > { %v2195_v39 = vpop.f32.mrf.mxu0 }
 0xc00   : > { %v2208_v53 = vpop.f32.mrf.mxu1  ;;  %2448 = vrot.lane.b32.xlu0 %v2193_v50, %s5288_s15 }
 0xc05   : > { %v2182_v55 = vpop.f32.mrf.mxu3 }
 0xc08   : > { %2446 = vrot.lane.b32.xlu0 %v2180_v52, %s5288_s15 }
 0xc6a   : > { %v2288_v56 = vpop.permute.xlu0 %2287 }
 0xc6b   : > { %4083 = vmatpush.xpose.msk.msrb.mxu3 %vm921_vm4, %v2288_v56 }
 0xc72   : > { %v2449_v21 = vpop.permute.xlu0 %2448 }
 0xc7a   : > { %v2447_v22 = vpop.permute.xlu0 %2446 }
 0xc7b   : > { %v2233_v0 = vpop.f32.mrf.mxu0 }
 0xc7c   : > { %v2236_v57 = vmul.f32 0.17677669, %v2233_v0 }
 0xc7e   : > { %v2237_v59 = vadd.f32 %v2236_v57, %v5604_v54 }
 0xc80   : > { %v2238_v60 = vsel %vm950_vm6, %v2237_v59, -inf }
 0xc81   : > { %2239 = vmax.xlane.f32.xlu1 %v2238_v60 }
 0xc9a   : > { %2285 = vrot.lane.b32.xlu1 %v2180_v52, %s5287_s17 }
 0xca2   : > { %2366 = vrot.lane.b32.xlu1 %v2180_v52, %s5290_s16 }
 0xcf4   : > { %v2240_v61 = vpop.xlane.xlu1 %2239 }
 0xcf5   : > { %v2241_v62 = vsub.f32 %v2237_v59, %v2240_v61 }
 0xcf7   : > { %v2242_v63 = vmul.f32 1.442695, %v2241_v62 }
 0xcf9   : > { %4823 = vpow2.f32 %v2242_v63 }
 0xcff   : > { %v4824_v1 = vpop.eup %4823 }
 0xd00   : > { %v2244_v19 = vsel %vm950_vm6, %v4824_v1, 0.0 }
 0xd01   : > { %2245 = vadd.xlane.f32.xlu2 %v2244_v19 }
 0xd0c   : > { %v2286_v3 = vpop.permute.xlu1 %2285 }
 0xd14   : > { %v2367_v8 = vpop.permute.xlu1 %2366 }
 0xd19   : > { %2368 = vrot.lane.b32.xlu2 %v2193_v50, %s5290_s16 }
 0xd74   : > { %v2246_v2 = vpop.xlane.xlu2 %2245 }
 0xd75   : > { %4825 = vrcp.f32 %v2246_v2  ;;  %v2258_v9 = vand.u32 2147483648, %v2246_v2  ;;  %v2256_v11 = vand.u32 2147483647, %v2246_v2  ;;  %vm2252_vm2 = vweird.f32 %v2246_v2 }
 0xd77   : > { %v2259_v14 = vor.u32 1.1754944e-38, %v2258_v9  ;;  %vm2257_vm5 = vcmp.eq.f32.partialorder %v2256_v11, 8.507059e+37 }
 0xd7b   : > { %v4826_v4 = vpop.eup %4825 }
 0xd7c   : > { %v2248_v5 = vmul.f32 %v4826_v4, %v2246_v2  ;;  %v2369_v6 = vpop.permute.xlu2 %2368  ;;  %vm2253_vm1 = vweird.f32 %v4826_v4 }
 0xd7d   : > { %4086 = vmatpush.xpose.msk.msra.mxu1 %vm921_vm4, %v2369_v6  ;;  %vm2254_vm3 = vmor %vm2252_vm2, %vm2253_vm1 }
 0xd7e   : > { %v2249_v7 = vsub.f32 1.0, %v2248_v5 }
 0xd80   : > { %v2250_v10 = vmul.f32 %v4826_v4, %v2249_v7  ;;  %4087 = vmatmul.msk.f32.vlgmr.msra.gmra.mxu1 %vm921_vm4, %v2367_v8 }
 0xd82   : > { %v2251_v13 = vadd.f32 %v4826_v4, %v2250_v10 }
 0xd84   : > { %v2255_v15 = vsel %vm2254_vm3, %v4826_v4, %v2251_v13 }
 0xd85   : > { %v2260_v18 = vsel %vm2257_vm5, %v2259_v14, %v2255_v15 }
 0xd86   : > { %v2261_v20 = vmul.f32 %v4824_v1, %v2260_v18 }
 0xd88   : > { %4082 = vmatmul.msk.f32.vlgmr.msra.gmra.mxu3 %vm950_vm6, %v2261_v20 }
 0xd89   : > { %4089 = vmatpush.xpose.msk.msra.mxu3 %vm921_vm4, %v2449_v21 }
 0xd90   : > { %4084 = vmatmul.msk.f32.vlgmr.msrb.gmra.mxu3 %vm921_vm4, %v2286_v3 }
 0xd98   : > { %4090 = vmatmul.msk.f32.vlgmr.msra.gmra.mxu3 %vm921_vm4, %v2447_v22 }
 0xdfd   : > { %v2391_v23 = vpop.f32.mrf.mxu1 }
 0xdfe   : > { %v2394_v24 = vmul.f32 0.17677669, %v2391_v23 }
 0xe00   : > { %v2395_v25 = vadd.f32 %v2394_v24, %v5604_v54 }
 0xe02   : > { %v2396_v26 = vsel %vm950_vm6, %v2395_v25, -inf }
 0xe03   : > { %2397 = vmax.xlane.f32.xlu1 %v2396_v26 }
 0xe0b   : > { %v5693_v27 = vpop.f32.mrf.mxu3 }
 0xe13   : > { %v2310_v28 = vpop.f32.mrf.mxu3 }
 0xe14   : > { %v2313_v29 = vmul.f32 0.17677669, %v2310_v28 }
 0xe16   : > { %v2314_v30 = vadd.f32 %v2313_v29, %v5604_v54 }
 0xe18   : > { %v2315_v31 = vsel %vm950_vm6, %v2314_v30, -inf }
 0xe19   : > { %2316 = vmax.xlane.f32.xlu2 %v2315_v31 }
 0xe1b   : > { %v2471_v32 = vpop.f32.mrf.mxu3 }
 0xe1c   : > { %v2474_v33 = vmul.f32 0.17677669, %v2471_v32  ;;  %v4545_v32 = vld [vmem:[#allocation10 + $0x78] sm:$0xff] }
 0xe1d   : > { %2612 = vmatpush.bf16.msrb.mxu1 %v4545_v32 }
 0xe1e   : > { %v2475_v34 = vadd.f32 %v2474_v33, %v5604_v54  ;;  %v4544_v33 = vld [vmem:[#allocation10 + $0x70] sm:$0xff] }
 0xe20   : > { %v2476_v35 = vsel %vm950_vm6, %v2475_v34, -inf }
 0xe21   : > { %2477 = vmax.xlane.f32.xlu0 %v2476_v35  ;;  %2613 = vmatpush.bf16.msrb.mxu1 %v4544_v33  ;;  %v4542_v35 = vld [vmem:[#allocation10 + $0x60] sm:$0xff]  ;;  %v4193_v33 = vld [vmem:[#allocation16 + $0x190] sm:$0xf0] }
 0xe76   : > { %v2398_v36 = vpop.xlane.xlu1 %2397 }
 0xe77   : > { %v2399_v37 = vsub.f32 %v2395_v25, %v2398_v36  ;;  %v4541_v36 = vld [vmem:[#allocation10 + $0x58] sm:$0xff] }
 0xe79   : > { %v2400_v38 = vmul.f32 1.442695, %v2399_v37  ;;  %v4540_v37 = vld [vmem:[#allocation10 + $0x50] sm:$0xff] }
 0xe7b   : > { %4827 = vpow2.f32 %v2400_v38  ;;  %v4539_v38 = vld [vmem:[#allocation10 + $0x48] sm:$0xff] }
 0xe81   : > { %v4828_v40 = vpop.eup %4827 }
 0xe82   : > { %v2402_v41 = vsel %vm950_vm6, %v4828_v40, 0.0 }
 0xe83   : > { %2403 = vadd.xlane.f32.xlu1 %v2402_v41 }
 0xe8c   : > { %v2317_v42 = vpop.xlane.xlu2 %2316 }
 0xe8d   : > { %v2318_v43 = vsub.f32 %v2314_v30, %v2317_v42 }
 0xe8f   : > { %v2319_v44 = vmul.f32 1.442695, %v2318_v43 }
 0xe91   : > { %4829 = vpow2.f32 %v2319_v44 }
 0xe94   : > { %v2478_v45 = vpop.xlane.xlu0 %2477 }
 0xe95   : > { %v2479_v46 = vsub.f32 %v2475_v34, %v2478_v45  ;;  %v4543_v34 = vld [vmem:[#allocation10 + $0x68] sm:$0xff] }
 0xe96   : > { %2614 = vmatpush.bf16.msrb.mxu1 %v4543_v34  ;;  %v4199_v34 = vld [vmem:[#allocation16 + $0x188] sm:$0xf] }
 0xe97   : > { %v4830_v12 = vpop.eup %4829  ;;  %v2480_v47 = vmul.f32 1.442695, %v2479_v46 }
 0xe98   : > { %v2321_v54 = vsel %vm950_vm6, %v4830_v12, 0.0 }
 0xe99   : > { %4831 = vpow2.f32 %v2480_v47  ;;  %2322 = vadd.xlane.f32.xlu2 %v2321_v54  ;;  %v4785_v47 = vld [vmem:[#allocation11 + $0x1] ss:$0 sm:$0xff] }
 0xe9a   : > { %2615 = vmatpush.bf16.msrb.mxu1 %v4542_v35  ;;  %v4565_v35 = vld [vmem:[#allocation16 + $0x194] sm:$0xf0] }
 0xe9c   : > { %2420 = vrot.lane.b32.xlu1 %v5670_v51, %s5290_s16 }
 0xe9e   : > { %2616 = vmatpush.bf16.msrb.mxu1 %v4541_v36 }
 0xe9f   : > { %v4832_v48 = vpop.eup %4831 }
 0xea0   : > { %v2482_v58 = vsel %vm950_vm6, %v4832_v48, 0.0 }
 0xea1   : > { %2483 = vadd.xlane.f32.xlu0 %v2482_v58 }
 0xea2   : > { %2617 = vmatpush.bf16.msrb.mxu1 %v4540_v37  ;;  %v4200_v37 = vor.u32 %v4565_v35, %v4199_v34 }
 0xea6   : > { %2618 = vmatpush.bf16.msrb.mxu1 %v4539_v38  ;;  %v4563_v38 = vld [vmem:[#allocation16 + $0x18c] sm:$0xf] }
 0xeb1   : > { %2340 = vrot.lane.b32.xlu2 %v5670_v51, %s5287_s17 }
 0xeb5   : > { %2500 = vrot.lane.b32.xlu0 %v5670_v51, %s5288_s15 }
 0xef6   : > { %v2404_v49 = vpop.xlane.xlu1 %2403 }
 0xef7   : > { %4833 = vrcp.f32 %v2404_v49  ;;  %v2416_v56 = vand.u32 2147483648, %v2404_v49  ;;  %vm2410_vm8 = vweird.f32 %v2404_v49  ;;  %v2414_v0 = vand.u32 2147483647, %v2404_v49 }
 0xef9   : > { %v2417_v59 = vor.u32 1.1754944e-38, %v2416_v56  ;;  %vm2415_vm12 = vcmp.eq.f32.partialorder %v2414_v0, 8.507059e+37  ;;  %v4577_v56 = vld [vmem:[#allocation16 + $0x1f4] sm:$0xf0] }
 0xefd   : > { %v4834_v50 = vpop.eup %4833 }
 0xefe   : > { %v2406_v52 = vmul.f32 %v4834_v50, %v2404_v49  ;;  %vm2411_vm7 = vweird.f32 %v4834_v50 }
 0xeff   : > { %vm2412_vm11 = vmor %vm2410_vm8, %vm2411_vm7 }
 0xf00   : > { %v2407_v39 = vsub.f32 1.0, %v2406_v52  ;;  %v4576_v52 = vld [vmem:[#allocation16 + $0x1ec] sm:$0xf0] }
 0xf02   : > { %v2408_v53 = vmul.f32 %v4834_v50, %v2407_v39  ;;  %v4574_v39 = vld [vmem:[#allocation16 + $0x1e4] sm:$0xf] }
 0xf04   : > { %v2409_v55 = vadd.f32 %v4834_v50, %v2408_v53  ;;  %v4241_v53 = vld [vmem:[#allocation16 + $0x1f0] sm:$0xf0] }
 0xf05   : > { %v4244_v0 = vor.u32 %v4574_v39, %v4241_v53  ;;  %v4159_v39 = vld [vmem:[#allocation16 + $0x140] sm:$0xf]  ;;  %v4554_v53 = vld [vmem:[#allocation16 + $0x144] sm:$0xf] }
 0xf06   : > { %v2413_v57 = vsel %vm2412_vm11, %v4834_v50, %v2409_v55  ;;  %v4239_v50 = vld [vmem:[#allocation16 + $0x1e0] sm:$0xf]  ;;  %v4247_v55 = vld [vmem:[#allocation16 + $0x1e8] sm:$0xf] }
 0xf07   : > { %v2418_v60 = vsel %vm2415_vm12, %v2417_v59, %v2413_v57  ;;  %v4248_v57 = vor.u32 %v4577_v56, %v4247_v55  ;;  %v4575_v59 = vld [vmem:[#allocation16 + $0x1ec] sm:$0xf]  ;;  %2876 = vmatpush.bf16.msrb.mxu3 %v4244_v0  ;;  %v4161_v56 = vld [vmem:[#allocation16 + $0x150] sm:$0xf0]  ;;  %v4167_v0 = vld [vmem:[#allocation16 + $0x148] sm:$0xf] }
 0xf08   : > { %v2419_v51 = vmul.f32 %v4828_v40, %v2418_v60  ;;  %v4538_v40 = vld [vmem:[#allocation10 + $0x40] sm:$0xff] }
 0xf09   : > { %2619 = vmatpush.bf16.msrb.mxu1 %v4538_v40  ;;  %v4249_v60 = vld [vmem:[#allocation16 + $0x1f8] sm:$0xf0] }
 0xf0a   : > { %v4201_v40 = vld [vmem:[#allocation16 + $0x198] sm:$0xf0] }
 0xf0c   : > { %v2323_v61 = vpop.xlane.xlu2 %2322 }
 0xf0d   : > { %4835 = vrcp.f32 %v2323_v61  ;;  %v2335_v4 = vand.u32 2147483648, %v2323_v61  ;;  %v2333_v6 = vand.u32 2147483647, %v2323_v61  ;;  %vm2329_vm14 = vweird.f32 %v2323_v61 }
 0xf0e   : > { %v2421_v62 = vpop.permute.xlu1 %2420 }
 0xf0f   : > { %2441 = vmatpush.msra.mxu2 %v2421_v62  ;;  %v2336_v9 = vor.u32 1.1754944e-38, %v2335_v4  ;;  %vm2334_vm0 = vcmp.eq.f32.partialorder %v2333_v6, 8.507059e+37  ;;  %v4225_v4 = vld [vmem:[#allocation16 + $0x1d0] sm:$0xf0]  ;;  %v4573_v6 = vld [vmem:[#allocation16 + $0x1d4] sm:$0xf0] }
 0xf10   : > { %4088 = vmatmul.msk.f32.vlgmr.msra.gmra.mxu2 %vm950_vm6, %v2419_v51 }
 0xf13   : > { %v4836_v63 = vpop.eup %4835 }
 0xf14   : > { %v2325_v1 = vmul.f32 %v4836_v63, %v2323_v61  ;;  %v2484_v19 = vpop.xlane.xlu0 %2483  ;;  %v2341_v2 = vpop.permute.xlu2 %2340  ;;  %vm2330_vm13 = vweird.f32 %v4836_v63  ;;  %v4252_v61 = vor.u32 %v4575_v59, %v4249_v60  ;;  %v4164_v59 = vor.u32 %v4554_v53, %v4161_v56  ;;  %v4583_v53 = vld [vmem:[#allocation17 + $0x128] sm:$0xff]  ;;  %v4597_v56 = vld [vmem:[#allocation17 + $0x198] sm:$0xff] }
 0xf15   : > { %4837 = vrcp.f32 %v2484_v19  ;;  %2361 = vmatpush.msra.mxu0 %v2341_v2  ;;  %vm2331_vm15 = vmor %vm2329_vm14, %vm2330_vm13  ;;  %v2496_v18 = vand.u32 2147483648, %v2484_v19  ;;  %v2494_v21 = vand.u32 2147483647, %v2484_v19  ;;  %vm2490_vm2 = vweird.f32 %v2484_v19  ;;  %v4570_v2 = vld [vmem:[#allocation16 + $0x1c4] sm:$0xf] }
 0xf16   : > { %v2326_v3 = vsub.f32 1.0, %v2325_v1  ;;  %2902 = vmatpush.bf16.msra.mxu1 %v4252_v61  ;;  %v4223_v1 = vld [vmem:[#allocation16 + $0x1c0] sm:$0xf]  ;;  %v4555_v61 = vld [vmem:[#allocation16 + $0x14c] sm:$0xf] }
 0xf17   : > { %v2497_v23 = vor.u32 1.1754944e-38, %v2496_v18  ;;  %vm2495_vm5 = vcmp.eq.f32.partialorder %v2494_v21, 8.507059e+37  ;;  %v4215_v21 = vld [vmem:[#allocation16 + $0x1a8] sm:$0xf] }
 0xf18   : > { %v2327_v5 = vmul.f32 %v4836_v63, %v2326_v3 }
 0xf1a   : > { %v2328_v7 = vadd.f32 %v4836_v63, %v2327_v5  ;;  %v4231_v5 = vld [vmem:[#allocation16 + $0x1c8] sm:$0xf] }
 0xf1b   : > { %v4838_v8 = vpop.eup %4837 }
 0xf1c   : > { %v2332_v10 = vsel %vm2331_vm15, %v4836_v63, %v2328_v7  ;;  %v2486_v11 = vmul.f32 %v4838_v8, %v2484_v19  ;;  %vm2491_vm1 = vweird.f32 %v4838_v8  ;;  %v4572_v19 = vld [vmem:[#allocation16 + $0x1cc] sm:$0xf0]  ;;  %v4228_v7 = vor.u32 %v4570_v2, %v4225_v4  ;;  %v4151_v4 = vld [vmem:[#allocation16 + $0x128] sm:$0xf] }
 0xf1d   : > { %v2337_v13 = vsel %vm2334_vm0, %v2336_v9, %v2332_v10  ;;  %vm2492_vm3 = vmor %vm2490_vm2, %vm2491_vm1  ;;  %v4224_v3 = vor.u32 %v4572_v19, %v4223_v1  ;;  %v4571_v9 = vld [vmem:[#allocation16 + $0x1cc] sm:$0xf]  ;;  %v4233_v10 = vld [vmem:[#allocation16 + $0x1d8] sm:$0xf0] }
 0xf1e   : > { %v2487_v14 = vsub.f32 1.0, %v2486_v11  ;;  %v2338_v15 = vmul.f32 %v4830_v12, %v2337_v13  ;;  %v4236_v11 = vor.u32 %v4571_v9, %v4233_v10  ;;  %2877 = vmatpush.bf16.msrb.mxu3 %v4228_v7  ;;  %v4207_v13 = vld [vmem:[#allocation16 + $0x1a0] sm:$0xf]  ;;  %v4552_v1 = vld [vmem:[#allocation16 + $0x12c] sm:$0xf0] }
 0xf1f   : > { %v4550_v19 = vld [vmem:[#allocation16 + $0x124] sm:$0xf]  ;;  %v4153_v9 = vld [vmem:[#allocation16 + $0x138] sm:$0xf0]  ;;  %v4127_v10 = vld [vmem:[#allocation16 + $0x100] sm:$0xf] }
 0xf20   : > { %v2488_v20 = vmul.f32 %v4838_v8, %v2487_v14  ;;  %4085 = vmatmul.msk.f32.vlgmr.msra.gmra.mxu0 %vm950_vm6, %v2338_v15  ;;  %v4568_v14 = vld [vmem:[#allocation16 + $0x1ac] sm:$0xf0]  ;;  %v4566_v15 = vld [vmem:[#allocation16 + $0x1a4] sm:$0xf]  ;;  %2903 = vmatpush.bf16.msra.mxu1 %v4236_v11 }
 0xf21   : > { %v4208_v18 = vor.u32 %v4568_v14, %v4207_v13  ;;  %v4548_v13 = vld [vmem:[#allocation16 + $0x10c] sm:$0xf0]  ;;  %v4546_v14 = vld [vmem:[#allocation16 + $0x104] sm:$0xf] }
 0xf22   : > { %v2489_v22 = vadd.f32 %v4838_v8, %v2488_v20  ;;  %v4209_v20 = vld [vmem:[#allocation16 + $0x1b0] sm:$0xf0] }
 0xf24   : > { %v2493_v24 = vsel %vm2492_vm3, %v4838_v8, %v2489_v22  ;;  %v4232_v8 = vor.u32 %v4573_v6, %v4231_v5  ;;  %v4569_v22 = vld [vmem:[#allocation16 + $0x1b4] sm:$0xf0] }
 0xf25   : > { %v2498_v25 = vsel %vm2495_vm5, %v2497_v23, %v2493_v24  ;;  %v4212_v23 = vor.u32 %v4566_v15, %v4209_v20  ;;  %v4216_v24 = vor.u32 %v4569_v22, %v4215_v21  ;;  %v4553_v5 = vld [vmem:[#allocation16 + $0x134] sm:$0xf0]  ;;  %v4129_v15 = vld [vmem:[#allocation16 + $0x110] sm:$0xf0]  ;;  %v4135_v21 = vld [vmem:[#allocation16 + $0x108] sm:$0xf] }
 0xf26   : > { %v2499_v26 = vmul.f32 %v4832_v48, %v2498_v25  ;;  %v4567_v25 = vld [vmem:[#allocation16 + $0x1ac] sm:$0xf]  ;;  %v4152_v7 = vor.u32 %v4553_v5, %v4151_v4  ;;  %v4132_v20 = vor.u32 %v4546_v14, %v4129_v15  ;;  %v4549_v22 = vld [vmem:[#allocation16 + $0x114] sm:$0xf0]  ;;  %v4602_v4 = vld [vmem:[#allocation17 + $0x1c0] sm:$0xff] }
 0xf27   : > { %v2501_v28 = vpop.permute.xlu0 %2500  ;;  %2878 = vmatpush.bf16.msrb.mxu3 %v4212_v23  ;;  %v4547_v23 = vld [vmem:[#allocation16 + $0x10c] sm:$0xf] }
 0xf28   : > { %2521 = vmatpush.msrb.mxu0 %v2501_v28  ;;  %v4579_v5 = vld [vmem:[#allocation17 + $0x108] sm:$0xff] }
 0xf29   : > { %4091 = vmatmul.msk.f32.vlgmr.msrb.gmra.mxu0 %vm950_vm6, %v2499_v26  ;;  %v4217_v26 = vld [vmem:[#allocation16 + $0x1b8] sm:$0xf0] }
 0xf2a   : > { %2889 = vmatpush.bf16.msra.mxu0 %v4248_v57  ;;  %v4220_v28 = vor.u32 %v4567_v25, %v4217_v26  ;;  %v4557_v57 = vld [vmem:[#allocation16 + $0x154] sm:$0xf0]  ;;  %v4137_v25 = vld [vmem:[#allocation16 + $0x118] sm:$0xf0] }
 0xf2b   : > { %v4168_v60 = vor.u32 %v4557_v57, %v4167_v0  ;;  %v4140_v26 = vor.u32 %v4547_v23, %v4137_v25  ;;  %v4605_v0 = vld [vmem:[#allocation17 + $0x1d8] sm:$0xff]  ;;  %v4582_v57 = vld [vmem:[#allocation17 + $0x120] sm:$0xff] }
 0xf2c   : > { %2904 = vmatpush.bf16.msra.mxu1 %v4220_v28 }
 0xf2e   : > { %2890 = vmatpush.bf16.msra.mxu0 %v4232_v8  ;;  %v4551_v8 = vld [vmem:[#allocation16 + $0x12c] sm:$0xf] }
 0xf2f   : > { %v4156_v11 = vor.u32 %v4551_v8, %v4153_v9  ;;  %v4578_v8 = vld [vmem:[#allocation17 + $0x100] sm:$0xff] }
 0xf30   : > { %v4586_v9 = vld [vmem:[#allocation17 + $0x140] sm:$0xff] }
 0xf32   : > { %2891 = vmatpush.bf16.msra.mxu0 %v4216_v24  ;;  %v4136_v24 = vor.u32 %v4549_v22, %v4135_v21 }
 0xf36   : > { %2892 = vmatpush.bf16.msra.mxu0 %v4200_v37 }
 0xf93   : > { %v2443_v29 = vpop.f32.mrf.mxu2 }
 0xf94   : > { %2531 = vrot.lane.b32.xlu0 %v2443_v29, %s5290_s16  ;;  %v4191_v29 = vld [vmem:[#allocation16 + $0x180] sm:$0xf] }
 0xf9d   : > { %v2363_v30 = vpop.f32.mrf.mxu0 }
 0xf9e   : > { %2527 = vrot.lane.b32.xlu2 %v2363_v30, %s5288_s15  ;;  %v4564_v30 = vld [vmem:[#allocation16 + $0x18c] sm:$0xf0]  ;;  %s676_s15 = scalar_lea.vmem [#allocation20], %s5827_s0 }
 0xf9f   : > { %v4192_v32 = vor.u32 %v4564_v30, %v4191_v29  ;;  %v4601_v29 = vld [vmem:[#allocation17 + $0x1b8] sm:$0xff]  ;;  %s3392_s16 = sshll.u32 %s676_s15, 4  ;;  %s3393_s16 = int_to_ptr.vmem [resolvable:$true] %s3392_s16 }
 0xfa0   : > { %v4609_v30 = vld [vmem:[#allocation17 + $0x1f8] sm:$0xff] }
 0xfa6   : > { %v2523_v31 = vpop.f32.mrf.mxu0 }
 0xfa7   : > { %2535 = vrot.lane.b32.xlu1 %v2523_v31, %s5287_s17  ;;  %v4562_v31 = vld [vmem:[#allocation16 + $0x184] sm:$0xf]  ;;  %s5826_s17 = sld [smem:[#allocation38_spill]] }
 0xfa8   : > { %v4196_v36 = vor.u32 %v4562_v31, %v4193_v33  ;;  %v4608_v33 = vld [vmem:[#allocation17 + $0x1f0] sm:$0xff] }
 0xfaa   : > { %2879 = vmatpush.bf16.msrb.mxu3 %v4196_v36 }
 0xfad   : > { %s3390_s3 = scalar_lea.hbm %s5826_s17, %s4415_s30  ;;  %s5201_s30 = scalar_lea.hbm %s5826_s17, 16 }
 0xff8   : > { %v2528_v41 = vpop.permute.xlu2 %2527 }
 0xff9   : > { %v2538_v43 = vsel %vm921_vm4, %v5693_v27, %v2528_v41  ;;  %v4240_v27 = vor.u32 %v4576_v52, %v4239_v50  ;;  %v4204_v41 = vor.u32 %v4563_v38, %v4201_v40  ;;  %v4185_v50 = vld [vmem:[#allocation16 + $0x178] sm:$0xf0] }
 0xffb   : > { %2863 = vmatpush.bf16.msrb.mxu2 %v4240_v27  ;;  %2905 = vmatpush.bf16.msra.mxu1 %v4204_v41  ;;  %v4556_v27 = vld [vmem:[#allocation16 + $0x14c] sm:$0xf0] }
 0xffc   : > { %v4160_v55 = vor.u32 %v4556_v27, %v4159_v39  ;;  %v4592_v39 = vld [vmem:[#allocation17 + $0x170] sm:$0xff]  ;;  %v4606_v27 = vld [vmem:[#allocation17 + $0x1e0] sm:$0xff] }
 0xfff   : > { %2864 = vmatpush.bf16.msrb.mxu2 %v4224_v3  ;;  %v4145_v3 = vld [vmem:[#allocation16 + $0x130] sm:$0xf0] }
0x1000   : > { %v4148_v6 = vor.u32 %v4550_v19, %v4145_v3  ;;  %v4580_v19 = vld [vmem:[#allocation17 + $0x110] sm:$0xff]  ;;  %v4594_v3 = vld [vmem:[#allocation17 + $0x180] sm:$0xff] }
0x1003   : > { %2865 = vmatpush.bf16.msrb.mxu2 %v4208_v18  ;;  %v4128_v18 = vor.u32 %v4548_v13, %v4127_v10 }
0x1006   : > { %v2532_v42 = vpop.permute.xlu0 %2531 }
0x1007   : > { %v2539_v44 = vsel %vm1252_vm9, %v2538_v43, %v2532_v42  ;;  %2866 = vmatpush.bf16.msrb.mxu2 %v4192_v32  ;;  %v4175_v42 = vld [vmem:[#allocation16 + $0x160] sm:$0xf]  ;;  %v4560_v43 = vld [vmem:[#allocation16 + $0x16c] sm:$0xf0] }
0x1008   : > { %v4600_v32 = vld [vmem:[#allocation17 + $0x1b0] sm:$0xff] }
0x1019   : > { %v2536_v45 = vpop.permute.xlu1 %2535 }
0x101a   : > { %v2540_v46 = vsel %vm1254_vm10, %v2539_v44, %v2536_v45  ;;  %v4558_v44 = vld [vmem:[#allocation16 + $0x164] sm:$0xf]  ;;  %v4176_v45 = vor.u32 %v4560_v43, %v4175_v42  ;;  %v4786_v42 = vld [vmem:[#allocation13 + $0x1] ss:$0 sm:$0xff] }
0x101b   : > { %v2541_v12 = vpack.c.bf16 %v2540_v46, %v2540_v46  ;;  %v4177_v46 = vld [vmem:[#allocation16 + $0x170] sm:$0xf0] }
0x101c   : > { %2867 = vmatpush.bf16.msrb.mxu2 %v4176_v45  ;;  %v4787_v45 = vld [vmem:[#allocation14 + $0x1] ss:$0 sm:$0xff] }
0x101d   : > { %2620 = vmatmul.bf16.vlgmr.msrb.gmra.mxu1 %v2541_v12  ;;  %v4183_v12 = vld [vmem:[#allocation16 + $0x168] sm:$0xf] }
0x1020   : > { %2868 = vmatpush.bf16.msrb.mxu2 %v4160_v55  ;;  %v4591_v55 = vld [vmem:[#allocation17 + $0x168] sm:$0xff] }
0x109a   : > { %v2621_v54 = vpop.f32.mrf.mxu1 }
0x109b   : > { %v2622_v48 = vadd.f32 %v4785_v47, %v2621_v54  ;;  %v4561_v47 = vld [vmem:[#allocation16 + $0x174] sm:$0xf0]  ;;  %v4180_v54 = vor.u32 %v4558_v44, %v4177_v46 }
0x109d   : > { %v5719_v58 = vadd.f32 %v2622_v48, %v5660_v17  ;;  %v4184_v48 = vor.u32 %v4561_v47, %v4183_v12  ;;  %2880 = vmatpush.bf16.msrb.mxu3 %v4180_v54  ;;  %v4585_v54 = vld [vmem:[#allocation17 + $0x138] sm:$0xff] }
0x109f   : > { %2630 = vadd.xlane.f32.xlu2 %v5719_v58  ;;  %2893 = vmatpush.bf16.msra.mxu0 %v4184_v48  ;;  %v4593_v48 = vld [vmem:[#allocation17 + $0x178] sm:$0xff] }
0x10a1   : > { %2881 = vmatpush.bf16.msrb.mxu3 %v4164_v59  ;;  %v4590_v59 = vld [vmem:[#allocation17 + $0x160] sm:$0xff] }
0x10a2   : > { %v2623_v49 = vpop.f32.mrf.mxu1 }
0x10a3   : > { %v4559_v49 = vld [vmem:[#allocation16 + $0x16c] sm:$0xf]  ;;  %2894 = vmatpush.bf16.msra.mxu0 %v4168_v60  ;;  %v4596_v60 = vld [vmem:[#allocation17 + $0x190] sm:$0xff] }
0x10a4   : > { %v4188_v52 = vor.u32 %v4559_v49, %v4185_v50  ;;  %v4599_v49 = vld [vmem:[#allocation17 + $0x1a8] sm:$0xff] }
0x10a5   : > { %2882 = vmatpush.bf16.msrb.mxu3 %v4148_v6  ;;  %v4607_v50 = vld [vmem:[#allocation17 + $0x1e8] sm:$0xff] }
0x10a6   : > { %2906 = vmatpush.bf16.msra.mxu1 %v4188_v52  ;;  %v4584_v52 = vld [vmem:[#allocation17 + $0x130] sm:$0xff]  ;;  %v4587_v6 = vld [vmem:[#allocation17 + $0x148] sm:$0xff] }
0x10a7   : > { %2895 = vmatpush.bf16.msra.mxu0 %v4152_v7  ;;  %v4124_v7 = vld [vmem:[%s5822_s28 + $0x4] sm:$0xf] }
0x10a8   : > { %v2697_v10 = vperm.slane %v4124_v7, 2  ;;  %v2696_v21 = vperm.slane %v4124_v7, 1 }
0x10a9   : > { %2883 = vmatpush.bf16.msrb.mxu3 %v4132_v20  ;;  %v2695_v20 = vperm.slane %v4124_v7, 0 }
0x10ab   : > { %2896 = vmatpush.bf16.msra.mxu0 %v4136_v24 }
0x10ad   : > { %3230 = vmatpush.bf16.msra.mxu3 %v4593_v48 }
0x10af   : > { %3243 = vmatpush.bf16.msrb.mxu0 %v4601_v29 }
0x10b1   : > { %3231 = vmatpush.bf16.msra.mxu3 %v4592_v39 }
0x10b3   : > { %3244 = vmatpush.bf16.msrb.mxu0 %v4600_v32 }
0x10b5   : > { %3232 = vmatpush.bf16.msra.mxu3 %v4591_v55 }
0x10b7   : > { %3245 = vmatpush.bf16.msrb.mxu0 %v4599_v49 }
0x10b9   : > { %3233 = vmatpush.bf16.msra.mxu3 %v4590_v59 }
0x1112   : > { %v2631_v17 = vpop.xlane.xlu2 %2630 }
0x1113   : > { %v2632_v62 = vmul.f32 %v2631_v17, %v5571_v16  ;;  %v4169_v17 = vld [vmem:[#allocation16 + $0x158] sm:$0xf0] }
0x1115   : > { %v5724_v51 = vsub.f32 %v5719_v58, %v2632_v62  ;;  %v4172_v62 = vor.u32 %v4555_v61, %v4169_v17  ;;  %v4604_v61 = vld [vmem:[#allocation17 + $0x1d0] sm:$0xff]  ;;  %v4581_v17 = vld [vmem:[#allocation17 + $0x118] sm:$0xff] }
0x1117   : > { %v2634_v63 = vmul.f32 %v5724_v51, %v5724_v51  ;;  %2907 = vmatpush.bf16.msra.mxu1 %v4172_v62  ;;  %v4589_v62 = vld [vmem:[#allocation17 + $0x158] sm:$0xff] }
0x1118   : > { %3234 = vmatpush.bf16.msra.mxu3 %v4589_v62 }
0x1119   : > { %2635 = vadd.xlane.f32.xlu0 %v2634_v63  ;;  %v4143_v63 = vld [vmem:[#allocation16 + $0x120] sm:$0xf] }
0x111a   : > { %v4144_v2 = vor.u32 %v4552_v1, %v4143_v63  ;;  %v4595_v63 = vld [vmem:[#allocation17 + $0x188] sm:$0xff] }
0x111b   : > { %2908 = vmatpush.bf16.msra.mxu1 %v4156_v11  ;;  %v4603_v1 = vld [vmem:[#allocation17 + $0x1c8] sm:$0xff]  ;;  %v2698_v11 = vperm.slane %v4124_v7, 3  ;;  %v4788_v7 = vld [vmem:[%s5823_s9 + $0x1] ss:$0 sm:$0xff] }
0x111c   : > { %2869 = vmatpush.bf16.msrb.mxu2 %v4144_v2  ;;  %v4588_v2 = vld [vmem:[#allocation17 + $0x150] sm:$0xff] }
0x111d   : > { %3235 = vmatpush.bf16.msra.mxu3 %v4588_v2 }
0x111f   : > { %2909 = vmatpush.bf16.msra.mxu1 %v4140_v26 }
0x1120   : > { %2870 = vmatpush.bf16.msrb.mxu2 %v4128_v18 }
0x1121   : > { %3236 = vmatpush.bf16.msra.mxu3 %v4587_v6 }
0x1123   : > { %3256 = vmatpush.bf16.msrb.mxu1 %v4609_v30 }
0x1124   : > { %3217 = vmatpush.bf16.msra.mxu2 %v4585_v54 }
0x1125   : > { %3237 = vmatpush.bf16.msra.mxu3 %v4586_v9 }
0x1127   : > { %3257 = vmatpush.bf16.msrb.mxu1 %v4608_v33 }
0x1128   : > { %3218 = vmatpush.bf16.msra.mxu2 %v4584_v52 }
0x112b   : > { %3258 = vmatpush.bf16.msrb.mxu1 %v4607_v50 }
0x112c   : > { %3219 = vmatpush.bf16.msra.mxu2 %v4583_v53 }
0x112f   : > { %3259 = vmatpush.bf16.msrb.mxu1 %v4606_v27 }
0x1130   : > { %3220 = vmatpush.bf16.msra.mxu2 %v4582_v57 }
0x1133   : > { %3260 = vmatpush.bf16.msrb.mxu1 %v4605_v0 }
0x1134   : > { %3221 = vmatpush.bf16.msra.mxu2 %v4581_v17 }
0x1137   : > { %3261 = vmatpush.bf16.msrb.mxu1 %v4604_v61 }
0x1138   : > { %3222 = vmatpush.bf16.msra.mxu2 %v4580_v19 }
0x113b   : > { %3262 = vmatpush.bf16.msrb.mxu1 %v4603_v1 }
0x113c   : > { %3223 = vmatpush.bf16.msra.mxu2 %v4579_v5 }
0x113f   : > { %3263 = vmatpush.bf16.msrb.mxu1 %v4602_v4 }
0x1140   : > { %3224 = vmatpush.bf16.msra.mxu2 %v4578_v8 }
0x118c   : > { %v2636_v28 = vpop.xlane.xlu0 %2635 }
0x118d   : > { %v2637_v31 = vmul.f32 0.007874016, %v2636_v28 }
0x118f   : > { %v2638_v34 = vadd.f32 1e-05, %v2637_v31 }
0x1191   : > { %4839 = vrsqrt.f32 %v2638_v34  ;;  %vm2645_vm6 = vweird.f32 %v2638_v34 }
0x1197   : > { %v4840_v35 = vpop.eup %4839 }
0x1198   : > { %v2640_v36 = vmul.f32 %v4840_v35, %v2638_v34  ;;  %vm2646_vm4 = vweird.f32 %v4840_v35 }
0x1199   : > { %vm2647_vm9 = vmor %vm2645_vm6, %vm2646_vm4 }
0x119a   : > { %v2641_v37 = vmul.f32 %v4840_v35, %v2640_v36 }
0x119c   : > { %v2642_v38 = vmul.f32 0.5, %v2641_v37 }
0x119e   : > { %v2643_v40 = vsub.f32 1.5, %v2642_v38 }
0x11a0   : > { %v2644_v41 = vmul.f32 %v4840_v35, %v2643_v40 }
0x11a2   : > { %v2648_v43 = vsel %vm2647_vm9, %v4840_v35, %v2644_v41 }
0x11a3   : > { %v2649_v44 = vmul.f32 %v2648_v43, %v5724_v51  ;;  %v4598_v51 = vld [vmem:[#allocation17 + $0x1a0] sm:$0xff] }
0x11a4   : > { %3246 = vmatpush.bf16.msrb.mxu0 %v4598_v51 }
0x11a5   : > { %v2653_v46 = vmul.f32 %v4786_v42, %v2649_v44 }
0x11a7   : > { %v2657_v12 = vadd.f32 %v4787_v45, %v2653_v46 }
0x11a8   : > { %3247 = vmatpush.bf16.msrb.mxu0 %v4597_v56 }
0x11a9   : > { %v2658_v47 = vpack.c.bf16 %v2657_v12, %v2657_v12 }
0x11ab   : > { %2871 = vmatmul.bf16.vlgmr.msrb.gmra.mxu2 %v2658_v47  ;;  %2884 = vmatmul.bf16.vlgmr.msrb.gmra.mxu3 %v2658_v47 }
0x11ac   : > { %2897 = vmatmul.bf16.vlgmr.msra.gmra.mxu0 %v2658_v47  ;;  %2910 = vmatmul.bf16.vlgmr.msra.gmra.mxu1 %v2658_v47 }
0x11ad   : > { %3248 = vmatpush.bf16.msrb.mxu0 %v4596_v60 }
0x11b1   : > { %3249 = vmatpush.bf16.msrb.mxu0 %v4595_v63 }
0x11b5   : > { %3250 = vmatpush.bf16.msrb.mxu0 %v4594_v3 }
0x1229   : > { %v2898_v13 = vpop.f32.mrf.mxu0  ;;  %v2911_v14 = vpop.f32.mrf.mxu1 }
0x122a   : > { %v2899_v15 = vadd.f32 %v2898_v13, %v2697_v10  ;;  %v2912_v18 = vadd.f32 %v2911_v14, %v2698_v11 }
0x122c   : > { %v2921_v22 = vmul.f32 0.44715, %v2899_v15  ;;  %v2922_v23 = vmul.f32 0.44715, %v2912_v18  ;;  %v2917_v39 = vmul.f32 0.5, %v2899_v15  ;;  %v2918_v27 = vmul.f32 0.5, %v2912_v18 }
0x122e   : > { %v2925_v24 = vmul.f32 %v2921_v22, %v2899_v15  ;;  %v2926_v25 = vmul.f32 %v2922_v23, %v2912_v18  ;;  %v2872_v26 = vpop.f32.mrf.mxu2  ;;  %v2885_v28 = vpop.f32.mrf.mxu3  ;;  %v4617_v22 = vld [vmem:[#allocation19 + $0x38] sm:$0xff] }
0x122f   : > { %v2873_v29 = vadd.f32 %v2872_v26, %v2695_v20  ;;  %v2886_v30 = vadd.f32 %v2885_v28, %v2696_v21  ;;  %3365 = vmatpush.bf16.msrb.mxu2 %v4617_v22  ;;  %v4616_v28 = vld [vmem:[#allocation19 + $0x30] sm:$0xff] }
0x1230   : > { %v2929_v31 = vmul.f32 %v2925_v24, %v2899_v15  ;;  %v2930_v32 = vmul.f32 %v2926_v25, %v2912_v18 }
0x1231   : > { %v2919_v33 = vmul.f32 0.44715, %v2873_v29  ;;  %v2920_v34 = vmul.f32 0.44715, %v2886_v30  ;;  %v2900_v35 = vpop.f32.mrf.mxu0  ;;  %v2913_v36 = vpop.f32.mrf.mxu1  ;;  %v2915_v61 = vmul.f32 0.5, %v2873_v29  ;;  %v2916_v62 = vmul.f32 0.5, %v2886_v30 }
0x1232   : > { %v2933_v37 = vadd.f32 %v2929_v31, %v2899_v15  ;;  %v2934_v38 = vadd.f32 %v2930_v32, %v2912_v18  ;;  %v4613_v31 = vld [vmem:[#allocation19 + $0x18] sm:$0xff]  ;;  %v4612_v32 = vld [vmem:[#allocation19 + $0x10] sm:$0xff] }
0x1233   : > { %v2923_v40 = vmul.f32 %v2919_v33, %v2873_v29  ;;  %v2924_v41 = vmul.f32 %v2920_v34, %v2886_v30  ;;  %3366 = vmatpush.bf16.msrb.mxu2 %v4616_v28  ;;  %v4610_v33 = vld [vmem:[#allocation19] sm:$0xff] }
0x1234   : > { %v2937_v42 = vmul.f32 0.7978846, %v2933_v37  ;;  %v2938_v43 = vmul.f32 0.7978846, %v2934_v38 }
0x1235   : > { %v2927_v44 = vmul.f32 %v2923_v40, %v2873_v29  ;;  %v2928_v45 = vmul.f32 %v2924_v41, %v2886_v30 }
0x1236   : > { %v2874_v46 = vpop.f32.mrf.mxu2  ;;  %v2887_v12 = vpop.f32.mrf.mxu3  ;;  %4841 = vtanh.f32 %v2937_v42 }
0x1237   : > { %4843 = vtanh.f32 %v2938_v43  ;;  %v2931_v47 = vadd.f32 %v2927_v44, %v2873_v29  ;;  %v2932_v54 = vadd.f32 %v2928_v45, %v2886_v30  ;;  %v4615_v29 = vld [vmem:[#allocation19 + $0x28] sm:$0xff]  ;;  %v4614_v30 = vld [vmem:[#allocation19 + $0x20] sm:$0xff] }
0x1238   : > { %3367 = vmatpush.bf16.msrb.mxu2 %v4615_v29  ;;  %v4789_v43 = vld [vmem:[%s5824_s13] ss:$0 sm:$0xff]  ;;  %s3394_s13 = sshll.u32 %s3390_s3, 4  ;;  %s3395_s13 = int_to_ptr.hbm [resolvable:$true] %s3394_s13 }
0x1239   : > { %v2935_v48 = vmul.f32 0.7978846, %v2931_v47  ;;  %v2936_v49 = vmul.f32 0.7978846, %v2932_v54  ;;  %v4790_v46 = vld [vmem:[%s5825_s11] ss:$0 sm:$0xff] }
0x123a   : > { %s5195_s22 = sshra.s32 %s3395_s13, 4  ;;  %s5196_s22 = int_to_ptr.hbm [resolvable:$true] %s5195_s22 }
0x123b   : > { %4845 = vtanh.f32 %v2935_v48  ;;  %s5197_s11 = scalar_lea.hbm %s5196_s22, 8  ;;  %p5202_p12 = scmp.lt.s32.totalorder %s5196_s22, %s5826_s17 }
0x123c   : > { %v4842_v50 = vpop.eup %4841  ;;  %4847 = vtanh.f32 %v2936_v49  ;;  %3368 = vmatpush.bf16.msrb.mxu2 %v4614_v30  ;;  %p5198_p1 = scmp.ne.s32.totalorder %s5196_s22, %s5197_s11  ;;  %p5203_p8 = scmp.lt.s32.totalorder %s5201_s30, %s5197_s11 }
0x123d   : > { %v4844_v52 = vpop.eup %4843  ;;  %v2945_v51 = vadd.f32 1.0, %v4842_v50 }
0x123e   : > { %v2946_v53 = vadd.f32 1.0, %v4844_v52  ;;  %p5199_p3 = pnand %p5198_p1, %p5507_p13  ;;  %p5204_p7 = por %p5203_p8, %p5202_p12 }
0x123f   : > { %v2949_v55 = vmul.f32 %v2945_v51, %v2917_v39 }
0x1240   : > { %v2950_v56 = vmul.f32 %v2946_v53, %v2918_v27  ;;  %3369 = vmatpush.bf16.msrb.mxu2 %v4613_v31  ;;  %p5200_p5 = pneg %p5199_p3 }
0x1241   : > { %v4846_v0 = vpop.eup %4845  ;;  %v2953_v57 = vpack.c.bf16 %v2949_v55, %v2949_v55 }
0x1242   : > { %v4848_v59 = vpop.eup %4847  ;;  %v2954_v60 = vpack.c.bf16 %v2950_v56, %v2950_v56  ;;  %v2943_v17 = vadd.f32 1.0, %v4846_v0  ;;  %p5205_p9 = pnand %p5204_p7, %p5200_p5 }
0x1243   : > { %3251 = vmatmul.bf16.vlgmr.msrb.gmra.mxu0 %v2953_v57  ;;  %v2944_v63 = vadd.f32 1.0, %v4848_v59 }
0x1244   : > { %3264 = vmatmul.bf16.vlgmr.msrb.gmra.mxu1 %v2954_v60  ;;  %v2947_v1 = vmul.f32 %v2943_v17, %v2915_v61  ;;  %3370 = vmatpush.bf16.msrb.mxu2 %v4612_v32 }
0x1245   : > { %v2948_v19 = vmul.f32 %v2944_v63, %v2916_v62 }
0x1246   : > { %v2951_v2 = vpack.c.bf16 %v2947_v1, %v2947_v1 }
0x1247   : > { %v2952_v3 = vpack.c.bf16 %v2948_v19, %v2948_v19 }
0x1248   : > { %3225 = vmatmul.bf16.vlgmr.msra.gmra.mxu2 %v2951_v2 }
0x1249   : > { %3238 = vmatmul.bf16.vlgmr.msra.gmra.mxu3 %v2952_v3 }
0x12c0   : > { %v3252_v4 = vpop.f32.mrf.mxu0 }
0x12c1   : > { %v3265_v5 = vpop.f32.mrf.mxu1 }
0x12c8   : > { %v3254_v6 = vpop.f32.mrf.mxu0 }
0x12c9   : > { %v3267_v8 = vpop.f32.mrf.mxu1 }
0x12cb   : > { %v3226_v9 = vpop.f32.mrf.mxu2 }
0x12cc   : > { %v3227_v10 = vadd.f32 %v4788_v7, %v3226_v9  ;;  %v3239_v11 = vpop.f32.mrf.mxu3 }
0x12ce   : > { %v3240_v13 = vadd.f32 %v3239_v11, %v3227_v10 }
0x12d0   : > { %v3253_v14 = vadd.f32 %v3252_v4, %v3240_v13 }
0x12d2   : > { %v3266_v15 = vadd.f32 %v3265_v5, %v3253_v14 }
0x12d3   : > { %v3228_v18 = vpop.f32.mrf.mxu2 }
0x12d4   : > { %v3241_v20 = vpop.f32.mrf.mxu3  ;;  %v3269_v21 = vadd.f32 %v3266_v15, %v5719_v58  ;;  %v4611_v58 = vld [vmem:[#allocation19 + $0x8] sm:$0xff] }
0x12d5   : > { %3371 = vmatpush.bf16.msrb.mxu2 %v4611_v58 }
0x12d6   : > { %3272 = vadd.xlane.f32.xlu1 %v3269_v21 }
0x12d9   : > { %3372 = vmatpush.bf16.msrb.mxu2 %v4610_v33 }
0x1349   : > { %v3273_v23 = vpop.xlane.xlu1 %3272 }
0x134a   : > { %v3274_v24 = vmul.f32 %v3273_v23, %v5571_v16 }
0x134c   : > { %v3275_v25 = vsub.f32 %v3269_v21, %v3274_v24 }
0x134e   : > { %v3276_v26 = vmul.f32 %v3275_v25, %v3275_v25 }
0x1350   : > { %3277 = vadd.xlane.f32.xlu2 %v3276_v26 }
0x13c3   : > { %v3278_v34 = vpop.xlane.xlu2 %3277 }
0x13c4   : > { %v3279_v35 = vmul.f32 0.007874016, %v3278_v34 }
0x13c6   : > { %v3280_v16 = vadd.f32 1e-05, %v3279_v35 }
0x13c8   : > { %4849 = vrsqrt.f32 %v3280_v16  ;;  %vm3287_vm7 = vweird.f32 %v3280_v16 }
0x13ce   : > { %v4850_v36 = vpop.eup %4849 }
0x13cf   : > { %v3282_v37 = vmul.f32 %v4850_v36, %v3280_v16  ;;  %vm3288_vm10 = vweird.f32 %v4850_v36 }
0x13d0   : > { %vm3289_vm8 = vmor %vm3287_vm7, %vm3288_vm10 }
0x13d1   : > { %v3283_v38 = vmul.f32 %v4850_v36, %v3282_v37 }
0x13d3   : > { %v3284_v40 = vmul.f32 0.5, %v3283_v38 }
0x13d5   : > { %v3285_v41 = vsub.f32 1.5, %v3284_v40 }
0x13d7   : > { %v3286_v42 = vmul.f32 %v4850_v36, %v3285_v41 }
0x13d9   : > { %v3290_v44 = vsel %vm3289_vm8, %v4850_v36, %v3286_v42 }
0x13da   : > { %v3291_v45 = vmul.f32 %v3290_v44, %v3275_v25 }
0x13dc   : > { %v3295_v12 = vmul.f32 %v4789_v43, %v3291_v45 }
0x13de   : > { %v3299_v47 = vadd.f32 %v4790_v46, %v3295_v12 }
0x13e0   : > { %v3300_v54 = vpack.c.bf16 %v3299_v47, %v3299_v47 }
0x13e2   : > { %3373 = vmatmul.bf16.vlgmr.msrb.gmra.mxu2 %v3300_v54 }
0x1465   : > { %v3374_v48 = vpop.f32.mrf.mxu2 }
0x1466   : > { %3378 = vst [vmem:[%s676_s15] sm:$0xff] %v3374_v48 }
0x1467   : > { %5208 = shalt.err (!%p5205_p9)
}
0x1468   : > { %4660 = dma.vmem_to_hbm [thread:$0]  (%p5507_p13), %s3393_s16, 128, %s3395_s13, %s3380_s24  }
0x146d   : > { %v3376_v49 = vpop.f32.mrf.mxu2 }
0x146e PF: > { %s3406_s1 = sand.u32 1, %s5255_s18   ;;  %p5828_p10 = scmp.ge.s32.totalorder %s5267_s21, 2 }
0x146f   : > { %s3407_s4 = scalar_lea.sflag [#allocation4], %s3406_s1 }
0x1470   : > { %p4698_p11 = pnand %p5828_p10, %p5512_p4 }
0x1472   : > { %p4699_p0 = pneg %p4698_p11 }
0x1474   : > { %5250 = dma.done.wait (%p4699_p0), %s3407_s4, 128  }
0x1475   : > { %5252 = vsyncadd (%p4699_p0), %s3407_s4, 4294967168  ;;  %p33_p2 = scmp.ge.s32.totalorder %s5487_s26, 4   ;;  %s5829_s18 = smov %s5259_s19 }
0x1476   : > { %s5830_s19 = smov %s5263_s20  ;;  %s5831_s20 = smov %s5499_s27 }
0x1477   : > { %s5832_s21 = smov %s5487_s26  ;;  %35 = sbr.rel (!%p33_p2) target bundleno = 21 (0x15), region = 176 }
0x147c   :  { %3413 = vsyncpa [#allocation3], 1 }
0x147d   :  { %3415 = vsyncpa [#allocation3 + $0x1], 1 }
0x147e   :  { %3416 = vsyncpa [#allocation6], 1 }
0x147f   :  { %3417 = vsyncpa [#allocation9], 1 }
0x1480   :  { %3418 = vsyncpa [#allocation12], 1 }
0x1481   :  { %3419 = vsyncpa [#allocation15], 1 }
0x1482   :  { %3420 = vsyncpa [#allocation18], 1 }
0x1483   :  { %3421 = vsyncpa [#allocation4], 1 }
0x1484   :  { %3423 = vsyncpa [#allocation4 + $0x1], 1 }

</bundles_post_ra>
